<compile_context>
chip_gen: v6e
topology: v6e:2x2x1
jax: 0.10.0
libtpu: 0.0.40
codegen_flags: <defaults>
</compile_context>

<pallas_src>
import functools

import jax
import jax.numpy as jnp
import numpy as np
from jax.experimental import pallas as pl
from jax.experimental.pallas import tpu as pltpu


def _round_up(x, m):
    return (x + m - 1) // m * m


def _out_spatial(in_sp, ks, stride, padding, dilation):
    return tuple((i + 2 * p - d * (k - 1) - 1) // s + 1
                 for i, k, s, p, d in zip(in_sp, ks, stride, padding, dilation))


def _pad_taps(K, cpg, align=16):
    """Smallest K_p >= K such that K_p * cpg is a multiple of `align`."""
    K_p = K
    while (K_p * cpg) % align:
        K_p += 1
    return K_p


def _pick_tile_m(M):
    """Largest lane tile (multiple of 128) dividing M, preferring >=2 blocks."""
    for cand in (1024, 512, 256, 128):
        if M % cand == 0 and (M // cand >= 2 or cand == 128):
            return cand
    return 128  # caller pads M up to a multiple of 128


# --------------------------- Pallas grouped conv GEMM -------------------------

def _gemm_bias_kernel(w_ref, c_ref, b_ref, o_ref):
    o_ref[...] = (jnp.dot(w_ref[...], c_ref[...],
                          preferred_element_type=jnp.float32) + b_ref[...])


def _grouped_conv_gemm(cols, weight, bias, groups):
    """out[g] = wmat[g] @ cols[g] + bias[g] for all groups in ONE pallas_call.

    cols:   (G, Kd_p, M) bf16, Kd_p = K_p * cpg with zero taps appended
    weight: (C_out, C_in//G, kd, kh, kw) f32
    bias:   (C_out,) f32
    returns (G, C_out//G, M) float32
    """
    G, Kd_p, M = cols.shape
    C_out = weight.shape[0]
    cpg = weight.shape[1]
    K = int(np.prod(weight.shape[2:]))
    copg = C_out // G
    copg_p = _round_up(copg, 8)
    Kd = K * cpg
    assert Kd_p >= Kd and Kd_p % cpg == 0

    # Weights as (G, copg_p, Kd_p) bf16 matching the (k, c) contraction order.
    wmat = weight.reshape(G, copg, cpg, K).transpose(0, 1, 3, 2).reshape(G, copg, Kd)
    wmat = jnp.pad(wmat, ((0, 0), (0, copg_p - copg), (0, Kd_p - Kd)))
    wmat = wmat.astype(jnp.bfloat16)
    b = jnp.pad(bias.astype(jnp.float32).reshape(G, copg),
                ((0, 0), (0, copg_p - copg))).reshape(G, copg_p, 1)

    # M (= N*P) must be a multiple of 128 for lane-dense tiles; only in the
    # non-aligned fallback case does the big cols tensor get a pad pass.
    if M % 128:
        Mp = _round_up(M, 128)
        cols = jnp.pad(cols, ((0, 0), (0, 0), (0, Mp - M)))
    else:
        Mp = M
    tM = _pick_tile_m(Mp)

    def footprint(t):  # double-buffered per-step VMEM bytes
        return (2 * (Kd_p * t * 2 + copg_p * t * 4)
                + 2 * (copg_p * Kd_p * 2 + copg_p * 4))

    while footprint(tM) > 24 * 2**20 and tM > 128:
        tM //= 2
    vmem_limit = int(min(max(2 * footprint(tM), 16 * 2**20), 48 * 2**20))

    out = pl.pallas_call(
        _gemm_bias_kernel,
        out_shape=jax.ShapeDtypeStruct((G, copg_p, Mp), jnp.float32),
        grid_spec=pltpu.PrefetchScalarGridSpec(
            num_scalar_prefetch=0,
            grid=(G, Mp // tM),
            in_specs=[
                pl.BlockSpec((None, copg_p, Kd_p), lambda g, m: (g, 0, 0)),
                pl.BlockSpec((None, Kd_p, tM), lambda g, m: (g, 0, m)),
                pl.BlockSpec((None, copg_p, 1), lambda g, m: (g, 0, 0)),
            ],
            out_specs=pl.BlockSpec((None, copg_p, tM), lambda g, m: (g, 0, m)),
        ),
        compiler_params=pltpu.CompilerParams(
            dimension_semantics=("parallel", "parallel"),
            vmem_limit_bytes=vmem_limit),
    )(wmat, cols, b)
    return out[:, :copg, :M]


# ------------------------------ column producers -------------------------------

def _im2col_standard_T(x_bf, kernel_size, stride, padding, dilation, groups):
    """Zero-offset fast path.  Returns cols (G, K_p*cpg, N*P) bf16 + spatial."""
    # TODO(synk): fully fusing this im2col into the Pallas GEMM (input halo
    # blocks via manual make_async_copy, taps built in VMEM) would remove the
    # K-fold HBM inflation entirely; left for a follow-up.
    N, C, D, H, W = x_bf.shape
    kd, kh, kw = kernel_size
    sd, sh, sw = stride
    pd, ph, pw = padding
    dld, dlh, dlw = dilation
    Do, Ho, Wo = _out_spatial((D, H, W), kernel_size, stride, padding, dilation)
    P = Do * Ho * Wo
    G = groups
    cpg = C // G
    K = kd * kh * kw
    K_p = _pad_taps(K, cpg)

    # channel-first, spatially padded input (only ~size of x; one small pass)
    xcf = jnp.pad(x_bf.transpose(1, 0, 2, 3, 4),
                  ((0, 0), (0, 0), (pd, pd), (ph, ph), (pw, pw)))

    zero_piece = jnp.zeros((cpg, N * P), jnp.bfloat16)
    per_group = []
    for g in range(G):
        xg = xcf[g * cpg:(g + 1) * cpg]
        taps = []
        for i in range(kd):
            for j in range(kh):
                for l in range(kw):
                    tap = xg[:, :,
                             i * dld: i * dld + (Do - 1) * sd + 1: sd,
                             j * dlh: j * dlh + (Ho - 1) * sh + 1: sh,
                             l * dlw: l * dlw + (Wo - 1) * sw + 1: sw]
                    taps.append(tap.reshape(cpg, N * P))
        taps.extend([zero_piece] * (K_p - K))
        per_group.append(jnp.stack(taps, 0).reshape(K_p * cpg, N * P))
    return jnp.stack(per_group, 0), (Do, Ho, Wo)


def _deform_columns_T(x_bf, offsets_r, kernel_size, stride, padding, dilation,
                      groups, offset_groups):
    """Trilinear deformable im2col emitted directly in GEMM layout.

    x_bf:      (N, C, D, H, W) bf16
    offsets_r: (OG, K, 3, N, P) f32, component order (d, h, w)
    returns    cols (G, K_p*cpg, N*P) bf16
    """
    # TODO(synk): the data-dependent trilinear gather still runs as an XLA
    # gather; a Pallas version needs a VMEM-resident input halo + manual DMA
    # (scalar-prefetched index bases, P2/P4 pattern) and is left as follow-up.
    N, C, D, H, W = x_bf.shape
    kd, kh, kw = kernel_size
    sd, sh, sw = stride
    pd, ph, pw = padding
    dld, dlh, dlw = dilation
    K = kd * kh * kw
    Do, Ho, Wo = _out_spatial((D, H, W), kernel_size, stride, padding, dilation)
    P = Do * Ho * Wo
    OG = offset_groups
    cpog = C // OG
    G = groups
    cpg = C // G
    K_p = _pad_taps(K, cpg)

    # kernel-tap coordinates (K_p,); padded taps are masked to zero weight.
    kdi, khi, kwi = jnp.meshgrid(jnp.arange(kd), jnp.arange(kh),
                                 jnp.arange(kw), indexing='ij')
    pad_k = ((0, K_p - K),)
    kdi = jnp.pad(kdi.reshape(K), pad_k).astype(jnp.float32)
    khi = jnp.pad(khi.reshape(K), pad_k).astype(jnp.float32)
    kwi = jnp.pad(kwi.reshape(K), pad_k).astype(jnp.float32)
    valid = (jnp.arange(K_p) < K).astype(jnp.float32)

    odi, ohi, owi = jnp.meshgrid(jnp.arange(Do), jnp.arange(Ho),
                                 jnp.arange(Wo), indexing='ij')
    odi = odi.reshape(P).astype(jnp.float32)
    ohi = ohi.reshape(P).astype(jnp.float32)
    owi = owi.reshape(P).astype(jnp.float32)

    base_d = kdi[:, None] * dld + odi[None, :] * sd - pd          # (K_p, P)
    base_h = khi[:, None] * dlh + ohi[None, :] * sh - ph
    base_w = kwi[:, None] * dlw + owi[None, :] * sw - pw

    # offset channel layout assumed ((og*K + k)*3 + {d,h,w}); only zero
    # offsets are exercised by the self-test below.
    off = jnp.pad(offsets_r, ((0, 0), (0, K_p - K), (0, 0), (0, 0), (0, 0)))

    x_flat = x_bf.reshape(N, C, D * H * W)
    n_b = jnp.arange(N).reshape(1, 1, N, 1)

    per_og = []
    for og in range(OG):
        pos_d = base_d[:, None, :] + off[og, :, 0]                # (K_p, N, P)
        pos_h = base_h[:, None, :] + off[og, :, 1]
        pos_w = base_w[:, None, :] + off[og, :, 2]

        d0f = jnp.floor(pos_d); fd = pos_d - d0f; d0 = d0f.astype(jnp.int32)
        h0f = jnp.floor(pos_h); fh = pos_h - h0f; h0 = h0f.astype(jnp.int32)
        w0f = jnp.floor(pos_w); fw = pos_w - w0f; w0 = w0f.astype(jnp.int32)

        x_og = x_flat[:, og * cpog:(og + 1) * cpog, :]            # (N, cpog, DHW)
        c_b = jnp.arange(cpog).reshape(1, cpog, 1, 1)

        terms = []
        for cd in (0, 1):
            di = d0 + cd
            wtd = fd if cd else 1.0 - fd
            okd = (di >= 0) & (di < D)
            dic = jnp.clip(di, 0, D - 1)
            for ch in (0, 1):
                hi = h0 + ch
                wth = fh if ch else 1.0 - fh
                okh = (hi >= 0) & (hi < H)
                hic = jnp.clip(hi, 0, H - 1)
                for cw in (0, 1):
                    wi = w0 + cw
                    wtw = fw if cw else 1.0 - fw
                    okw = (wi >= 0) & (wi < W)
                    wic = jnp.clip(wi, 0, W - 1)
                    lin = (dic * H + hic) * W + wic               # (K_p, N, P)
                    vals = x_og[n_b, c_b, lin[:, None, :, :]]     # (K_p, cpog, N, P)
                    wt = (wtd * wth * wtw) * (okd & okh & okw).astype(jnp.float32)
                    wt = wt * valid[:, None, None]
                    terms.append(vals.astype(jnp.float32) * wt[:, None, :, :])
        per_og.append(sum(terms))                                 # (K_p, cpog, N, P)
    full = per_og[0] if OG == 1 else jnp.concatenate(per_og, axis=1)
    full = full.astype(jnp.bfloat16)                              # (K_p, C, N, P)
    if G == 1:
        cols = full.reshape(1, K_p * C, N * P)
    else:
        # TODO(synk): for G > 1 this reorganization costs one extra bf16 pass.
        cols = full.reshape(K_p, G, cpg, N * P).transpose(1, 0, 2, 3)
        cols = cols.reshape(G, K_p * cpg, N * P)
    return cols, (Do, Ho, Wo)


# ------------------------------ forward ----------------------------------------

def dconv_base_forward(x, W_dp, b_dp, W_dc, b_dc, *, kernel_size, stride,
                       padding, dilation, groups, offset_groups):
    N, C_in = x.shape[:2]
    Do, Ho, Wo = _out_spatial(x.shape[2:], kernel_size, stride, padding, dilation)
    P = Do * Ho * Wo
    K = kernel_size[0] * kernel_size[1] * kernel_size[2]
    x_bf = x.astype(jnp.bfloat16)

    # deform_params: plain Conv3d (groups=1) producing the offsets.
    cols_std, _ = _im2col_standard_T(x_bf, kernel_size, stride, padding,
                                     dilation, groups=1)
    off = _grouped_conv_gemm(cols_std, W_dp, b_dp, groups=1)   # (1, Coff, N*P) f32
    offsets_r = off[0].reshape(offset_groups, K, 3, N, P)
    # _get_deformation returns (offsets, None): no modulation mask.

    # deform_conv: DeformConv3d(x, offsets, None) -- trilinear sampling.
    cols_def, _ = _deform_columns_T(x_bf, offsets_r, kernel_size, stride,
                                    padding, dilation, groups, offset_groups)
    res = _grouped_conv_gemm(cols_def, W_dc, b_dc, groups)      # (G, copg, N*P)
    G = groups
    copg = W_dc.shape[0] // G
    out = res.reshape(G, copg, N, P).transpose(2, 0, 1, 3)      # (N, G, copg, P)
    # NOTE: _DConvBase.forward does NOT apply self.activation.
    return out.reshape(N, G * copg, Do, Ho, Wo)


# ------------------------------- main ------------------------------------------

if __name__ == "__main__":
    key = jax.random.PRNGKey(0)
    N, C_in, C_out = 2, 4, 8
    D = H = W = 8
    kernel_size = (3, 3, 3)
    stride = (1, 1, 1)
    padding = (1, 1, 1)
    dilation = (1, 1, 1)
    groups = 1
    offset_groups = 1
    K = kernel_size[0] * kernel_size[1] * kernel_size[2]

    k1, k2, k3 = jax.random.split(key, 3)
    x = jax.random.normal(k1, (N, C_in, D, H, W), jnp.float32)

    # deform_params: nn.init.zeros_ on weight and bias (as in the module)
    W_dp = jnp.zeros((3 * offset_groups * K, C_in) + kernel_size, jnp.float32)
    b_dp = jnp.zeros((3 * offset_groups * K,), jnp.float32)

    # deform_conv parameters: deterministic synthetic init
    W_dc = 0.1 * jax.random.normal(
        k2, (C_out, C_in // groups) + kernel_size, jnp.float32)
    b_dc = 0.1 * jax.random.normal(k3, (C_out,), jnp.float32)

    fwd = jax.jit(functools.partial(
        dconv_base_forward, kernel_size=kernel_size, stride=stride,
        padding=padding, dilation=dilation, groups=groups,
        offset_groups=offset_groups))
    out = jax.block_until_ready(fwd(x, W_dp, b_dp, W_dc, b_dc))

    # Reference: offsets are all zero (zero-init conv) -> deformable conv
    # reduces exactly to a standard Conv3d.
    dn = ('NCDHW', 'OIDHW', 'NCDHW')
    pads = [(p, p) for p in padding]
    ref_f32 = jax.lax.conv_general_dilated(
        x, W_dc, window_strides=stride, padding=pads, rhs_dilation=dilation,
        dimension_numbers=dn, feature_group_count=groups,
        precision=jax.lax.Precision.HIGHEST) + b_dc.reshape(1, -1, 1, 1, 1)

    # Tight structural check: same reference with bf16-rounded operands
    # (the kernel feeds the MXU in bf16 with f32 accumulation).
    xb = x.astype(jnp.bfloat16).astype(jnp.float32)
    wb = W_dc.astype(jnp.bfloat16).astype(jnp.float32)
    ref_bf16 = jax.lax.conv_general_dilated(
        xb, wb, window_strides=stride, padding=pads, rhs_dilation=dilation,
        dimension_numbers=dn, feature_group_count=groups,
        precision=jax.lax.Precision.HIGHEST) + b_dc.reshape(1, -1, 1, 1, 1)

    assert out.shape == ref_f32.shape == (N, C_out, D, H, W)
    np.testing.assert_allclose(np.asarray(out), np.asarray(ref_bf16),
                               atol=1e-3, rtol=1e-3)
    np.testing.assert_allclose(np.asarray(out), np.asarray(ref_f32),
                               atol=2e-2, rtol=2e-2)

    # Also sanity-check the zero-offset fast path (standard im2col + GEMM).
    cols_s, sp = _im2col_standard_T(x.astype(jnp.bfloat16), kernel_size,
                                    stride, padding, dilation, groups)
    std = _grouped_conv_gemm(cols_s, W_dc, b_dc, groups)
    std = std.reshape(groups, C_out // groups, N, -1).transpose(2, 0, 1, 3)
    std = std.reshape(N, C_out, *sp)
    np.testing.assert_allclose(np.asarray(std), np.asarray(ref_bf16),
                               atol=1e-3, rtol=1e-3)

    print("KERNEL_OK")
</pallas_src>

<mosaic_0001>
module attributes {stable_mosaic.version = 11 : i64} {
  func.func @_gemm_bias_kernel(%arg0: i32, %arg1: i32, %arg2: memref<1x88x112xbf16, #tpu.memory_space<vmem>>, %arg3: memref<1x112x512xbf16, #tpu.memory_space<vmem>>, %arg4: memref<1x88x1xf32, #tpu.memory_space<vmem>>, %arg5: memref<1x88x512xf32, #tpu.memory_space<vmem>>) attributes {dimension_semantics = [#tpu.dimension_semantics<parallel>, #tpu.dimension_semantics<parallel>], iteration_bounds = array<i64: 1, 2>, scalar_prefetch = 0 : i64, scratch_operands = 0 : i64, tpu.core_type = #tpu.core_type<tc>, window_params = [{transform_indices = @transform_0, window_bounds = array<i64: 1, 88, 112>}, {transform_indices = @transform_1, window_bounds = array<i64: 1, 112, 512>}, {transform_indices = @transform_2, window_bounds = array<i64: 1, 88, 1>}, {transform_indices = @transform_3, window_bounds = array<i64: 1, 88, 512>}]} {
    %c0 = arith.constant 0 : index
    %c0_0 = arith.constant 0 : index
    %c0_1 = arith.constant 0 : index
    %0 = vector.load %arg2[%c0, %c0_0, %c0_1] : memref<1x88x112xbf16, #tpu.memory_space<vmem>>, vector<1x88x112xbf16>
    %1 = vector.shape_cast %0 : vector<1x88x112xbf16> to vector<88x112xbf16>
    %c0_2 = arith.constant 0 : index
    %c0_3 = arith.constant 0 : index
    %c0_4 = arith.constant 0 : index
    %2 = vector.load %arg3[%c0_2, %c0_3, %c0_4] : memref<1x112x512xbf16, #tpu.memory_space<vmem>>, vector<1x112x512xbf16>
    %3 = vector.shape_cast %2 : vector<1x112x512xbf16> to vector<112x512xbf16>
    %cst = arith.constant dense<0.000000e+00> : vector<88x512xf32>
    %4 = tpu.matmul %1, %3, %cst {dimension_numbers = #tpu.dot_dimension_numbers<[1], [0], [0], [1], [0, 0, 1, 1], [], []>} : vector<88x112xbf16>, vector<112x512xbf16>, vector<88x512xf32> -> vector<88x512xf32>
    %c0_5 = arith.constant 0 : index
    %c0_6 = arith.constant 0 : index
    %c0_7 = arith.constant 0 : index
    %5 = vector.load %arg4[%c0_5, %c0_6, %c0_7] : memref<1x88x1xf32, #tpu.memory_space<vmem>>, vector<1x88x1xf32>
    %6 = vector.shape_cast %5 : vector<1x88x1xf32> to vector<88x1xf32>
    %7 = vector.broadcast %6 : vector<88x1xf32> to vector<88x512xf32>
    %8 = arith.addf %4, %7 : vector<88x512xf32>
    %c0_8 = arith.constant 0 : index
    %c0_9 = arith.constant 0 : index
    %c0_10 = arith.constant 0 : index
    %9 = vector.load %arg5[%c0_8, %c0_9, %c0_10] : memref<1x88x512xf32, #tpu.memory_space<vmem>>, vector<1x88x512xf32>
    %10 = vector.shape_cast %9 : vector<1x88x512xf32> to vector<88x512xf32>
    %11 = vector.shape_cast %8 : vector<88x512xf32> to vector<1x88x512xf32>
    tpu.vector_store %arg5[%c0_8, %c0_9, %c0_10], %11 {strides = array<i32>} : memref<1x88x512xf32, #tpu.memory_space<vmem>>, vector<1x88x512xf32>,
    return
  }
  func.func @transform_0(%arg0: i32, %arg1: i32) -> (i32, i32, i32) {
    %c0_i32 = arith.constant 0 : i32
    %c0_i32_0 = arith.constant 0 : i32
    %c0_i32_1 = arith.constant 0 : i32
    return %arg0, %c0_i32, %c0_i32_0 : i32, i32, i32
  }
  func.func @transform_1(%arg0: i32, %arg1: i32) -> (i32, i32, i32) {
    %c0_i32 = arith.constant 0 : i32
    %c0_i32_0 = arith.constant 0 : i32
    return %arg0, %c0_i32, %arg1 : i32, i32, i32
  }
  func.func @transform_2(%arg0: i32, %arg1: i32) -> (i32, i32, i32) {
    %c0_i32 = arith.constant 0 : i32
    %c0_i32_0 = arith.constant 0 : i32
    %c0_i32_1 = arith.constant 0 : i32
    return %arg0, %c0_i32, %c0_i32_0 : i32, i32, i32
  }
  func.func @transform_3(%arg0: i32, %arg1: i32) -> (i32, i32, i32) {
    %c0_i32 = arith.constant 0 : i32
    %c0_i32_0 = arith.constant 0 : i32
    return %arg0, %c0_i32, %arg1 : i32, i32, i32
  }
}

module attributes {stable_mosaic.version = 11 : i64} {
  func.func @_gemm_bias_kernel(%arg0: i32, %arg1: i32, %arg2: memref<1x8x112xbf16, #tpu.memory_space<vmem>>, %arg3: memref<1x112x512xbf16, #tpu.memory_space<vmem>>, %arg4: memref<1x8x1xf32, #tpu.memory_space<vmem>>, %arg5: memref<1x8x512xf32, #tpu.memory_space<vmem>>) attributes {dimension_semantics = [#tpu.dimension_semantics<parallel>, #tpu.dimension_semantics<parallel>], iteration_bounds = array<i64: 1, 2>, scalar_prefetch = 0 : i64, scratch_operands = 0 : i64, tpu.core_type = #tpu.core_type<tc>, window_params = [{transform_indices = @transform_0, window_bounds = array<i64: 1, 8, 112>}, {transform_indices = @transform_1, window_bounds = array<i64: 1, 112, 512>}, {transform_indices = @transform_2, window_bounds = array<i64: 1, 8, 1>}, {transform_indices = @transform_3, window_bounds = array<i64: 1, 8, 512>}]} {
    %c0 = arith.constant 0 : index
    %c0_0 = arith.constant 0 : index
    %c0_1 = arith.constant 0 : index
    %0 = vector.load %arg2[%c0, %c0_0, %c0_1] : memref<1x8x112xbf16, #tpu.memory_space<vmem>>, vector<1x8x112xbf16>
    %1 = vector.shape_cast %0 : vector<1x8x112xbf16> to vector<8x112xbf16>
    %c0_2 = arith.constant 0 : index
    %c0_3 = arith.constant 0 : index
    %c0_4 = arith.constant 0 : index
    %2 = vector.load %arg3[%c0_2, %c0_3, %c0_4] : memref<1x112x512xbf16, #tpu.memory_space<vmem>>, vector<1x112x512xbf16>
    %3 = vector.shape_cast %2 : vector<1x112x512xbf16> to vector<112x512xbf16>
    %cst = arith.constant dense<0.000000e+00> : vector<8x512xf32>
    %4 = tpu.matmul %1, %3, %cst {dimension_numbers = #tpu.dot_dimension_numbers<[1], [0], [0], [1], [0, 0, 1, 1], [], []>} : vector<8x112xbf16>, vector<112x512xbf16>, vector<8x512xf32> -> vector<8x512xf32>
    %c0_5 = arith.constant 0 : index
    %c0_6 = arith.constant 0 : index
    %c0_7 = arith.constant 0 : index
    %5 = vector.load %arg4[%c0_5, %c0_6, %c0_7] : memref<1x8x1xf32, #tpu.memory_space<vmem>>, vector<1x8x1xf32>
    %6 = vector.shape_cast %5 : vector<1x8x1xf32> to vector<8x1xf32>
    %7 = vector.broadcast %6 : vector<8x1xf32> to vector<8x512xf32>
    %8 = arith.addf %4, %7 : vector<8x512xf32>
    %c0_8 = arith.constant 0 : index
    %c0_9 = arith.constant 0 : index
    %c0_10 = arith.constant 0 : index
    %9 = vector.load %arg5[%c0_8, %c0_9, %c0_10] : memref<1x8x512xf32, #tpu.memory_space<vmem>>, vector<1x8x512xf32>
    %10 = vector.shape_cast %9 : vector<1x8x512xf32> to vector<8x512xf32>
    %11 = vector.shape_cast %8 : vector<8x512xf32> to vector<1x8x512xf32>
    tpu.vector_store %arg5[%c0_8, %c0_9, %c0_10], %11 {strides = array<i32>} : memref<1x8x512xf32, #tpu.memory_space<vmem>>, vector<1x8x512xf32>,
    return
  }
  func.func @transform_0(%arg0: i32, %arg1: i32) -> (i32, i32, i32) {
    %c0_i32 = arith.constant 0 : i32
    %c0_i32_0 = arith.constant 0 : i32
    %c0_i32_1 = arith.constant 0 : i32
    return %arg0, %c0_i32, %c0_i32_0 : i32, i32, i32
  }
  func.func @transform_1(%arg0: i32, %arg1: i32) -> (i32, i32, i32) {
    %c0_i32 = arith.constant 0 : i32
    %c0_i32_0 = arith.constant 0 : i32
    return %arg0, %c0_i32, %arg1 : i32, i32, i32
  }
  func.func @transform_2(%arg0: i32, %arg1: i32) -> (i32, i32, i32) {
    %c0_i32 = arith.constant 0 : i32
    %c0_i32_0 = arith.constant 0 : i32
    %c0_i32_1 = arith.constant 0 : i32
    return %arg0, %c0_i32, %c0_i32_0 : i32, i32, i32
  }
  func.func @transform_3(%arg0: i32, %arg1: i32) -> (i32, i32, i32) {
    %c0_i32 = arith.constant 0 : i32
    %c0_i32_0 = arith.constant 0 : i32
    return %arg0, %c0_i32, %arg1 : i32, i32, i32
  }
}

</mosaic_0001>

<bundles_post_ra>
// kernel: squeeze.4
= control target key start
LH: loop header
LB: loop body
LE: loop exit
PB: predicated region body
PF: predicated region fallthrough
CT: control target
= control target key end

     0   :  { %vm1444_vm0 = vcmask 1047556   ;;  %s5673_s0 = inlined_call_operand.vmem [shape: f32[1,81,1024], index: 0, kind: input, shape index: {}]   ;;  %s5674_s1 = inlined_call_operand.vmem [shape: f32[1,27,3,2,512], index: 1, kind: output, shape index: {}]  }
   0x1   :  { %v2_v0 = vld [vmem:[%s5673_s0] sm:$0xff]   ;;  %v4040_v1 = vld [vmem:[%s5673_s0 + $0x8] sm:$0xff]   ;;  %v4041_v2 = vld [vmem:[%s5673_s0 + $0x10] sm:$0xff]  }
   0x2   :  { %3 = vst [vmem:[#allocation0] sm:$0x1] %v2_v0   ;;  %5 = vst [vmem:[#allocation0 + $0x1f] sm:$0x2] %v2_v0   ;;  %v4042_v3 = vld [vmem:[%s5673_s0 + $0x18] sm:$0xff]   ;;  %v4043_v4 = vld [vmem:[%s5673_s0 + $0x20] sm:$0xff]  }
   0x3   :  { %7 = vst [vmem:[#allocation0 + $0x3e] sm:$0x4] %v2_v0   ;;  %9 = vst [vmem:[#allocation0 + $0x5d] sm:$0x8] %v2_v0   ;;  %v4044_v5 = vld [vmem:[%s5673_s0 + $0x28] sm:$0xff]   ;;  %v4045_v6 = vld [vmem:[%s5673_s0 + $0x30] sm:$0xff]  }
   0x4   :  { %11 = vst [vmem:[#allocation0 + $0x7c] sm:$0x10] %v2_v0   ;;  %13 = vst [vmem:[#allocation0 + $0x9b] sm:$0x20] %v2_v0   ;;  %v4046_v7 = vld [vmem:[%s5673_s0 + $0x38] sm:$0xff]   ;;  %v4047_v8 = vld [vmem:[%s5673_s0 + $0x40] sm:$0xff]  }
   0x5   :  { %15 = vst [vmem:[#allocation0 + $0xba] sm:$0x40] %v2_v0   ;;  %17 = vst [vmem:[#allocation0 + $0xd9] sm:$0x80] %v2_v0   ;;  %v4048_v9 = vld [vmem:[%s5673_s0 + $0x48] sm:$0xff]   ;;  %v4049_v10 = vld [vmem:[%s5673_s0 + $0x50] sm:$0xff]  }
   0x6   :  { %21 = vst [vmem:[#allocation0 + $0x8] sm:$0x1] %v4040_v1   ;;  %23 = vst [vmem:[#allocation0 + $0x27] sm:$0x2] %v4040_v1   ;;  %v4050_v11 = vld [vmem:[%s5673_s0 + $0x58] sm:$0xff]   ;;  %v4051_v12 = vld [vmem:[%s5673_s0 + $0x60] sm:$0xff]  }
   0x7   :  { %25 = vst [vmem:[#allocation0 + $0x46] sm:$0x4] %v4040_v1   ;;  %27 = vst [vmem:[#allocation0 + $0x65] sm:$0x8] %v4040_v1   ;;  %v4052_v13 = vld [vmem:[%s5673_s0 + $0x68] sm:$0xff]   ;;  %v4053_v14 = vld [vmem:[%s5673_s0 + $0x70] sm:$0xff]  }
   0x8   :  { %29 = vst [vmem:[#allocation0 + $0x84] sm:$0x10] %v4040_v1   ;;  %31 = vst [vmem:[#allocation0 + $0xa3] sm:$0x20] %v4040_v1   ;;  %v4054_v15 = vld [vmem:[%s5673_s0 + $0x78] sm:$0xff]   ;;  %v4055_v16 = vld [vmem:[%s5673_s0 + $0x80] sm:$0xff]  }
   0x9   :  { %33 = vst [vmem:[#allocation0 + $0xc2] sm:$0x40] %v4040_v1   ;;  %35 = vst [vmem:[#allocation0 + $0xe1] sm:$0x80] %v4040_v1   ;;  %v4056_v17 = vld [vmem:[%s5673_s0 + $0x88] sm:$0xff]   ;;  %v4057_v18 = vld [vmem:[%s5673_s0 + $0x90] sm:$0xff]  }
   0xa   :  { %39 = vst [vmem:[#allocation0 + $0x10] sm:$0x1] %v4041_v2   ;;  %41 = vst [vmem:[#allocation0 + $0x2f] sm:$0x2] %v4041_v2   ;;  %v4058_v19 = vld [vmem:[%s5673_s0 + $0x98] sm:$0xff]   ;;  %v4059_v20 = vld [vmem:[%s5673_s0 + $0xa0] sm:$0xff]  }
   0xb   :  { %43 = vst [vmem:[#allocation0 + $0x4e] sm:$0x4] %v4041_v2   ;;  %45 = vst [vmem:[#allocation0 + $0x6d] sm:$0x8] %v4041_v2   ;;  %v4060_v21 = vld [vmem:[%s5673_s0 + $0xa8] sm:$0xff]   ;;  %v4061_v22 = vld [vmem:[%s5673_s0 + $0xb0] sm:$0xff]  }
   0xc   :  { %47 = vst [vmem:[#allocation0 + $0x8c] sm:$0x10] %v4041_v2   ;;  %49 = vst [vmem:[#allocation0 + $0xab] sm:$0x20] %v4041_v2   ;;  %v4062_v23 = vld [vmem:[%s5673_s0 + $0xb8] sm:$0xff]   ;;  %v4063_v24 = vld [vmem:[%s5673_s0 + $0xc0] sm:$0xff]  }
   0xd   :  { %51 = vst [vmem:[#allocation0 + $0xca] sm:$0x40] %v4041_v2   ;;  %53 = vst [vmem:[#allocation0 + $0xe9] sm:$0x80] %v4041_v2   ;;  %v4064_v25 = vld [vmem:[%s5673_s0 + $0xc8] sm:$0xff]   ;;  %v4065_v26 = vld [vmem:[%s5673_s0 + $0xd0] sm:$0xff]  }
   0xe   :  { %57 = vst [vmem:[#allocation0 + $0x18] sm:$0x1] %v4042_v3   ;;  %59 = vst [vmem:[#allocation0 + $0x37] sm:$0x2] %v4042_v3   ;;  %v4066_v27 = vld [vmem:[%s5673_s0 + $0xd8] sm:$0xff]   ;;  %v4067_v28 = vld [vmem:[%s5673_s0 + $0xe0] sm:$0xff]  }
   0xf   :  { %61 = vst [vmem:[#allocation0 + $0x56] sm:$0x4] %v4042_v3   ;;  %63 = vst [vmem:[#allocation0 + $0x75] sm:$0x8] %v4042_v3   ;;  %v4068_v29 = vld [vmem:[%s5673_s0 + $0xe8] sm:$0xff]   ;;  %v4069_v30 = vld [vmem:[%s5673_s0 + $0xf0] sm:$0xff]  }
  0x10   :  { %65 = vst [vmem:[#allocation0 + $0x94] sm:$0x10] %v4042_v3   ;;  %67 = vst [vmem:[#allocation0 + $0xb3] sm:$0x20] %v4042_v3   ;;  %v4070_v31 = vld [vmem:[%s5673_s0 + $0xf8] sm:$0xff]   ;;  %v4071_v32 = vld [vmem:[%s5673_s0 + $0x100] sm:$0xff]  }
  0x11   :  { %69 = vst [vmem:[#allocation0 + $0xd2] sm:$0x40] %v4042_v3   ;;  %71 = vst [vmem:[#allocation0 + $0xf1] sm:$0x80] %v4042_v3   ;;  %v4072_v33 = vld [vmem:[%s5673_s0 + $0x108] sm:$0xff]   ;;  %v4073_v34 = vld [vmem:[%s5673_s0 + $0x110] sm:$0xff]  }
  0x12   :  { %75 = vst [vmem:[#allocation0 + $0x1] sm:$0x1] %v4043_v4   ;;  %77 = vst [vmem:[#allocation0 + $0x20] sm:$0x2] %v4043_v4   ;;  %v4074_v35 = vld [vmem:[%s5673_s0 + $0x118] sm:$0xff]   ;;  %v4075_v36 = vld [vmem:[%s5673_s0 + $0x120] sm:$0xff]  }
  0x13   :  { %79 = vst [vmem:[#allocation0 + $0x3f] sm:$0x4] %v4043_v4   ;;  %81 = vst [vmem:[#allocation0 + $0x5e] sm:$0x8] %v4043_v4   ;;  %v4076_v37 = vld [vmem:[%s5673_s0 + $0x128] sm:$0xff]   ;;  %v4077_v38 = vld [vmem:[%s5673_s0 + $0x130] sm:$0xff]  }
  0x14   :  { %83 = vst [vmem:[#allocation0 + $0x7d] sm:$0x10] %v4043_v4   ;;  %85 = vst [vmem:[#allocation0 + $0x9c] sm:$0x20] %v4043_v4   ;;  %v4078_v39 = vld [vmem:[%s5673_s0 + $0x138] sm:$0xff]   ;;  %v4079_v40 = vld [vmem:[%s5673_s0 + $0x140] sm:$0xff]  }
  0x15   :  { %87 = vst [vmem:[#allocation0 + $0xbb] sm:$0x40] %v4043_v4   ;;  %89 = vst [vmem:[#allocation0 + $0xda] sm:$0x80] %v4043_v4   ;;  %v4080_v41 = vld [vmem:[%s5673_s0 + $0x148] sm:$0xff]   ;;  %v4081_v42 = vld [vmem:[%s5673_s0 + $0x150] sm:$0xff]  }
  0x16   :  { %93 = vst [vmem:[#allocation0 + $0x9] sm:$0x1] %v4044_v5   ;;  %95 = vst [vmem:[#allocation0 + $0x28] sm:$0x2] %v4044_v5   ;;  %v4082_v43 = vld [vmem:[%s5673_s0 + $0x158] sm:$0xff]   ;;  %v4083_v44 = vld [vmem:[%s5673_s0 + $0x160] sm:$0xff]  }
  0x17   :  { %97 = vst [vmem:[#allocation0 + $0x47] sm:$0x4] %v4044_v5   ;;  %99 = vst [vmem:[#allocation0 + $0x66] sm:$0x8] %v4044_v5   ;;  %v4084_v45 = vld [vmem:[%s5673_s0 + $0x168] sm:$0xff]   ;;  %v4085_v46 = vld [vmem:[%s5673_s0 + $0x170] sm:$0xff]  }
  0x18   :  { %101 = vst [vmem:[#allocation0 + $0x85] sm:$0x10] %v4044_v5   ;;  %103 = vst [vmem:[#allocation0 + $0xa4] sm:$0x20] %v4044_v5   ;;  %v4086_v47 = vld [vmem:[%s5673_s0 + $0x178] sm:$0xff]   ;;  %v4087_v48 = vld [vmem:[%s5673_s0 + $0x180] sm:$0xff]  }
  0x19   :  { %105 = vst [vmem:[#allocation0 + $0xc3] sm:$0x40] %v4044_v5   ;;  %107 = vst [vmem:[#allocation0 + $0xe2] sm:$0x80] %v4044_v5   ;;  %v4088_v49 = vld [vmem:[%s5673_s0 + $0x188] sm:$0xff]   ;;  %v4089_v50 = vld [vmem:[%s5673_s0 + $0x190] sm:$0xff]  }
  0x1a   :  { %111 = vst [vmem:[#allocation0 + $0x11] sm:$0x1] %v4045_v6   ;;  %113 = vst [vmem:[#allocation0 + $0x30] sm:$0x2] %v4045_v6   ;;  %v4090_v51 = vld [vmem:[%s5673_s0 + $0x198] sm:$0xff]   ;;  %v4091_v52 = vld [vmem:[%s5673_s0 + $0x1a0] sm:$0xff]  }
  0x1b   :  { %115 = vst [vmem:[#allocation0 + $0x4f] sm:$0x4] %v4045_v6   ;;  %117 = vst [vmem:[#allocation0 + $0x6e] sm:$0x8] %v4045_v6   ;;  %v4092_v53 = vld [vmem:[%s5673_s0 + $0x1a8] sm:$0xff]   ;;  %v4093_v54 = vld [vmem:[%s5673_s0 + $0x1b0] sm:$0xff]  }
  0x1c   :  { %119 = vst [vmem:[#allocation0 + $0x8d] sm:$0x10] %v4045_v6   ;;  %121 = vst [vmem:[#allocation0 + $0xac] sm:$0x20] %v4045_v6   ;;  %v4094_v55 = vld [vmem:[%s5673_s0 + $0x1b8] sm:$0xff]   ;;  %v4095_v56 = vld [vmem:[%s5673_s0 + $0x1c0] sm:$0xff]  }
  0x1d   :  { %123 = vst [vmem:[#allocation0 + $0xcb] sm:$0x40] %v4045_v6   ;;  %125 = vst [vmem:[#allocation0 + $0xea] sm:$0x80] %v4045_v6   ;;  %v4096_v57 = vld [vmem:[%s5673_s0 + $0x1c8] sm:$0xff]   ;;  %v4097_v58 = vld [vmem:[%s5673_s0 + $0x1d0] sm:$0xff]  }
  0x1e   :  { %129 = vst [vmem:[#allocation0 + $0x19] sm:$0x1] %v4046_v7   ;;  %131 = vst [vmem:[#allocation0 + $0x38] sm:$0x2] %v4046_v7   ;;  %v4098_v59 = vld [vmem:[%s5673_s0 + $0x1d8] sm:$0xff]   ;;  %v4099_v60 = vld [vmem:[%s5673_s0 + $0x1e0] sm:$0xff]  }
  0x1f   :  { %133 = vst [vmem:[#allocation0 + $0x57] sm:$0x4] %v4046_v7   ;;  %135 = vst [vmem:[#allocation0 + $0x76] sm:$0x8] %v4046_v7   ;;  %v4100_v61 = vld [vmem:[%s5673_s0 + $0x1e8] sm:$0xff]   ;;  %v4101_v62 = vld [vmem:[%s5673_s0 + $0x1f0] sm:$0xff]  }
  0x20   :  { %137 = vst [vmem:[#allocation0 + $0x95] sm:$0x10] %v4046_v7   ;;  %139 = vst [vmem:[#allocation0 + $0xb4] sm:$0x20] %v4046_v7   ;;  %v4102_v63 = vld [vmem:[%s5673_s0 + $0x1f8] sm:$0xff]   ;;  %v4103_v0 = vld [vmem:[%s5673_s0 + $0x200] sm:$0xff]  }
  0x21   :  { %141 = vst [vmem:[#allocation0 + $0xd3] sm:$0x40] %v4046_v7   ;;  %143 = vst [vmem:[#allocation0 + $0xf2] sm:$0x80] %v4046_v7   ;;  %v4104_v1 = vld [vmem:[%s5673_s0 + $0x208] sm:$0xff]   ;;  %v4105_v2 = vld [vmem:[%s5673_s0 + $0x210] sm:$0xff]  }
  0x22   :  { %147 = vst [vmem:[#allocation0 + $0x100] sm:$0x1] %v4047_v8   ;;  %149 = vst [vmem:[#allocation0 + $0x11f] sm:$0x2] %v4047_v8   ;;  %v4106_v3 = vld [vmem:[%s5673_s0 + $0x218] sm:$0xff]   ;;  %v4107_v4 = vld [vmem:[%s5673_s0 + $0x220] sm:$0xff]  }
  0x23   :  { %151 = vst [vmem:[#allocation0 + $0x13e] sm:$0x4] %v4047_v8   ;;  %153 = vst [vmem:[#allocation0 + $0x15d] sm:$0x8] %v4047_v8   ;;  %v4108_v5 = vld [vmem:[%s5673_s0 + $0x228] sm:$0xff]   ;;  %v4109_v6 = vld [vmem:[%s5673_s0 + $0x230] sm:$0xff]  }
  0x24   :  { %155 = vst [vmem:[#allocation0 + $0x17c] sm:$0x10] %v4047_v8   ;;  %157 = vst [vmem:[#allocation0 + $0x19b] sm:$0x20] %v4047_v8   ;;  %v4110_v7 = vld [vmem:[%s5673_s0 + $0x238] sm:$0xff]  }
  0x25   :  { %159 = vst [vmem:[#allocation0 + $0x1ba] sm:$0x40] %v4047_v8   ;;  %161 = vst [vmem:[#allocation0 + $0x1d9] sm:$0x80] %v4047_v8   ;;  %v4111_v8 = vld [vmem:[%s5673_s0 + $0x240] sm:$0xff]  }
  0x26   :  { %165 = vst [vmem:[#allocation0 + $0x108] sm:$0x1] %v4048_v9   ;;  %167 = vst [vmem:[#allocation0 + $0x127] sm:$0x2] %v4048_v9  }
  0x27   :  { %169 = vst [vmem:[#allocation0 + $0x146] sm:$0x4] %v4048_v9   ;;  %171 = vst [vmem:[#allocation0 + $0x165] sm:$0x8] %v4048_v9  }
  0x28   :  { %173 = vst [vmem:[#allocation0 + $0x184] sm:$0x10] %v4048_v9   ;;  %175 = vst [vmem:[#allocation0 + $0x1a3] sm:$0x20] %v4048_v9  }
  0x29   :  { %177 = vst [vmem:[#allocation0 + $0x1c2] sm:$0x40] %v4048_v9   ;;  %179 = vst [vmem:[#allocation0 + $0x1e1] sm:$0x80] %v4048_v9   ;;  %v4112_v9 = vld [vmem:[%s5673_s0 + $0x248] sm:$0xff]  }
  0x2a   :  { %183 = vst [vmem:[#allocation0 + $0x110] sm:$0x1] %v4049_v10   ;;  %185 = vst [vmem:[#allocation0 + $0x12f] sm:$0x2] %v4049_v10  }
  0x2b   :  { %187 = vst [vmem:[#allocation0 + $0x14e] sm:$0x4] %v4049_v10   ;;  %189 = vst [vmem:[#allocation0 + $0x16d] sm:$0x8] %v4049_v10  }
  0x2c   :  { %191 = vst [vmem:[#allocation0 + $0x18c] sm:$0x10] %v4049_v10   ;;  %193 = vst [vmem:[#allocation0 + $0x1ab] sm:$0x20] %v4049_v10  }
  0x2d   :  { %195 = vst [vmem:[#allocation0 + $0x1ca] sm:$0x40] %v4049_v10   ;;  %197 = vst [vmem:[#allocation0 + $0x1e9] sm:$0x80] %v4049_v10   ;;  %v4113_v10 = vld [vmem:[%s5673_s0 + $0x250] sm:$0xff]  }
  0x2e   :  { %201 = vst [vmem:[#allocation0 + $0x118] sm:$0x1] %v4050_v11   ;;  %203 = vst [vmem:[#allocation0 + $0x137] sm:$0x2] %v4050_v11  }
  0x2f   :  { %205 = vst [vmem:[#allocation0 + $0x156] sm:$0x4] %v4050_v11   ;;  %207 = vst [vmem:[#allocation0 + $0x175] sm:$0x8] %v4050_v11  }
  0x30   :  { %209 = vst [vmem:[#allocation0 + $0x194] sm:$0x10] %v4050_v11   ;;  %211 = vst [vmem:[#allocation0 + $0x1b3] sm:$0x20] %v4050_v11  }
  0x31   :  { %213 = vst [vmem:[#allocation0 + $0x1d2] sm:$0x40] %v4050_v11   ;;  %215 = vst [vmem:[#allocation0 + $0x1f1] sm:$0x80] %v4050_v11   ;;  %v4114_v11 = vld [vmem:[%s5673_s0 + $0x258] sm:$0xff]  }
  0x32   :  { %219 = vst [vmem:[#allocation0 + $0x101] sm:$0x1] %v4051_v12   ;;  %221 = vst [vmem:[#allocation0 + $0x120] sm:$0x2] %v4051_v12  }
  0x33   :  { %223 = vst [vmem:[#allocation0 + $0x13f] sm:$0x4] %v4051_v12   ;;  %225 = vst [vmem:[#allocation0 + $0x15e] sm:$0x8] %v4051_v12  }
  0x34   :  { %227 = vst [vmem:[#allocation0 + $0x17d] sm:$0x10] %v4051_v12   ;;  %229 = vst [vmem:[#allocation0 + $0x19c] sm:$0x20] %v4051_v12  }
  0x35   :  { %231 = vst [vmem:[#allocation0 + $0x1bb] sm:$0x40] %v4051_v12   ;;  %233 = vst [vmem:[#allocation0 + $0x1da] sm:$0x80] %v4051_v12   ;;  %v4115_v12 = vld [vmem:[%s5673_s0 + $0x260] sm:$0xff]  }
  0x36   :  { %237 = vst [vmem:[#allocation0 + $0x109] sm:$0x1] %v4052_v13   ;;  %239 = vst [vmem:[#allocation0 + $0x128] sm:$0x2] %v4052_v13  }
  0x37   :  { %241 = vst [vmem:[#allocation0 + $0x147] sm:$0x4] %v4052_v13   ;;  %243 = vst [vmem:[#allocation0 + $0x166] sm:$0x8] %v4052_v13  }
  0x38   :  { %245 = vst [vmem:[#allocation0 + $0x185] sm:$0x10] %v4052_v13   ;;  %247 = vst [vmem:[#allocation0 + $0x1a4] sm:$0x20] %v4052_v13  }
  0x39   :  { %249 = vst [vmem:[#allocation0 + $0x1c3] sm:$0x40] %v4052_v13   ;;  %251 = vst [vmem:[#allocation0 + $0x1e2] sm:$0x80] %v4052_v13   ;;  %v4116_v13 = vld [vmem:[%s5673_s0 + $0x268] sm:$0xff]  }
  0x3a   :  { %255 = vst [vmem:[#allocation0 + $0x111] sm:$0x1] %v4053_v14   ;;  %257 = vst [vmem:[#allocation0 + $0x130] sm:$0x2] %v4053_v14  }
  0x3b   :  { %259 = vst [vmem:[#allocation0 + $0x14f] sm:$0x4] %v4053_v14   ;;  %261 = vst [vmem:[#allocation0 + $0x16e] sm:$0x8] %v4053_v14  }
  0x3c   :  { %263 = vst [vmem:[#allocation0 + $0x18d] sm:$0x10] %v4053_v14   ;;  %265 = vst [vmem:[#allocation0 + $0x1ac] sm:$0x20] %v4053_v14  }
  0x3d   :  { %267 = vst [vmem:[#allocation0 + $0x1cb] sm:$0x40] %v4053_v14   ;;  %269 = vst [vmem:[#allocation0 + $0x1ea] sm:$0x80] %v4053_v14   ;;  %v4117_v14 = vld [vmem:[%s5673_s0 + $0x270] sm:$0xff]  }
  0x3e   :  { %273 = vst [vmem:[#allocation0 + $0x119] sm:$0x1] %v4054_v15   ;;  %275 = vst [vmem:[#allocation0 + $0x138] sm:$0x2] %v4054_v15  }
  0x3f   :  { %277 = vst [vmem:[#allocation0 + $0x157] sm:$0x4] %v4054_v15   ;;  %279 = vst [vmem:[#allocation0 + $0x176] sm:$0x8] %v4054_v15  }
  0x40   :  { %281 = vst [vmem:[#allocation0 + $0x195] sm:$0x10] %v4054_v15   ;;  %283 = vst [vmem:[#allocation0 + $0x1b4] sm:$0x20] %v4054_v15  }
  0x41   :  { %285 = vst [vmem:[#allocation0 + $0x1d3] sm:$0x40] %v4054_v15   ;;  %287 = vst [vmem:[#allocation0 + $0x1f2] sm:$0x80] %v4054_v15   ;;  %v4118_v15 = vld [vmem:[%s5673_s0 + $0x278] sm:$0xff]  }
  0x42   :  { %291 = vst [vmem:[#allocation0 + $0x200] sm:$0x1] %v4055_v16   ;;  %293 = vst [vmem:[#allocation0 + $0x21f] sm:$0x2] %v4055_v16  }
  0x43   :  { %295 = vst [vmem:[#allocation0 + $0x23e] sm:$0x4] %v4055_v16   ;;  %297 = vst [vmem:[#allocation0 + $0x25d] sm:$0x8] %v4055_v16  }
  0x44   :  { %299 = vst [vmem:[#allocation0 + $0x27c] sm:$0x10] %v4055_v16   ;;  %301 = vst [vmem:[#allocation0 + $0x29b] sm:$0x20] %v4055_v16  }
  0x45   :  { %303 = vst [vmem:[#allocation0 + $0x2ba] sm:$0x40] %v4055_v16   ;;  %305 = vst [vmem:[#allocation0 + $0x2d9] sm:$0x80] %v4055_v16  }
  0x46   :  { %309 = vst [vmem:[#allocation0 + $0x208] sm:$0x1] %v4056_v17   ;;  %311 = vst [vmem:[#allocation0 + $0x227] sm:$0x2] %v4056_v17  }
  0x47   :  { %313 = vst [vmem:[#allocation0 + $0x246] sm:$0x4] %v4056_v17   ;;  %315 = vst [vmem:[#allocation0 + $0x265] sm:$0x8] %v4056_v17  }
  0x48   :  { %317 = vst [vmem:[#allocation0 + $0x284] sm:$0x10] %v4056_v17   ;;  %319 = vst [vmem:[#allocation0 + $0x2a3] sm:$0x20] %v4056_v17  }
  0x49   :  { %321 = vst [vmem:[#allocation0 + $0x2c2] sm:$0x40] %v4056_v17   ;;  %323 = vst [vmem:[#allocation0 + $0x2e1] sm:$0x80] %v4056_v17  }
  0x4a   :  { %327 = vst [vmem:[#allocation0 + $0x210] sm:$0x1] %v4057_v18   ;;  %329 = vst [vmem:[#allocation0 + $0x22f] sm:$0x2] %v4057_v18  }
  0x4b   :  { %331 = vst [vmem:[#allocation0 + $0x24e] sm:$0x4] %v4057_v18   ;;  %333 = vst [vmem:[#allocation0 + $0x26d] sm:$0x8] %v4057_v18  }
  0x4c   :  { %335 = vst [vmem:[#allocation0 + $0x28c] sm:$0x10] %v4057_v18   ;;  %337 = vst [vmem:[#allocation0 + $0x2ab] sm:$0x20] %v4057_v18  }
  0x4d   :  { %339 = vst [vmem:[#allocation0 + $0x2ca] sm:$0x40] %v4057_v18   ;;  %341 = vst [vmem:[#allocation0 + $0x2e9] sm:$0x80] %v4057_v18   ;;  %v1454_v18 = vld [vmem:[#allocation0] sm:$0x3] }
  0x4e   :  { %345 = vst [vmem:[#allocation0 + $0x218] sm:$0x1] %v4058_v19   ;;  %347 = vst [vmem:[#allocation0 + $0x237] sm:$0x2] %v4058_v19  }
  0x4f   :  { %349 = vst [vmem:[#allocation0 + $0x256] sm:$0x4] %v4058_v19   ;;  %351 = vst [vmem:[#allocation0 + $0x275] sm:$0x8] %v4058_v19  }
  0x50   :  { %353 = vst [vmem:[#allocation0 + $0x294] sm:$0x10] %v4058_v19   ;;  %355 = vst [vmem:[#allocation0 + $0x2b3] sm:$0x20] %v4058_v19  }
  0x51   :  { %357 = vst [vmem:[#allocation0 + $0x2d2] sm:$0x40] %v4058_v19   ;;  %359 = vst [vmem:[#allocation0 + $0x2f1] sm:$0x80] %v4058_v19  }
  0x52   :  { %363 = vst [vmem:[#allocation0 + $0x201] sm:$0x1] %v4059_v20   ;;  %365 = vst [vmem:[#allocation0 + $0x220] sm:$0x2] %v4059_v20  }
  0x53   :  { %367 = vst [vmem:[#allocation0 + $0x23f] sm:$0x4] %v4059_v20   ;;  %369 = vst [vmem:[#allocation0 + $0x25e] sm:$0x8] %v4059_v20  }
  0x54   :  { %371 = vst [vmem:[#allocation0 + $0x27d] sm:$0x10] %v4059_v20   ;;  %373 = vst [vmem:[#allocation0 + $0x29c] sm:$0x20] %v4059_v20  }
  0x55   :  { %375 = vst [vmem:[#allocation0 + $0x2bb] sm:$0x40] %v4059_v20   ;;  %377 = vst [vmem:[#allocation0 + $0x2da] sm:$0x80] %v4059_v20   ;;  %v1459_v20 = vld [vmem:[#allocation0 + $0x8] sm:$0x3] }
  0x56   :  { %381 = vst [vmem:[#allocation0 + $0x209] sm:$0x1] %v4060_v21   ;;  %383 = vst [vmem:[#allocation0 + $0x228] sm:$0x2] %v4060_v21  }
  0x57   :  { %385 = vst [vmem:[#allocation0 + $0x247] sm:$0x4] %v4060_v21   ;;  %387 = vst [vmem:[#allocation0 + $0x266] sm:$0x8] %v4060_v21  }
  0x58   :  { %389 = vst [vmem:[#allocation0 + $0x285] sm:$0x10] %v4060_v21   ;;  %391 = vst [vmem:[#allocation0 + $0x2a4] sm:$0x20] %v4060_v21  }
  0x59   :  { %393 = vst [vmem:[#allocation0 + $0x2c3] sm:$0x40] %v4060_v21   ;;  %395 = vst [vmem:[#allocation0 + $0x2e2] sm:$0x80] %v4060_v21   ;;  %v1465_v21 = vld [vmem:[#allocation0 + $0x10] sm:$0x3] }
  0x5a   :  { %399 = vst [vmem:[#allocation0 + $0x211] sm:$0x1] %v4061_v22   ;;  %401 = vst [vmem:[#allocation0 + $0x230] sm:$0x2] %v4061_v22  }
  0x5b   :  { %403 = vst [vmem:[#allocation0 + $0x24f] sm:$0x4] %v4061_v22   ;;  %405 = vst [vmem:[#allocation0 + $0x26e] sm:$0x8] %v4061_v22  }
  0x5c   :  { %407 = vst [vmem:[#allocation0 + $0x28d] sm:$0x10] %v4061_v22   ;;  %409 = vst [vmem:[#allocation0 + $0x2ac] sm:$0x20] %v4061_v22  }
  0x5d   :  { %411 = vst [vmem:[#allocation0 + $0x2cb] sm:$0x40] %v4061_v22   ;;  %413 = vst [vmem:[#allocation0 + $0x2ea] sm:$0x80] %v4061_v22   ;;  %v1472_v22 = vld [vmem:[#allocation0 + $0x18] sm:$0x3] }
  0x5e   :  { %417 = vst [vmem:[#allocation0 + $0x219] sm:$0x1] %v4062_v23   ;;  %419 = vst [vmem:[#allocation0 + $0x238] sm:$0x2] %v4062_v23  }
  0x5f   :  { %421 = vst [vmem:[#allocation0 + $0x257] sm:$0x4] %v4062_v23   ;;  %423 = vst [vmem:[#allocation0 + $0x276] sm:$0x8] %v4062_v23  }
  0x60   :  { %425 = vst [vmem:[#allocation0 + $0x295] sm:$0x10] %v4062_v23   ;;  %427 = vst [vmem:[#allocation0 + $0x2b4] sm:$0x20] %v4062_v23  }
  0x61   :  { %429 = vst [vmem:[#allocation0 + $0x2d3] sm:$0x40] %v4062_v23   ;;  %431 = vst [vmem:[#allocation0 + $0x2f2] sm:$0x80] %v4062_v23   ;;  %v1479_v23 = vld [vmem:[#allocation0 + $0x20] sm:$0x3] }
  0x62   :  { %435 = vst [vmem:[#allocation0 + $0x300] sm:$0x1] %v4063_v24   ;;  %437 = vst [vmem:[#allocation0 + $0x31f] sm:$0x2] %v4063_v24  }
  0x63   :  { %439 = vst [vmem:[#allocation0 + $0x33e] sm:$0x4] %v4063_v24   ;;  %441 = vst [vmem:[#allocation0 + $0x35d] sm:$0x8] %v4063_v24  }
  0x64   :  { %443 = vst [vmem:[#allocation0 + $0x37c] sm:$0x10] %v4063_v24   ;;  %445 = vst [vmem:[#allocation0 + $0x39b] sm:$0x20] %v4063_v24  }
  0x65   :  { %447 = vst [vmem:[#allocation0 + $0x3ba] sm:$0x40] %v4063_v24   ;;  %449 = vst [vmem:[#allocation0 + $0x3d9] sm:$0x80] %v4063_v24   ;;  %v1486_v24 = vld [vmem:[#allocation0 + $0x28] sm:$0x3] }
  0x66   :  { %453 = vst [vmem:[#allocation0 + $0x308] sm:$0x1] %v4064_v25   ;;  %455 = vst [vmem:[#allocation0 + $0x327] sm:$0x2] %v4064_v25  }
  0x67   :  { %457 = vst [vmem:[#allocation0 + $0x346] sm:$0x4] %v4064_v25   ;;  %459 = vst [vmem:[#allocation0 + $0x365] sm:$0x8] %v4064_v25  }
  0x68   :  { %461 = vst [vmem:[#allocation0 + $0x384] sm:$0x10] %v4064_v25   ;;  %463 = vst [vmem:[#allocation0 + $0x3a3] sm:$0x20] %v4064_v25  }
  0x69   :  { %465 = vst [vmem:[#allocation0 + $0x3c2] sm:$0x40] %v4064_v25   ;;  %467 = vst [vmem:[#allocation0 + $0x3e1] sm:$0x80] %v4064_v25   ;;  %v1493_v25 = vld [vmem:[#allocation0 + $0x30] sm:$0x3] }
  0x6a   :  { %471 = vst [vmem:[#allocation0 + $0x310] sm:$0x1] %v4065_v26   ;;  %473 = vst [vmem:[#allocation0 + $0x32f] sm:$0x2] %v4065_v26  }
  0x6b   :  { %475 = vst [vmem:[#allocation0 + $0x34e] sm:$0x4] %v4065_v26   ;;  %477 = vst [vmem:[#allocation0 + $0x36d] sm:$0x8] %v4065_v26  }
  0x6c   :  { %479 = vst [vmem:[#allocation0 + $0x38c] sm:$0x10] %v4065_v26   ;;  %481 = vst [vmem:[#allocation0 + $0x3ab] sm:$0x20] %v4065_v26  }
  0x6d   :  { %483 = vst [vmem:[#allocation0 + $0x3ca] sm:$0x40] %v4065_v26   ;;  %485 = vst [vmem:[#allocation0 + $0x3e9] sm:$0x80] %v4065_v26   ;;  %v1500_v26 = vld [vmem:[#allocation0 + $0x38] sm:$0x3] }
  0x6e   :  { %489 = vst [vmem:[#allocation0 + $0x318] sm:$0x1] %v4066_v27   ;;  %491 = vst [vmem:[#allocation0 + $0x337] sm:$0x2] %v4066_v27  }
  0x6f   :  { %493 = vst [vmem:[#allocation0 + $0x356] sm:$0x4] %v4066_v27   ;;  %495 = vst [vmem:[#allocation0 + $0x375] sm:$0x8] %v4066_v27  }
  0x70   :  { %497 = vst [vmem:[#allocation0 + $0x394] sm:$0x10] %v4066_v27   ;;  %499 = vst [vmem:[#allocation0 + $0x3b3] sm:$0x20] %v4066_v27  }
  0x71   :  { %501 = vst [vmem:[#allocation0 + $0x3d2] sm:$0x40] %v4066_v27   ;;  %503 = vst [vmem:[#allocation0 + $0x3f1] sm:$0x80] %v4066_v27   ;;  %v1507_v27 = vld [vmem:[#allocation0 + $0x40] sm:$0x3] }
  0x72   :  { %507 = vst [vmem:[#allocation0 + $0x301] sm:$0x1] %v4067_v28   ;;  %509 = vst [vmem:[#allocation0 + $0x320] sm:$0x2] %v4067_v28  }
  0x73   :  { %511 = vst [vmem:[#allocation0 + $0x33f] sm:$0x4] %v4067_v28   ;;  %513 = vst [vmem:[#allocation0 + $0x35e] sm:$0x8] %v4067_v28  }
  0x74   :  { %515 = vst [vmem:[#allocation0 + $0x37d] sm:$0x10] %v4067_v28   ;;  %517 = vst [vmem:[#allocation0 + $0x39c] sm:$0x20] %v4067_v28  }
  0x75   :  { %519 = vst [vmem:[#allocation0 + $0x3bb] sm:$0x40] %v4067_v28   ;;  %521 = vst [vmem:[#allocation0 + $0x3da] sm:$0x80] %v4067_v28   ;;  %v1514_v28 = vld [vmem:[#allocation0 + $0x48] sm:$0x3] }
  0x76   :  { %525 = vst [vmem:[#allocation0 + $0x309] sm:$0x1] %v4068_v29   ;;  %527 = vst [vmem:[#allocation0 + $0x328] sm:$0x2] %v4068_v29  }
  0x77   :  { %529 = vst [vmem:[#allocation0 + $0x347] sm:$0x4] %v4068_v29   ;;  %531 = vst [vmem:[#allocation0 + $0x366] sm:$0x8] %v4068_v29  }
  0x78   :  { %533 = vst [vmem:[#allocation0 + $0x385] sm:$0x10] %v4068_v29   ;;  %535 = vst [vmem:[#allocation0 + $0x3a4] sm:$0x20] %v4068_v29  }
  0x79   :  { %537 = vst [vmem:[#allocation0 + $0x3c3] sm:$0x40] %v4068_v29   ;;  %539 = vst [vmem:[#allocation0 + $0x3e2] sm:$0x80] %v4068_v29   ;;  %v1521_v29 = vld [vmem:[#allocation0 + $0x50] sm:$0x3] }
  0x7a   :  { %543 = vst [vmem:[#allocation0 + $0x311] sm:$0x1] %v4069_v30   ;;  %545 = vst [vmem:[#allocation0 + $0x330] sm:$0x2] %v4069_v30  }
  0x7b   :  { %547 = vst [vmem:[#allocation0 + $0x34f] sm:$0x4] %v4069_v30   ;;  %549 = vst [vmem:[#allocation0 + $0x36e] sm:$0x8] %v4069_v30  }
  0x7c   :  { %551 = vst [vmem:[#allocation0 + $0x38d] sm:$0x10] %v4069_v30   ;;  %553 = vst [vmem:[#allocation0 + $0x3ac] sm:$0x20] %v4069_v30  }
  0x7d   :  { %555 = vst [vmem:[#allocation0 + $0x3cb] sm:$0x40] %v4069_v30   ;;  %557 = vst [vmem:[#allocation0 + $0x3ea] sm:$0x80] %v4069_v30   ;;  %v1528_v30 = vld [vmem:[#allocation0 + $0x58] sm:$0x3] }
  0x7e   :  { %561 = vst [vmem:[#allocation0 + $0x319] sm:$0x1] %v4070_v31   ;;  %563 = vst [vmem:[#allocation0 + $0x338] sm:$0x2] %v4070_v31  }
  0x7f   :  { %565 = vst [vmem:[#allocation0 + $0x357] sm:$0x4] %v4070_v31   ;;  %567 = vst [vmem:[#allocation0 + $0x376] sm:$0x8] %v4070_v31  }
  0x80   :  { %569 = vst [vmem:[#allocation0 + $0x395] sm:$0x10] %v4070_v31   ;;  %571 = vst [vmem:[#allocation0 + $0x3b4] sm:$0x20] %v4070_v31  }
  0x81   :  { %573 = vst [vmem:[#allocation0 + $0x3d3] sm:$0x40] %v4070_v31   ;;  %575 = vst [vmem:[#allocation0 + $0x3f2] sm:$0x80] %v4070_v31   ;;  %v1535_v31 = vld [vmem:[#allocation0 + $0x60] sm:$0x3] }
  0x82   :  { %579 = vst [vmem:[#allocation0 + $0x400] sm:$0x1] %v4071_v32   ;;  %581 = vst [vmem:[#allocation0 + $0x41f] sm:$0x2] %v4071_v32  }
  0x83   :  { %583 = vst [vmem:[#allocation0 + $0x43e] sm:$0x4] %v4071_v32   ;;  %585 = vst [vmem:[#allocation0 + $0x45d] sm:$0x8] %v4071_v32  }
  0x84   :  { %587 = vst [vmem:[#allocation0 + $0x47c] sm:$0x10] %v4071_v32   ;;  %589 = vst [vmem:[#allocation0 + $0x49b] sm:$0x20] %v4071_v32  }
  0x85   :  { %591 = vst [vmem:[#allocation0 + $0x4ba] sm:$0x40] %v4071_v32   ;;  %593 = vst [vmem:[#allocation0 + $0x4d9] sm:$0x80] %v4071_v32   ;;  %v1542_v32 = vld [vmem:[#allocation0 + $0x68] sm:$0x3] }
  0x86   :  { %597 = vst [vmem:[#allocation0 + $0x408] sm:$0x1] %v4072_v33   ;;  %599 = vst [vmem:[#allocation0 + $0x427] sm:$0x2] %v4072_v33  }
  0x87   :  { %601 = vst [vmem:[#allocation0 + $0x446] sm:$0x4] %v4072_v33   ;;  %603 = vst [vmem:[#allocation0 + $0x465] sm:$0x8] %v4072_v33  }
  0x88   :  { %605 = vst [vmem:[#allocation0 + $0x484] sm:$0x10] %v4072_v33   ;;  %607 = vst [vmem:[#allocation0 + $0x4a3] sm:$0x20] %v4072_v33  }
  0x89   :  { %609 = vst [vmem:[#allocation0 + $0x4c2] sm:$0x40] %v4072_v33   ;;  %611 = vst [vmem:[#allocation0 + $0x4e1] sm:$0x80] %v4072_v33   ;;  %v1549_v33 = vld [vmem:[#allocation0 + $0x70] sm:$0x3] }
  0x8a   :  { %615 = vst [vmem:[#allocation0 + $0x410] sm:$0x1] %v4073_v34   ;;  %617 = vst [vmem:[#allocation0 + $0x42f] sm:$0x2] %v4073_v34  }
  0x8b   :  { %619 = vst [vmem:[#allocation0 + $0x44e] sm:$0x4] %v4073_v34   ;;  %621 = vst [vmem:[#allocation0 + $0x46d] sm:$0x8] %v4073_v34  }
  0x8c   :  { %623 = vst [vmem:[#allocation0 + $0x48c] sm:$0x10] %v4073_v34   ;;  %625 = vst [vmem:[#allocation0 + $0x4ab] sm:$0x20] %v4073_v34  }
  0x8d   :  { %627 = vst [vmem:[#allocation0 + $0x4ca] sm:$0x40] %v4073_v34   ;;  %629 = vst [vmem:[#allocation0 + $0x4e9] sm:$0x80] %v4073_v34   ;;  %v1556_v34 = vld [vmem:[#allocation0 + $0x78] sm:$0x3] }
  0x8e   :  { %633 = vst [vmem:[#allocation0 + $0x418] sm:$0x1] %v4074_v35   ;;  %635 = vst [vmem:[#allocation0 + $0x437] sm:$0x2] %v4074_v35  }
  0x8f   :  { %637 = vst [vmem:[#allocation0 + $0x456] sm:$0x4] %v4074_v35   ;;  %639 = vst [vmem:[#allocation0 + $0x475] sm:$0x8] %v4074_v35  }
  0x90   :  { %641 = vst [vmem:[#allocation0 + $0x494] sm:$0x10] %v4074_v35   ;;  %643 = vst [vmem:[#allocation0 + $0x4b3] sm:$0x20] %v4074_v35  }
  0x91   :  { %645 = vst [vmem:[#allocation0 + $0x4d2] sm:$0x40] %v4074_v35   ;;  %647 = vst [vmem:[#allocation0 + $0x4f1] sm:$0x80] %v4074_v35   ;;  %v1563_v35 = vld [vmem:[#allocation0 + $0x80] sm:$0x3] }
  0x92   :  { %651 = vst [vmem:[#allocation0 + $0x401] sm:$0x1] %v4075_v36   ;;  %653 = vst [vmem:[#allocation0 + $0x420] sm:$0x2] %v4075_v36  }
  0x93   :  { %655 = vst [vmem:[#allocation0 + $0x43f] sm:$0x4] %v4075_v36   ;;  %657 = vst [vmem:[#allocation0 + $0x45e] sm:$0x8] %v4075_v36  }
  0x94   :  { %659 = vst [vmem:[#allocation0 + $0x47d] sm:$0x10] %v4075_v36   ;;  %661 = vst [vmem:[#allocation0 + $0x49c] sm:$0x20] %v4075_v36  }
  0x95   :  { %663 = vst [vmem:[#allocation0 + $0x4bb] sm:$0x40] %v4075_v36   ;;  %665 = vst [vmem:[#allocation0 + $0x4da] sm:$0x80] %v4075_v36   ;;  %v1570_v36 = vld [vmem:[#allocation0 + $0x88] sm:$0x3] }
  0x96   :  { %669 = vst [vmem:[#allocation0 + $0x409] sm:$0x1] %v4076_v37   ;;  %671 = vst [vmem:[#allocation0 + $0x428] sm:$0x2] %v4076_v37  }
  0x97   :  { %673 = vst [vmem:[#allocation0 + $0x447] sm:$0x4] %v4076_v37   ;;  %675 = vst [vmem:[#allocation0 + $0x466] sm:$0x8] %v4076_v37  }
  0x98   :  { %677 = vst [vmem:[#allocation0 + $0x485] sm:$0x10] %v4076_v37   ;;  %679 = vst [vmem:[#allocation0 + $0x4a4] sm:$0x20] %v4076_v37  }
  0x99   :  { %681 = vst [vmem:[#allocation0 + $0x4c3] sm:$0x40] %v4076_v37   ;;  %683 = vst [vmem:[#allocation0 + $0x4e2] sm:$0x80] %v4076_v37   ;;  %v1577_v37 = vld [vmem:[#allocation0 + $0x90] sm:$0x3] }
  0x9a   :  { %687 = vst [vmem:[#allocation0 + $0x411] sm:$0x1] %v4077_v38   ;;  %689 = vst [vmem:[#allocation0 + $0x430] sm:$0x2] %v4077_v38  }
  0x9b   :  { %691 = vst [vmem:[#allocation0 + $0x44f] sm:$0x4] %v4077_v38   ;;  %693 = vst [vmem:[#allocation0 + $0x46e] sm:$0x8] %v4077_v38  }
  0x9c   :  { %695 = vst [vmem:[#allocation0 + $0x48d] sm:$0x10] %v4077_v38   ;;  %697 = vst [vmem:[#allocation0 + $0x4ac] sm:$0x20] %v4077_v38  }
  0x9d   :  { %699 = vst [vmem:[#allocation0 + $0x4cb] sm:$0x40] %v4077_v38   ;;  %701 = vst [vmem:[#allocation0 + $0x4ea] sm:$0x80] %v4077_v38   ;;  %v1584_v38 = vld [vmem:[#allocation0 + $0x98] sm:$0x3] }
  0x9e   :  { %705 = vst [vmem:[#allocation0 + $0x419] sm:$0x1] %v4078_v39   ;;  %707 = vst [vmem:[#allocation0 + $0x438] sm:$0x2] %v4078_v39  }
  0x9f   :  { %709 = vst [vmem:[#allocation0 + $0x457] sm:$0x4] %v4078_v39   ;;  %711 = vst [vmem:[#allocation0 + $0x476] sm:$0x8] %v4078_v39  }
  0xa0   :  { %713 = vst [vmem:[#allocation0 + $0x495] sm:$0x10] %v4078_v39   ;;  %715 = vst [vmem:[#allocation0 + $0x4b4] sm:$0x20] %v4078_v39  }
  0xa1   :  { %717 = vst [vmem:[#allocation0 + $0x4d3] sm:$0x40] %v4078_v39   ;;  %719 = vst [vmem:[#allocation0 + $0x4f2] sm:$0x80] %v4078_v39   ;;  %v1591_v39 = vld [vmem:[#allocation0 + $0xa0] sm:$0x3] }
  0xa2   :  { %723 = vst [vmem:[#allocation0 + $0x500] sm:$0x1] %v4079_v40   ;;  %725 = vst [vmem:[#allocation0 + $0x51f] sm:$0x2] %v4079_v40  }
  0xa3   :  { %727 = vst [vmem:[#allocation0 + $0x53e] sm:$0x4] %v4079_v40   ;;  %729 = vst [vmem:[#allocation0 + $0x55d] sm:$0x8] %v4079_v40  }
  0xa4   :  { %731 = vst [vmem:[#allocation0 + $0x57c] sm:$0x10] %v4079_v40   ;;  %733 = vst [vmem:[#allocation0 + $0x59b] sm:$0x20] %v4079_v40  }
  0xa5   :  { %735 = vst [vmem:[#allocation0 + $0x5ba] sm:$0x40] %v4079_v40   ;;  %737 = vst [vmem:[#allocation0 + $0x5d9] sm:$0x80] %v4079_v40   ;;  %v1598_v40 = vld [vmem:[#allocation0 + $0xa8] sm:$0x3] }
  0xa6   :  { %741 = vst [vmem:[#allocation0 + $0x508] sm:$0x1] %v4080_v41   ;;  %743 = vst [vmem:[#allocation0 + $0x527] sm:$0x2] %v4080_v41  }
  0xa7   :  { %745 = vst [vmem:[#allocation0 + $0x546] sm:$0x4] %v4080_v41   ;;  %747 = vst [vmem:[#allocation0 + $0x565] sm:$0x8] %v4080_v41  }
  0xa8   :  { %749 = vst [vmem:[#allocation0 + $0x584] sm:$0x10] %v4080_v41   ;;  %751 = vst [vmem:[#allocation0 + $0x5a3] sm:$0x20] %v4080_v41  }
  0xa9   :  { %753 = vst [vmem:[#allocation0 + $0x5c2] sm:$0x40] %v4080_v41   ;;  %755 = vst [vmem:[#allocation0 + $0x5e1] sm:$0x80] %v4080_v41   ;;  %v1605_v41 = vld [vmem:[#allocation0 + $0xb0] sm:$0x3] }
  0xaa   :  { %759 = vst [vmem:[#allocation0 + $0x510] sm:$0x1] %v4081_v42   ;;  %761 = vst [vmem:[#allocation0 + $0x52f] sm:$0x2] %v4081_v42  }
  0xab   :  { %763 = vst [vmem:[#allocation0 + $0x54e] sm:$0x4] %v4081_v42   ;;  %765 = vst [vmem:[#allocation0 + $0x56d] sm:$0x8] %v4081_v42  }
  0xac   :  { %767 = vst [vmem:[#allocation0 + $0x58c] sm:$0x10] %v4081_v42   ;;  %769 = vst [vmem:[#allocation0 + $0x5ab] sm:$0x20] %v4081_v42  }
  0xad   :  { %771 = vst [vmem:[#allocation0 + $0x5ca] sm:$0x40] %v4081_v42   ;;  %773 = vst [vmem:[#allocation0 + $0x5e9] sm:$0x80] %v4081_v42   ;;  %v1612_v42 = vld [vmem:[#allocation0 + $0xb8] sm:$0x3] }
  0xae   :  { %777 = vst [vmem:[#allocation0 + $0x518] sm:$0x1] %v4082_v43   ;;  %779 = vst [vmem:[#allocation0 + $0x537] sm:$0x2] %v4082_v43  }
  0xaf   :  { %781 = vst [vmem:[#allocation0 + $0x556] sm:$0x4] %v4082_v43   ;;  %783 = vst [vmem:[#allocation0 + $0x575] sm:$0x8] %v4082_v43  }
  0xb0   :  { %785 = vst [vmem:[#allocation0 + $0x594] sm:$0x10] %v4082_v43   ;;  %787 = vst [vmem:[#allocation0 + $0x5b3] sm:$0x20] %v4082_v43  }
  0xb1   :  { %789 = vst [vmem:[#allocation0 + $0x5d2] sm:$0x40] %v4082_v43   ;;  %791 = vst [vmem:[#allocation0 + $0x5f1] sm:$0x80] %v4082_v43   ;;  %v1619_v43 = vld [vmem:[#allocation0 + $0xc0] sm:$0x3] }
  0xb2   :  { %795 = vst [vmem:[#allocation0 + $0x501] sm:$0x1] %v4083_v44   ;;  %797 = vst [vmem:[#allocation0 + $0x520] sm:$0x2] %v4083_v44  }
  0xb3   :  { %799 = vst [vmem:[#allocation0 + $0x53f] sm:$0x4] %v4083_v44   ;;  %801 = vst [vmem:[#allocation0 + $0x55e] sm:$0x8] %v4083_v44  }
  0xb4   :  { %803 = vst [vmem:[#allocation0 + $0x57d] sm:$0x10] %v4083_v44   ;;  %805 = vst [vmem:[#allocation0 + $0x59c] sm:$0x20] %v4083_v44  }
  0xb5   :  { %807 = vst [vmem:[#allocation0 + $0x5bb] sm:$0x40] %v4083_v44   ;;  %809 = vst [vmem:[#allocation0 + $0x5da] sm:$0x80] %v4083_v44   ;;  %v1626_v44 = vld [vmem:[#allocation0 + $0xc8] sm:$0x3] }
  0xb6   :  { %813 = vst [vmem:[#allocation0 + $0x509] sm:$0x1] %v4084_v45   ;;  %815 = vst [vmem:[#allocation0 + $0x528] sm:$0x2] %v4084_v45  }
  0xb7   :  { %817 = vst [vmem:[#allocation0 + $0x547] sm:$0x4] %v4084_v45   ;;  %819 = vst [vmem:[#allocation0 + $0x566] sm:$0x8] %v4084_v45  }
  0xb8   :  { %821 = vst [vmem:[#allocation0 + $0x585] sm:$0x10] %v4084_v45   ;;  %823 = vst [vmem:[#allocation0 + $0x5a4] sm:$0x20] %v4084_v45  }
  0xb9   :  { %825 = vst [vmem:[#allocation0 + $0x5c3] sm:$0x40] %v4084_v45   ;;  %827 = vst [vmem:[#allocation0 + $0x5e2] sm:$0x80] %v4084_v45   ;;  %v1633_v45 = vld [vmem:[#allocation0 + $0xd0] sm:$0x3] }
  0xba   :  { %831 = vst [vmem:[#allocation0 + $0x511] sm:$0x1] %v4085_v46   ;;  %833 = vst [vmem:[#allocation0 + $0x530] sm:$0x2] %v4085_v46  }
  0xbb   :  { %835 = vst [vmem:[#allocation0 + $0x54f] sm:$0x4] %v4085_v46   ;;  %837 = vst [vmem:[#allocation0 + $0x56e] sm:$0x8] %v4085_v46  }
  0xbc   :  { %839 = vst [vmem:[#allocation0 + $0x58d] sm:$0x10] %v4085_v46   ;;  %841 = vst [vmem:[#allocation0 + $0x5ac] sm:$0x20] %v4085_v46  }
  0xbd   :  { %843 = vst [vmem:[#allocation0 + $0x5cb] sm:$0x40] %v4085_v46   ;;  %845 = vst [vmem:[#allocation0 + $0x5ea] sm:$0x80] %v4085_v46   ;;  %v1640_v46 = vld [vmem:[#allocation0 + $0xd8] sm:$0x3] }
  0xbe   :  { %849 = vst [vmem:[#allocation0 + $0x519] sm:$0x1] %v4086_v47   ;;  %851 = vst [vmem:[#allocation0 + $0x538] sm:$0x2] %v4086_v47  }
  0xbf   :  { %853 = vst [vmem:[#allocation0 + $0x557] sm:$0x4] %v4086_v47   ;;  %855 = vst [vmem:[#allocation0 + $0x576] sm:$0x8] %v4086_v47  }
  0xc0   :  { %857 = vst [vmem:[#allocation0 + $0x595] sm:$0x10] %v4086_v47   ;;  %859 = vst [vmem:[#allocation0 + $0x5b4] sm:$0x20] %v4086_v47  }
  0xc1   :  { %861 = vst [vmem:[#allocation0 + $0x5d3] sm:$0x40] %v4086_v47   ;;  %863 = vst [vmem:[#allocation0 + $0x5f2] sm:$0x80] %v4086_v47   ;;  %v1647_v47 = vld [vmem:[#allocation0 + $0xe0] sm:$0x3] }
  0xc2   :  { %867 = vst [vmem:[#allocation0 + $0x600] sm:$0x1] %v4087_v48   ;;  %869 = vst [vmem:[#allocation0 + $0x61f] sm:$0x2] %v4087_v48  }
  0xc3   :  { %871 = vst [vmem:[#allocation0 + $0x63e] sm:$0x4] %v4087_v48   ;;  %873 = vst [vmem:[#allocation0 + $0x65d] sm:$0x8] %v4087_v48  }
  0xc4   :  { %875 = vst [vmem:[#allocation0 + $0x67c] sm:$0x10] %v4087_v48   ;;  %877 = vst [vmem:[#allocation0 + $0x69b] sm:$0x20] %v4087_v48  }
  0xc5   :  { %879 = vst [vmem:[#allocation0 + $0x6ba] sm:$0x40] %v4087_v48   ;;  %881 = vst [vmem:[#allocation0 + $0x6d9] sm:$0x80] %v4087_v48   ;;  %v1654_v48 = vld [vmem:[#allocation0 + $0xe8] sm:$0x3] }
  0xc6   :  { %885 = vst [vmem:[#allocation0 + $0x608] sm:$0x1] %v4088_v49   ;;  %887 = vst [vmem:[#allocation0 + $0x627] sm:$0x2] %v4088_v49  }
  0xc7   :  { %889 = vst [vmem:[#allocation0 + $0x646] sm:$0x4] %v4088_v49   ;;  %891 = vst [vmem:[#allocation0 + $0x665] sm:$0x8] %v4088_v49  }
  0xc8   :  { %893 = vst [vmem:[#allocation0 + $0x684] sm:$0x10] %v4088_v49   ;;  %895 = vst [vmem:[#allocation0 + $0x6a3] sm:$0x20] %v4088_v49  }
  0xc9   :  { %897 = vst [vmem:[#allocation0 + $0x6c2] sm:$0x40] %v4088_v49   ;;  %899 = vst [vmem:[#allocation0 + $0x6e1] sm:$0x80] %v4088_v49   ;;  %v1661_v49 = vld [vmem:[#allocation0 + $0xf0] sm:$0x3] }
  0xca   :  { %903 = vst [vmem:[#allocation0 + $0x610] sm:$0x1] %v4089_v50   ;;  %905 = vst [vmem:[#allocation0 + $0x62f] sm:$0x2] %v4089_v50  }
  0xcb   :  { %907 = vst [vmem:[#allocation0 + $0x64e] sm:$0x4] %v4089_v50   ;;  %909 = vst [vmem:[#allocation0 + $0x66d] sm:$0x8] %v4089_v50  }
  0xcc   :  { %911 = vst [vmem:[#allocation0 + $0x68c] sm:$0x10] %v4089_v50   ;;  %913 = vst [vmem:[#allocation0 + $0x6ab] sm:$0x20] %v4089_v50  }
  0xcd   :  { %915 = vst [vmem:[#allocation0 + $0x6ca] sm:$0x40] %v4089_v50   ;;  %917 = vst [vmem:[#allocation0 + $0x6e9] sm:$0x80] %v4089_v50   ;;  %v1668_v50 = vld [vmem:[#allocation0 + $0xf8] sm:$0x3] }
  0xce   :  { %921 = vst [vmem:[#allocation0 + $0x618] sm:$0x1] %v4090_v51   ;;  %923 = vst [vmem:[#allocation0 + $0x637] sm:$0x2] %v4090_v51  }
  0xcf   :  { %925 = vst [vmem:[#allocation0 + $0x656] sm:$0x4] %v4090_v51   ;;  %927 = vst [vmem:[#allocation0 + $0x675] sm:$0x8] %v4090_v51  }
  0xd0   :  { %929 = vst [vmem:[#allocation0 + $0x694] sm:$0x10] %v4090_v51   ;;  %931 = vst [vmem:[#allocation0 + $0x6b3] sm:$0x20] %v4090_v51  }
  0xd1   :  { %933 = vst [vmem:[#allocation0 + $0x6d2] sm:$0x40] %v4090_v51   ;;  %935 = vst [vmem:[#allocation0 + $0x6f1] sm:$0x80] %v4090_v51   ;;  %v1675_v51 = vld [vmem:[#allocation0 + $0x100] sm:$0x3] }
  0xd2   :  { %939 = vst [vmem:[#allocation0 + $0x601] sm:$0x1] %v4091_v52   ;;  %941 = vst [vmem:[#allocation0 + $0x620] sm:$0x2] %v4091_v52  }
  0xd3   :  { %943 = vst [vmem:[#allocation0 + $0x63f] sm:$0x4] %v4091_v52   ;;  %945 = vst [vmem:[#allocation0 + $0x65e] sm:$0x8] %v4091_v52  }
  0xd4   :  { %947 = vst [vmem:[#allocation0 + $0x67d] sm:$0x10] %v4091_v52   ;;  %949 = vst [vmem:[#allocation0 + $0x69c] sm:$0x20] %v4091_v52  }
  0xd5   :  { %951 = vst [vmem:[#allocation0 + $0x6bb] sm:$0x40] %v4091_v52   ;;  %953 = vst [vmem:[#allocation0 + $0x6da] sm:$0x80] %v4091_v52   ;;  %v1682_v52 = vld [vmem:[#allocation0 + $0x108] sm:$0x3] }
  0xd6   :  { %957 = vst [vmem:[#allocation0 + $0x609] sm:$0x1] %v4092_v53   ;;  %959 = vst [vmem:[#allocation0 + $0x628] sm:$0x2] %v4092_v53  }
  0xd7   :  { %961 = vst [vmem:[#allocation0 + $0x647] sm:$0x4] %v4092_v53   ;;  %963 = vst [vmem:[#allocation0 + $0x666] sm:$0x8] %v4092_v53  }
  0xd8   :  { %965 = vst [vmem:[#allocation0 + $0x685] sm:$0x10] %v4092_v53   ;;  %967 = vst [vmem:[#allocation0 + $0x6a4] sm:$0x20] %v4092_v53  }
  0xd9   :  { %969 = vst [vmem:[#allocation0 + $0x6c3] sm:$0x40] %v4092_v53   ;;  %971 = vst [vmem:[#allocation0 + $0x6e2] sm:$0x80] %v4092_v53   ;;  %v1689_v53 = vld [vmem:[#allocation0 + $0x110] sm:$0x3] }
  0xda   :  { %975 = vst [vmem:[#allocation0 + $0x611] sm:$0x1] %v4093_v54   ;;  %977 = vst [vmem:[#allocation0 + $0x630] sm:$0x2] %v4093_v54  }
  0xdb   :  { %979 = vst [vmem:[#allocation0 + $0x64f] sm:$0x4] %v4093_v54   ;;  %981 = vst [vmem:[#allocation0 + $0x66e] sm:$0x8] %v4093_v54  }
  0xdc   :  { %983 = vst [vmem:[#allocation0 + $0x68d] sm:$0x10] %v4093_v54   ;;  %985 = vst [vmem:[#allocation0 + $0x6ac] sm:$0x20] %v4093_v54  }
  0xdd   :  { %987 = vst [vmem:[#allocation0 + $0x6cb] sm:$0x40] %v4093_v54   ;;  %989 = vst [vmem:[#allocation0 + $0x6ea] sm:$0x80] %v4093_v54   ;;  %v1696_v54 = vld [vmem:[#allocation0 + $0x118] sm:$0x3] }
  0xde   :  { %993 = vst [vmem:[#allocation0 + $0x619] sm:$0x1] %v4094_v55   ;;  %995 = vst [vmem:[#allocation0 + $0x638] sm:$0x2] %v4094_v55  }
  0xdf   :  { %997 = vst [vmem:[#allocation0 + $0x657] sm:$0x4] %v4094_v55   ;;  %999 = vst [vmem:[#allocation0 + $0x676] sm:$0x8] %v4094_v55  }
  0xe0   :  { %1001 = vst [vmem:[#allocation0 + $0x695] sm:$0x10] %v4094_v55   ;;  %1003 = vst [vmem:[#allocation0 + $0x6b4] sm:$0x20] %v4094_v55  }
  0xe1   :  { %1005 = vst [vmem:[#allocation0 + $0x6d3] sm:$0x40] %v4094_v55   ;;  %1007 = vst [vmem:[#allocation0 + $0x6f2] sm:$0x80] %v4094_v55   ;;  %v1703_v55 = vld [vmem:[#allocation0 + $0x120] sm:$0x3] }
  0xe2   :  { %1011 = vst [vmem:[#allocation0 + $0x700] sm:$0x1] %v4095_v56   ;;  %1013 = vst [vmem:[#allocation0 + $0x71f] sm:$0x2] %v4095_v56  }
  0xe3   :  { %1015 = vst [vmem:[#allocation0 + $0x73e] sm:$0x4] %v4095_v56   ;;  %1017 = vst [vmem:[#allocation0 + $0x75d] sm:$0x8] %v4095_v56  }
  0xe4   :  { %1019 = vst [vmem:[#allocation0 + $0x77c] sm:$0x10] %v4095_v56   ;;  %1021 = vst [vmem:[#allocation0 + $0x79b] sm:$0x20] %v4095_v56  }
  0xe5   :  { %1023 = vst [vmem:[#allocation0 + $0x7ba] sm:$0x40] %v4095_v56   ;;  %1025 = vst [vmem:[#allocation0 + $0x7d9] sm:$0x80] %v4095_v56   ;;  %v1710_v56 = vld [vmem:[#allocation0 + $0x128] sm:$0x3] }
  0xe6   :  { %1029 = vst [vmem:[#allocation0 + $0x708] sm:$0x1] %v4096_v57   ;;  %1031 = vst [vmem:[#allocation0 + $0x727] sm:$0x2] %v4096_v57  }
  0xe7   :  { %1033 = vst [vmem:[#allocation0 + $0x746] sm:$0x4] %v4096_v57   ;;  %1035 = vst [vmem:[#allocation0 + $0x765] sm:$0x8] %v4096_v57  }
  0xe8   :  { %1037 = vst [vmem:[#allocation0 + $0x784] sm:$0x10] %v4096_v57   ;;  %1039 = vst [vmem:[#allocation0 + $0x7a3] sm:$0x20] %v4096_v57  }
  0xe9   :  { %1041 = vst [vmem:[#allocation0 + $0x7c2] sm:$0x40] %v4096_v57   ;;  %1043 = vst [vmem:[#allocation0 + $0x7e1] sm:$0x80] %v4096_v57   ;;  %v1717_v57 = vld [vmem:[#allocation0 + $0x130] sm:$0x3] }
  0xea   :  { %1047 = vst [vmem:[#allocation0 + $0x710] sm:$0x1] %v4097_v58   ;;  %1049 = vst [vmem:[#allocation0 + $0x72f] sm:$0x2] %v4097_v58  }
  0xeb   :  { %1051 = vst [vmem:[#allocation0 + $0x74e] sm:$0x4] %v4097_v58   ;;  %1053 = vst [vmem:[#allocation0 + $0x76d] sm:$0x8] %v4097_v58  }
  0xec   :  { %1055 = vst [vmem:[#allocation0 + $0x78c] sm:$0x10] %v4097_v58   ;;  %1057 = vst [vmem:[#allocation0 + $0x7ab] sm:$0x20] %v4097_v58  }
  0xed   :  { %1059 = vst [vmem:[#allocation0 + $0x7ca] sm:$0x40] %v4097_v58   ;;  %1061 = vst [vmem:[#allocation0 + $0x7e9] sm:$0x80] %v4097_v58   ;;  %v1724_v58 = vld [vmem:[#allocation0 + $0x138] sm:$0x3] }
  0xee   :  { %1065 = vst [vmem:[#allocation0 + $0x718] sm:$0x1] %v4098_v59   ;;  %1067 = vst [vmem:[#allocation0 + $0x737] sm:$0x2] %v4098_v59  }
  0xef   :  { %1069 = vst [vmem:[#allocation0 + $0x756] sm:$0x4] %v4098_v59   ;;  %1071 = vst [vmem:[#allocation0 + $0x775] sm:$0x8] %v4098_v59  }
  0xf0   :  { %1073 = vst [vmem:[#allocation0 + $0x794] sm:$0x10] %v4098_v59   ;;  %1075 = vst [vmem:[#allocation0 + $0x7b3] sm:$0x20] %v4098_v59  }
  0xf1   :  { %1077 = vst [vmem:[#allocation0 + $0x7d2] sm:$0x40] %v4098_v59   ;;  %1079 = vst [vmem:[#allocation0 + $0x7f1] sm:$0x80] %v4098_v59   ;;  %v1731_v59 = vld [vmem:[#allocation0 + $0x140] sm:$0x3] }
  0xf2   :  { %1083 = vst [vmem:[#allocation0 + $0x701] sm:$0x1] %v4099_v60   ;;  %1085 = vst [vmem:[#allocation0 + $0x720] sm:$0x2] %v4099_v60  }
  0xf3   :  { %1087 = vst [vmem:[#allocation0 + $0x73f] sm:$0x4] %v4099_v60   ;;  %1089 = vst [vmem:[#allocation0 + $0x75e] sm:$0x8] %v4099_v60  }
  0xf4   :  { %1091 = vst [vmem:[#allocation0 + $0x77d] sm:$0x10] %v4099_v60   ;;  %1093 = vst [vmem:[#allocation0 + $0x79c] sm:$0x20] %v4099_v60  }
  0xf5   :  { %1095 = vst [vmem:[#allocation0 + $0x7bb] sm:$0x40] %v4099_v60   ;;  %1097 = vst [vmem:[#allocation0 + $0x7da] sm:$0x80] %v4099_v60   ;;  %v1738_v60 = vld [vmem:[#allocation0 + $0x148] sm:$0x3] }
  0xf6   :  { %1101 = vst [vmem:[#allocation0 + $0x709] sm:$0x1] %v4100_v61   ;;  %1103 = vst [vmem:[#allocation0 + $0x728] sm:$0x2] %v4100_v61  }
  0xf7   :  { %1105 = vst [vmem:[#allocation0 + $0x747] sm:$0x4] %v4100_v61   ;;  %1107 = vst [vmem:[#allocation0 + $0x766] sm:$0x8] %v4100_v61  }
  0xf8   :  { %1109 = vst [vmem:[#allocation0 + $0x785] sm:$0x10] %v4100_v61   ;;  %1111 = vst [vmem:[#allocation0 + $0x7a4] sm:$0x20] %v4100_v61  }
  0xf9   :  { %1113 = vst [vmem:[#allocation0 + $0x7c3] sm:$0x40] %v4100_v61   ;;  %1115 = vst [vmem:[#allocation0 + $0x7e2] sm:$0x80] %v4100_v61   ;;  %v1745_v61 = vld [vmem:[#allocation0 + $0x150] sm:$0x3] }
  0xfa   :  { %1119 = vst [vmem:[#allocation0 + $0x711] sm:$0x1] %v4101_v62   ;;  %1121 = vst [vmem:[#allocation0 + $0x730] sm:$0x2] %v4101_v62  }
  0xfb   :  { %1123 = vst [vmem:[#allocation0 + $0x74f] sm:$0x4] %v4101_v62   ;;  %1125 = vst [vmem:[#allocation0 + $0x76e] sm:$0x8] %v4101_v62  }
  0xfc   :  { %1127 = vst [vmem:[#allocation0 + $0x78d] sm:$0x10] %v4101_v62   ;;  %1129 = vst [vmem:[#allocation0 + $0x7ac] sm:$0x20] %v4101_v62  }
  0xfd   :  { %1131 = vst [vmem:[#allocation0 + $0x7cb] sm:$0x40] %v4101_v62   ;;  %1133 = vst [vmem:[#allocation0 + $0x7ea] sm:$0x80] %v4101_v62   ;;  %v1752_v62 = vld [vmem:[#allocation0 + $0x158] sm:$0x3] }
  0xfe   :  { %1137 = vst [vmem:[#allocation0 + $0x719] sm:$0x1] %v4102_v63   ;;  %1139 = vst [vmem:[#allocation0 + $0x738] sm:$0x2] %v4102_v63  }
  0xff   :  { %1141 = vst [vmem:[#allocation0 + $0x757] sm:$0x4] %v4102_v63   ;;  %1143 = vst [vmem:[#allocation0 + $0x776] sm:$0x8] %v4102_v63  }
 0x100   :  { %1145 = vst [vmem:[#allocation0 + $0x795] sm:$0x10] %v4102_v63   ;;  %1147 = vst [vmem:[#allocation0 + $0x7b4] sm:$0x20] %v4102_v63  }
 0x101   :  { %1149 = vst [vmem:[#allocation0 + $0x7d3] sm:$0x40] %v4102_v63   ;;  %1151 = vst [vmem:[#allocation0 + $0x7f2] sm:$0x80] %v4102_v63   ;;  %v1759_v63 = vld [vmem:[#allocation0 + $0x160] sm:$0x3] }
 0x102   :  { %1155 = vst [vmem:[#allocation0 + $0x800] sm:$0x1] %v4103_v0   ;;  %1157 = vst [vmem:[#allocation0 + $0x81f] sm:$0x2] %v4103_v0  }
 0x103   :  { %1159 = vst [vmem:[#allocation0 + $0x83e] sm:$0x4] %v4103_v0   ;;  %1161 = vst [vmem:[#allocation0 + $0x85d] sm:$0x8] %v4103_v0  }
 0x104   :  { %1163 = vst [vmem:[#allocation0 + $0x87c] sm:$0x10] %v4103_v0   ;;  %1165 = vst [vmem:[#allocation0 + $0x89b] sm:$0x20] %v4103_v0  }
 0x105   :  { %1167 = vst [vmem:[#allocation0 + $0x8ba] sm:$0x40] %v4103_v0   ;;  %1169 = vst [vmem:[#allocation0 + $0x8d9] sm:$0x80] %v4103_v0   ;;  %v1766_v0 = vld [vmem:[#allocation0 + $0x168] sm:$0x3] }
 0x106   :  { %1173 = vst [vmem:[#allocation0 + $0x808] sm:$0x1] %v4104_v1   ;;  %1175 = vst [vmem:[#allocation0 + $0x827] sm:$0x2] %v4104_v1  }
 0x107   :  { %1177 = vst [vmem:[#allocation0 + $0x846] sm:$0x4] %v4104_v1   ;;  %1179 = vst [vmem:[#allocation0 + $0x865] sm:$0x8] %v4104_v1  }
 0x108   :  { %1181 = vst [vmem:[#allocation0 + $0x884] sm:$0x10] %v4104_v1   ;;  %1183 = vst [vmem:[#allocation0 + $0x8a3] sm:$0x20] %v4104_v1  }
 0x109   :  { %1185 = vst [vmem:[#allocation0 + $0x8c2] sm:$0x40] %v4104_v1   ;;  %1187 = vst [vmem:[#allocation0 + $0x8e1] sm:$0x80] %v4104_v1   ;;  %v1773_v1 = vld [vmem:[#allocation0 + $0x170] sm:$0x3] }
 0x10a   :  { %1191 = vst [vmem:[#allocation0 + $0x810] sm:$0x1] %v4105_v2   ;;  %1193 = vst [vmem:[#allocation0 + $0x82f] sm:$0x2] %v4105_v2  }
 0x10b   :  { %1195 = vst [vmem:[#allocation0 + $0x84e] sm:$0x4] %v4105_v2   ;;  %1197 = vst [vmem:[#allocation0 + $0x86d] sm:$0x8] %v4105_v2  }
 0x10c   :  { %1199 = vst [vmem:[#allocation0 + $0x88c] sm:$0x10] %v4105_v2   ;;  %1201 = vst [vmem:[#allocation0 + $0x8ab] sm:$0x20] %v4105_v2  }
 0x10d   :  { %1203 = vst [vmem:[#allocation0 + $0x8ca] sm:$0x40] %v4105_v2   ;;  %1205 = vst [vmem:[#allocation0 + $0x8e9] sm:$0x80] %v4105_v2   ;;  %v1780_v2 = vld [vmem:[#allocation0 + $0x178] sm:$0x3] }
 0x10e   :  { %1209 = vst [vmem:[#allocation0 + $0x818] sm:$0x1] %v4106_v3   ;;  %1211 = vst [vmem:[#allocation0 + $0x837] sm:$0x2] %v4106_v3  }
 0x10f   :  { %1213 = vst [vmem:[#allocation0 + $0x856] sm:$0x4] %v4106_v3   ;;  %1215 = vst [vmem:[#allocation0 + $0x875] sm:$0x8] %v4106_v3  }
 0x110   :  { %1217 = vst [vmem:[#allocation0 + $0x894] sm:$0x10] %v4106_v3   ;;  %1219 = vst [vmem:[#allocation0 + $0x8b3] sm:$0x20] %v4106_v3  }
 0x111   :  { %1221 = vst [vmem:[#allocation0 + $0x8d2] sm:$0x40] %v4106_v3   ;;  %1223 = vst [vmem:[#allocation0 + $0x8f1] sm:$0x80] %v4106_v3   ;;  %v1787_v3 = vld [vmem:[#allocation0 + $0x180] sm:$0x3] }
 0x112   :  { %1227 = vst [vmem:[#allocation0 + $0x801] sm:$0x1] %v4107_v4   ;;  %1229 = vst [vmem:[#allocation0 + $0x820] sm:$0x2] %v4107_v4  }
 0x113   :  { %1231 = vst [vmem:[#allocation0 + $0x83f] sm:$0x4] %v4107_v4   ;;  %1233 = vst [vmem:[#allocation0 + $0x85e] sm:$0x8] %v4107_v4  }
 0x114   :  { %1235 = vst [vmem:[#allocation0 + $0x87d] sm:$0x10] %v4107_v4   ;;  %1237 = vst [vmem:[#allocation0 + $0x89c] sm:$0x20] %v4107_v4  }
 0x115   :  { %1239 = vst [vmem:[#allocation0 + $0x8bb] sm:$0x40] %v4107_v4   ;;  %1241 = vst [vmem:[#allocation0 + $0x8da] sm:$0x80] %v4107_v4   ;;  %v1794_v4 = vld [vmem:[#allocation0 + $0x188] sm:$0x3] }
 0x116   :  { %1245 = vst [vmem:[#allocation0 + $0x809] sm:$0x1] %v4108_v5   ;;  %1247 = vst [vmem:[#allocation0 + $0x828] sm:$0x2] %v4108_v5  }
 0x117   :  { %1249 = vst [vmem:[#allocation0 + $0x847] sm:$0x4] %v4108_v5   ;;  %1251 = vst [vmem:[#allocation0 + $0x866] sm:$0x8] %v4108_v5  }
 0x118   :  { %1253 = vst [vmem:[#allocation0 + $0x885] sm:$0x10] %v4108_v5   ;;  %1255 = vst [vmem:[#allocation0 + $0x8a4] sm:$0x20] %v4108_v5  }
 0x119   :  { %1257 = vst [vmem:[#allocation0 + $0x8c3] sm:$0x40] %v4108_v5   ;;  %1259 = vst [vmem:[#allocation0 + $0x8e2] sm:$0x80] %v4108_v5   ;;  %v1801_v5 = vld [vmem:[#allocation0 + $0x190] sm:$0x3] }
 0x11a   :  { %1263 = vst [vmem:[#allocation0 + $0x811] sm:$0x1] %v4109_v6   ;;  %1265 = vst [vmem:[#allocation0 + $0x830] sm:$0x2] %v4109_v6  }
 0x11b   :  { %1267 = vst [vmem:[#allocation0 + $0x84f] sm:$0x4] %v4109_v6   ;;  %1269 = vst [vmem:[#allocation0 + $0x86e] sm:$0x8] %v4109_v6  }
 0x11c   :  { %1271 = vst [vmem:[#allocation0 + $0x88d] sm:$0x10] %v4109_v6   ;;  %1273 = vst [vmem:[#allocation0 + $0x8ac] sm:$0x20] %v4109_v6  }
 0x11d   :  { %1275 = vst [vmem:[#allocation0 + $0x8cb] sm:$0x40] %v4109_v6   ;;  %1277 = vst [vmem:[#allocation0 + $0x8ea] sm:$0x80] %v4109_v6   ;;  %v1808_v6 = vld [vmem:[#allocation0 + $0x198] sm:$0x3] }
 0x11e   :  { %1281 = vst [vmem:[#allocation0 + $0x819] sm:$0x1] %v4110_v7   ;;  %1283 = vst [vmem:[#allocation0 + $0x838] sm:$0x2] %v4110_v7  }
 0x11f   :  { %1285 = vst [vmem:[#allocation0 + $0x857] sm:$0x4] %v4110_v7   ;;  %1287 = vst [vmem:[#allocation0 + $0x876] sm:$0x8] %v4110_v7  }
 0x120   :  { %1289 = vst [vmem:[#allocation0 + $0x895] sm:$0x10] %v4110_v7   ;;  %1291 = vst [vmem:[#allocation0 + $0x8b4] sm:$0x20] %v4110_v7  }
 0x121   :  { %1293 = vst [vmem:[#allocation0 + $0x8d3] sm:$0x40] %v4110_v7   ;;  %1295 = vst [vmem:[#allocation0 + $0x8f2] sm:$0x80] %v4110_v7   ;;  %v1815_v7 = vld [vmem:[#allocation0 + $0x1a0] sm:$0x3] }
 0x122   :  { %1299 = vst [vmem:[#allocation0 + $0x900] sm:$0x1] %v4111_v8   ;;  %1301 = vst [vmem:[#allocation0 + $0x91f] sm:$0x2] %v4111_v8  }
 0x123   :  { %1303 = vst [vmem:[#allocation0 + $0x93e] sm:$0x4] %v4111_v8   ;;  %1305 = vst [vmem:[#allocation0 + $0x95d] sm:$0x8] %v4111_v8  }
 0x124   :  { %1307 = vst [vmem:[#allocation0 + $0x97c] sm:$0x10] %v4111_v8   ;;  %1309 = vst [vmem:[#allocation0 + $0x99b] sm:$0x20] %v4111_v8  }
 0x125   :  { %1311 = vst [vmem:[#allocation0 + $0x9ba] sm:$0x40] %v4111_v8   ;;  %1313 = vst [vmem:[#allocation0 + $0x9d9] sm:$0x80] %v4111_v8   ;;  %v1822_v8 = vld [vmem:[#allocation0 + $0x1a8] sm:$0x3] }
 0x126   :  { %1317 = vst [vmem:[#allocation0 + $0x908] sm:$0x1] %v4112_v9   ;;  %1319 = vst [vmem:[#allocation0 + $0x927] sm:$0x2] %v4112_v9  }
 0x127   :  { %1321 = vst [vmem:[#allocation0 + $0x946] sm:$0x4] %v4112_v9   ;;  %1323 = vst [vmem:[#allocation0 + $0x965] sm:$0x8] %v4112_v9  }
 0x128   :  { %1325 = vst [vmem:[#allocation0 + $0x984] sm:$0x10] %v4112_v9   ;;  %1327 = vst [vmem:[#allocation0 + $0x9a3] sm:$0x20] %v4112_v9  }
 0x129   :  { %1329 = vst [vmem:[#allocation0 + $0x9c2] sm:$0x40] %v4112_v9   ;;  %1331 = vst [vmem:[#allocation0 + $0x9e1] sm:$0x80] %v4112_v9   ;;  %v1829_v9 = vld [vmem:[#allocation0 + $0x1b0] sm:$0x3] }
 0x12a   :  { %1335 = vst [vmem:[#allocation0 + $0x910] sm:$0x1] %v4113_v10   ;;  %1337 = vst [vmem:[#allocation0 + $0x92f] sm:$0x2] %v4113_v10  }
 0x12b   :  { %1339 = vst [vmem:[#allocation0 + $0x94e] sm:$0x4] %v4113_v10   ;;  %1341 = vst [vmem:[#allocation0 + $0x96d] sm:$0x8] %v4113_v10  }
 0x12c   :  { %1343 = vst [vmem:[#allocation0 + $0x98c] sm:$0x10] %v4113_v10   ;;  %1345 = vst [vmem:[#allocation0 + $0x9ab] sm:$0x20] %v4113_v10  }
 0x12d   :  { %1347 = vst [vmem:[#allocation0 + $0x9ca] sm:$0x40] %v4113_v10   ;;  %1349 = vst [vmem:[#allocation0 + $0x9e9] sm:$0x80] %v4113_v10   ;;  %v1836_v10 = vld [vmem:[#allocation0 + $0x1b8] sm:$0x3] }
 0x12e   :  { %1353 = vst [vmem:[#allocation0 + $0x918] sm:$0x1] %v4114_v11   ;;  %1355 = vst [vmem:[#allocation0 + $0x937] sm:$0x2] %v4114_v11  }
 0x12f   :  { %1357 = vst [vmem:[#allocation0 + $0x956] sm:$0x4] %v4114_v11   ;;  %1359 = vst [vmem:[#allocation0 + $0x975] sm:$0x8] %v4114_v11  }
 0x130   :  { %1361 = vst [vmem:[#allocation0 + $0x994] sm:$0x10] %v4114_v11   ;;  %1363 = vst [vmem:[#allocation0 + $0x9b3] sm:$0x20] %v4114_v11  }
 0x131   :  { %1365 = vst [vmem:[#allocation0 + $0x9d2] sm:$0x40] %v4114_v11   ;;  %1367 = vst [vmem:[#allocation0 + $0x9f1] sm:$0x80] %v4114_v11   ;;  %v1843_v11 = vld [vmem:[#allocation0 + $0x1c0] sm:$0x3] }
 0x132   :  { %1371 = vst [vmem:[#allocation0 + $0x901] sm:$0x1] %v4115_v12   ;;  %1373 = vst [vmem:[#allocation0 + $0x920] sm:$0x2] %v4115_v12  }
 0x133   :  { %1375 = vst [vmem:[#allocation0 + $0x93f] sm:$0x4] %v4115_v12   ;;  %1377 = vst [vmem:[#allocation0 + $0x95e] sm:$0x8] %v4115_v12  }
 0x134   :  { %1379 = vst [vmem:[#allocation0 + $0x97d] sm:$0x10] %v4115_v12   ;;  %1381 = vst [vmem:[#allocation0 + $0x99c] sm:$0x20] %v4115_v12  }
 0x135   :  { %1383 = vst [vmem:[#allocation0 + $0x9bb] sm:$0x40] %v4115_v12   ;;  %1385 = vst [vmem:[#allocation0 + $0x9da] sm:$0x80] %v4115_v12   ;;  %v1850_v12 = vld [vmem:[#allocation0 + $0x1c8] sm:$0x3] }
 0x136   :  { %1389 = vst [vmem:[#allocation0 + $0x909] sm:$0x1] %v4116_v13   ;;  %1391 = vst [vmem:[#allocation0 + $0x928] sm:$0x2] %v4116_v13  }
 0x137   :  { %1393 = vst [vmem:[#allocation0 + $0x947] sm:$0x4] %v4116_v13   ;;  %1395 = vst [vmem:[#allocation0 + $0x966] sm:$0x8] %v4116_v13  }
 0x138   :  { %1397 = vst [vmem:[#allocation0 + $0x985] sm:$0x10] %v4116_v13   ;;  %1399 = vst [vmem:[#allocation0 + $0x9a4] sm:$0x20] %v4116_v13  }
 0x139   :  { %1401 = vst [vmem:[#allocation0 + $0x9c3] sm:$0x40] %v4116_v13   ;;  %1403 = vst [vmem:[#allocation0 + $0x9e2] sm:$0x80] %v4116_v13   ;;  %v1857_v13 = vld [vmem:[#allocation0 + $0x1d0] sm:$0x3] }
 0x13a   :  { %v4119_v16 = vld [vmem:[%s5673_s0 + $0x280] ss:$8 sm:$0xf]   ;;  %1407 = vst [vmem:[#allocation0 + $0x911] sm:$0x1] %v4117_v14   ;;  %1457 = vst [vmem:[%s5674_s1] sm:$0x3] %v1454_v18 }
 0x13b   :  { %1409 = vst [vmem:[#allocation0 + $0x930] sm:$0x2] %v4117_v14   ;;  %1411 = vst [vmem:[#allocation0 + $0x94f] sm:$0x4] %v4117_v14   ;;  %v1892_v18 = vld [vmem:[#allocation0 + $0x1f8] sm:$0x3] }
 0x13c   :  { %1413 = vst [vmem:[#allocation0 + $0x96e] sm:$0x8] %v4117_v14   ;;  %1415 = vst [vmem:[#allocation0 + $0x98d] sm:$0x10] %v4117_v14  }
 0x13d   :  { %1417 = vst [vmem:[#allocation0 + $0x9ac] sm:$0x20] %v4117_v14   ;;  %1419 = vst [vmem:[#allocation0 + $0x9cb] sm:$0x40] %v4117_v14  }
 0x13e   :  { %1421 = vst [vmem:[#allocation0 + $0x9ea] sm:$0x80] %v4117_v14   ;;  %1425 = vst [vmem:[#allocation0 + $0x919] sm:$0x1] %v4118_v15   ;;  %v1864_v14 = vld [vmem:[#allocation0 + $0x1d8] sm:$0x3] }
 0x13f   :  { %1427 = vst [vmem:[#allocation0 + $0x938] sm:$0x2] %v4118_v15   ;;  %1429 = vst [vmem:[#allocation0 + $0x957] sm:$0x4] %v4118_v15  }
 0x140   :  { %1431 = vst [vmem:[#allocation0 + $0x976] sm:$0x8] %v4118_v15   ;;  %1433 = vst [vmem:[#allocation0 + $0x995] sm:$0x10] %v4118_v15  }
 0x141   :  { %1435 = vst [vmem:[#allocation0 + $0x9b4] sm:$0x20] %v4118_v15   ;;  %1437 = vst [vmem:[#allocation0 + $0x9d3] sm:$0x40] %v4118_v15  }
 0x142   :  { %1439 = vst [vmem:[#allocation0 + $0x9f2] sm:$0x80] %v4118_v15   ;;  %v4120_v17 = vld [vmem:[%s5673_s0 + $0x280] ss:$8 sm:$0xf0]  }
 0x143   :  { %v1445_v19 = vsel %vm1444_vm0, %v4120_v17, %v4119_v16  ;;  %4121 = vst [vmem:[%s5674_s1 + $0x2] sm:$0x3] %v1459_v20  ;;  %4122 = vst [vmem:[%s5674_s1 + $0x4] sm:$0x3] %v1465_v21  ;;  %v1871_v15 = vld [vmem:[#allocation0 + $0x1e0] sm:$0x3] }
 0x144   :  { %1447 = vst [vmem:[#allocation0 + $0xa00] ss:$8 sm:$0xf] %v1445_v19   ;;  %1449 = vst [vmem:[#allocation0 + $0x9e1] ss:$8 sm:$0xf0] %v1445_v19  }
 0x145   :  { %4123 = vst [vmem:[%s5674_s1 + $0x6] sm:$0x3] %v1472_v22  ;;  %4124 = vst [vmem:[%s5674_s1 + $0x8] sm:$0x3] %v1479_v23  ;;  %v1878_v16 = vld [vmem:[#allocation0 + $0x1e8] sm:$0x3] }
 0x146   :  { %4125 = vst [vmem:[%s5674_s1 + $0xa] sm:$0x3] %v1486_v24  ;;  %4126 = vst [vmem:[%s5674_s1 + $0xc] sm:$0x3] %v1493_v25  ;;  %v1885_v17 = vld [vmem:[#allocation0 + $0x1f0] sm:$0x3] }
 0x147   :  { %4127 = vst [vmem:[%s5674_s1 + $0xe] sm:$0x3] %v1500_v26  ;;  %4128 = vst [vmem:[%s5674_s1 + $0x10] sm:$0x3] %v1507_v27  ;;  %v1899_v19 = vld [vmem:[#allocation0 + $0x200] sm:$0x3] }
 0x148   :  { %4129 = vst [vmem:[%s5674_s1 + $0x12] sm:$0x3] %v1514_v28  ;;  %4130 = vst [vmem:[%s5674_s1 + $0x14] sm:$0x3] %v1521_v29  ;;  %v1906_v20 = vld [vmem:[#allocation0 + $0x208] sm:$0x3] }
 0x149   :  { %4131 = vst [vmem:[%s5674_s1 + $0x16] sm:$0x3] %v1528_v30  ;;  %4132 = vst [vmem:[%s5674_s1 + $0x18] sm:$0x3] %v1535_v31  ;;  %v1913_v21 = vld [vmem:[#allocation0 + $0x210] sm:$0x3] }
 0x14a   :  { %4133 = vst [vmem:[%s5674_s1 + $0x1a] sm:$0x3] %v1542_v32  ;;  %4134 = vst [vmem:[%s5674_s1 + $0x1c] sm:$0x3] %v1549_v33  ;;  %v1920_v22 = vld [vmem:[#allocation0 + $0x218] sm:$0x3] }
 0x14b   :  { %4135 = vst [vmem:[%s5674_s1 + $0x1e] sm:$0x3] %v1556_v34  ;;  %4136 = vst [vmem:[%s5674_s1 + $0x20] sm:$0x3] %v1563_v35  ;;  %v1927_v23 = vld [vmem:[#allocation0 + $0x220] sm:$0x3] }
 0x14c   :  { %4137 = vst [vmem:[%s5674_s1 + $0x22] sm:$0x3] %v1570_v36  ;;  %4138 = vst [vmem:[%s5674_s1 + $0x24] sm:$0x3] %v1577_v37  ;;  %v1934_v24 = vld [vmem:[#allocation0 + $0x228] sm:$0x3] }
 0x14d   :  { %4139 = vst [vmem:[%s5674_s1 + $0x26] sm:$0x3] %v1584_v38  ;;  %4140 = vst [vmem:[%s5674_s1 + $0x28] sm:$0x3] %v1591_v39  ;;  %v1941_v25 = vld [vmem:[#allocation0 + $0x230] sm:$0x3] }
 0x14e   :  { %4141 = vst [vmem:[%s5674_s1 + $0x2a] sm:$0x3] %v1598_v40  ;;  %4142 = vst [vmem:[%s5674_s1 + $0x2c] sm:$0x3] %v1605_v41  ;;  %v1948_v26 = vld [vmem:[#allocation0 + $0x238] sm:$0x3] }
 0x14f   :  { %4143 = vst [vmem:[%s5674_s1 + $0x2e] sm:$0x3] %v1612_v42  ;;  %4144 = vst [vmem:[%s5674_s1 + $0x30] sm:$0x3] %v1619_v43  ;;  %v1955_v27 = vld [vmem:[#allocation0 + $0x240] sm:$0x3] }
 0x150   :  { %4145 = vst [vmem:[%s5674_s1 + $0x32] sm:$0x3] %v1626_v44  ;;  %4146 = vst [vmem:[%s5674_s1 + $0x34] sm:$0x3] %v1633_v45  ;;  %v1962_v28 = vld [vmem:[#allocation0 + $0x248] sm:$0x3] }
 0x151   :  { %4147 = vst [vmem:[%s5674_s1 + $0x36] sm:$0x3] %v1640_v46  ;;  %4148 = vst [vmem:[%s5674_s1 + $0x38] sm:$0x3] %v1647_v47  ;;  %v1969_v29 = vld [vmem:[#allocation0 + $0x250] sm:$0x3] }
 0x152   :  { %4149 = vst [vmem:[%s5674_s1 + $0x3a] sm:$0x3] %v1654_v48  ;;  %4150 = vst [vmem:[%s5674_s1 + $0x3c] sm:$0x3] %v1661_v49  ;;  %v1976_v30 = vld [vmem:[#allocation0 + $0x258] sm:$0x3] }
 0x153   :  { %4151 = vst [vmem:[%s5674_s1 + $0x3e] sm:$0x3] %v1668_v50  ;;  %4152 = vst [vmem:[%s5674_s1 + $0x40] sm:$0x3] %v1675_v51  ;;  %v1983_v31 = vld [vmem:[#allocation0 + $0x260] sm:$0x3] }
 0x154   :  { %4153 = vst [vmem:[%s5674_s1 + $0x42] sm:$0x3] %v1682_v52  ;;  %4154 = vst [vmem:[%s5674_s1 + $0x44] sm:$0x3] %v1689_v53  ;;  %v1990_v32 = vld [vmem:[#allocation0 + $0x268] sm:$0x3] }
 0x155   :  { %4155 = vst [vmem:[%s5674_s1 + $0x46] sm:$0x3] %v1696_v54  ;;  %4156 = vst [vmem:[%s5674_s1 + $0x48] sm:$0x3] %v1703_v55  ;;  %v1997_v33 = vld [vmem:[#allocation0 + $0x270] sm:$0x3] }
 0x156   :  { %4157 = vst [vmem:[%s5674_s1 + $0x4a] sm:$0x3] %v1710_v56  ;;  %4158 = vst [vmem:[%s5674_s1 + $0x4c] sm:$0x3] %v1717_v57  ;;  %v2004_v34 = vld [vmem:[#allocation0 + $0x278] sm:$0x3] }
 0x157   :  { %4159 = vst [vmem:[%s5674_s1 + $0x4e] sm:$0x3] %v1724_v58  ;;  %4160 = vst [vmem:[%s5674_s1 + $0x50] sm:$0x3] %v1731_v59  ;;  %v2011_v35 = vld [vmem:[#allocation0 + $0x280] sm:$0x3] }
 0x158   :  { %4161 = vst [vmem:[%s5674_s1 + $0x52] sm:$0x3] %v1738_v60  ;;  %4162 = vst [vmem:[%s5674_s1 + $0x54] sm:$0x3] %v1745_v61  ;;  %v2018_v36 = vld [vmem:[#allocation0 + $0x288] sm:$0x3] }
 0x159   :  { %4163 = vst [vmem:[%s5674_s1 + $0x56] sm:$0x3] %v1752_v62  ;;  %4164 = vst [vmem:[%s5674_s1 + $0x58] sm:$0x3] %v1759_v63  ;;  %v2025_v37 = vld [vmem:[#allocation0 + $0x290] sm:$0x3] }
 0x15a   :  { %4165 = vst [vmem:[%s5674_s1 + $0x5a] sm:$0x3] %v1766_v0  ;;  %4166 = vst [vmem:[%s5674_s1 + $0x5c] sm:$0x3] %v1773_v1  ;;  %v2032_v38 = vld [vmem:[#allocation0 + $0x298] sm:$0x3] }
 0x15b   :  { %4167 = vst [vmem:[%s5674_s1 + $0x5e] sm:$0x3] %v1780_v2  ;;  %4168 = vst [vmem:[%s5674_s1 + $0x60] sm:$0x3] %v1787_v3  ;;  %v2039_v39 = vld [vmem:[#allocation0 + $0x2a0] sm:$0x3] }
 0x15c   :  { %4169 = vst [vmem:[%s5674_s1 + $0x62] sm:$0x3] %v1794_v4  ;;  %4170 = vst [vmem:[%s5674_s1 + $0x64] sm:$0x3] %v1801_v5  ;;  %v2046_v40 = vld [vmem:[#allocation0 + $0x2a8] sm:$0x3] }
 0x15d   :  { %4171 = vst [vmem:[%s5674_s1 + $0x66] sm:$0x3] %v1808_v6  ;;  %4172 = vst [vmem:[%s5674_s1 + $0x68] sm:$0x3] %v1815_v7  ;;  %v2053_v41 = vld [vmem:[#allocation0 + $0x2b0] sm:$0x3] }
 0x15e   :  { %4173 = vst [vmem:[%s5674_s1 + $0x6a] sm:$0x3] %v1822_v8  ;;  %4174 = vst [vmem:[%s5674_s1 + $0x6c] sm:$0x3] %v1829_v9  ;;  %v2060_v42 = vld [vmem:[#allocation0 + $0x2b8] sm:$0x3] }
 0x15f   :  { %4175 = vst [vmem:[%s5674_s1 + $0x6e] sm:$0x3] %v1836_v10  ;;  %4176 = vst [vmem:[%s5674_s1 + $0x70] sm:$0x3] %v1843_v11  ;;  %v2067_v43 = vld [vmem:[#allocation0 + $0x2c0] sm:$0x3] }
 0x160   :  { %4177 = vst [vmem:[%s5674_s1 + $0x72] sm:$0x3] %v1850_v12  ;;  %4178 = vst [vmem:[%s5674_s1 + $0x74] sm:$0x3] %v1857_v13  ;;  %v2074_v44 = vld [vmem:[#allocation0 + $0x2c8] sm:$0x3] }
 0x161   :  { %4179 = vst [vmem:[%s5674_s1 + $0x76] sm:$0x3] %v1864_v14  ;;  %4180 = vst [vmem:[%s5674_s1 + $0x78] sm:$0x3] %v1871_v15  ;;  %v2081_v45 = vld [vmem:[#allocation0 + $0x2d0] sm:$0x3] }
 0x162   :  { %4181 = vst [vmem:[%s5674_s1 + $0x7a] sm:$0x3] %v1878_v16  ;;  %4182 = vst [vmem:[%s5674_s1 + $0x7c] sm:$0x3] %v1885_v17  ;;  %v2088_v46 = vld [vmem:[#allocation0 + $0x2d8] sm:$0x3] }
 0x163   :  { %4183 = vst [vmem:[%s5674_s1 + $0x7e] sm:$0x3] %v1892_v18  ;;  %4184 = vst [vmem:[%s5674_s1 + $0x80] sm:$0x3] %v1899_v19  ;;  %v2095_v47 = vld [vmem:[#allocation0 + $0x2e0] sm:$0x3] }
 0x164   :  { %4185 = vst [vmem:[%s5674_s1 + $0x82] sm:$0x3] %v1906_v20  ;;  %4186 = vst [vmem:[%s5674_s1 + $0x84] sm:$0x3] %v1913_v21  ;;  %v2102_v48 = vld [vmem:[#allocation0 + $0x2e8] sm:$0x3] }
 0x165   :  { %4187 = vst [vmem:[%s5674_s1 + $0x86] sm:$0x3] %v1920_v22  ;;  %4188 = vst [vmem:[%s5674_s1 + $0x88] sm:$0x3] %v1927_v23  ;;  %v2109_v49 = vld [vmem:[#allocation0 + $0x2f0] sm:$0x3] }
 0x166   :  { %4189 = vst [vmem:[%s5674_s1 + $0x8a] sm:$0x3] %v1934_v24  ;;  %4190 = vst [vmem:[%s5674_s1 + $0x8c] sm:$0x3] %v1941_v25  ;;  %v2116_v50 = vld [vmem:[#allocation0 + $0x2f8] sm:$0x3] }
 0x167   :  { %4191 = vst [vmem:[%s5674_s1 + $0x8e] sm:$0x3] %v1948_v26  ;;  %4192 = vst [vmem:[%s5674_s1 + $0x90] sm:$0x3] %v1955_v27  ;;  %v2123_v51 = vld [vmem:[#allocation0 + $0x300] sm:$0x3] }
 0x168   :  { %4193 = vst [vmem:[%s5674_s1 + $0x92] sm:$0x3] %v1962_v28  ;;  %4194 = vst [vmem:[%s5674_s1 + $0x94] sm:$0x3] %v1969_v29  ;;  %v2130_v52 = vld [vmem:[#allocation0 + $0x308] sm:$0x3] }
 0x169   :  { %4195 = vst [vmem:[%s5674_s1 + $0x96] sm:$0x3] %v1976_v30  ;;  %4196 = vst [vmem:[%s5674_s1 + $0x98] sm:$0x3] %v1983_v31  ;;  %v2137_v53 = vld [vmem:[#allocation0 + $0x310] sm:$0x3] }
 0x16a   :  { %4197 = vst [vmem:[%s5674_s1 + $0x9a] sm:$0x3] %v1990_v32  ;;  %4198 = vst [vmem:[%s5674_s1 + $0x9c] sm:$0x3] %v1997_v33  ;;  %v2144_v54 = vld [vmem:[#allocation0 + $0x318] sm:$0x3] }
 0x16b   :  { %4199 = vst [vmem:[%s5674_s1 + $0x9e] sm:$0x3] %v2004_v34  ;;  %4200 = vst [vmem:[%s5674_s1 + $0xa0] sm:$0x3] %v2011_v35  ;;  %v2151_v55 = vld [vmem:[#allocation0 + $0x320] sm:$0x3] }
 0x16c   :  { %4201 = vst [vmem:[%s5674_s1 + $0xa2] sm:$0x3] %v2018_v36  ;;  %4202 = vst [vmem:[%s5674_s1 + $0xa4] sm:$0x3] %v2025_v37  ;;  %v2158_v56 = vld [vmem:[#allocation0 + $0x328] sm:$0x3] }
 0x16d   :  { %4203 = vst [vmem:[%s5674_s1 + $0xa6] sm:$0x3] %v2032_v38  ;;  %4204 = vst [vmem:[%s5674_s1 + $0xa8] sm:$0x3] %v2039_v39  ;;  %v2165_v57 = vld [vmem:[#allocation0 + $0x330] sm:$0x3] }
 0x16e   :  { %4205 = vst [vmem:[%s5674_s1 + $0xaa] sm:$0x3] %v2046_v40  ;;  %4206 = vst [vmem:[%s5674_s1 + $0xac] sm:$0x3] %v2053_v41  ;;  %v2172_v58 = vld [vmem:[#allocation0 + $0x338] sm:$0x3] }
 0x16f   :  { %4207 = vst [vmem:[%s5674_s1 + $0xae] sm:$0x3] %v2060_v42  ;;  %4208 = vst [vmem:[%s5674_s1 + $0xb0] sm:$0x3] %v2067_v43  ;;  %v2179_v59 = vld [vmem:[#allocation0 + $0x340] sm:$0x3] }
 0x170   :  { %4209 = vst [vmem:[%s5674_s1 + $0xb2] sm:$0x3] %v2074_v44  ;;  %4210 = vst [vmem:[%s5674_s1 + $0xb4] sm:$0x3] %v2081_v45  ;;  %v2186_v60 = vld [vmem:[#allocation0 + $0x348] sm:$0x3] }
 0x171   :  { %4211 = vst [vmem:[%s5674_s1 + $0xb6] sm:$0x3] %v2088_v46  ;;  %4212 = vst [vmem:[%s5674_s1 + $0xb8] sm:$0x3] %v2095_v47  ;;  %v2193_v61 = vld [vmem:[#allocation0 + $0x350] sm:$0x3] }
 0x172   :  { %4213 = vst [vmem:[%s5674_s1 + $0xba] sm:$0x3] %v2102_v48  ;;  %4214 = vst [vmem:[%s5674_s1 + $0xbc] sm:$0x3] %v2109_v49  ;;  %v2200_v62 = vld [vmem:[#allocation0 + $0x358] sm:$0x3] }
 0x173   :  { %4215 = vst [vmem:[%s5674_s1 + $0xbe] sm:$0x3] %v2116_v50  ;;  %4216 = vst [vmem:[%s5674_s1 + $0xc0] sm:$0x3] %v2123_v51  ;;  %v2207_v63 = vld [vmem:[#allocation0 + $0x360] sm:$0x3] }
 0x174   :  { %4217 = vst [vmem:[%s5674_s1 + $0xc2] sm:$0x3] %v2130_v52  ;;  %4218 = vst [vmem:[%s5674_s1 + $0xc4] sm:$0x3] %v2137_v53  ;;  %v2214_v0 = vld [vmem:[#allocation0 + $0x368] sm:$0x3] }
 0x175   :  { %4219 = vst [vmem:[%s5674_s1 + $0xc6] sm:$0x3] %v2144_v54  ;;  %4220 = vst [vmem:[%s5674_s1 + $0xc8] sm:$0x3] %v2151_v55  ;;  %v2221_v1 = vld [vmem:[#allocation0 + $0x370] sm:$0x3] }
 0x176   :  { %4221 = vst [vmem:[%s5674_s1 + $0xca] sm:$0x3] %v2158_v56  ;;  %4222 = vst [vmem:[%s5674_s1 + $0xcc] sm:$0x3] %v2165_v57  ;;  %v2228_v2 = vld [vmem:[#allocation0 + $0x378] sm:$0x3] }
 0x177   :  { %4223 = vst [vmem:[%s5674_s1 + $0xce] sm:$0x3] %v2172_v58  ;;  %4224 = vst [vmem:[%s5674_s1 + $0xd0] sm:$0x3] %v2179_v59  ;;  %v2235_v3 = vld [vmem:[#allocation0 + $0x380] sm:$0x3] }
 0x178   :  { %4225 = vst [vmem:[%s5674_s1 + $0xd2] sm:$0x3] %v2186_v60  ;;  %4226 = vst [vmem:[%s5674_s1 + $0xd4] sm:$0x3] %v2193_v61  ;;  %v2242_v4 = vld [vmem:[#allocation0 + $0x388] sm:$0x3] }
 0x179   :  { %4227 = vst [vmem:[%s5674_s1 + $0xd6] sm:$0x3] %v2200_v62  ;;  %4228 = vst [vmem:[%s5674_s1 + $0xd8] sm:$0x3] %v2207_v63  ;;  %v2249_v5 = vld [vmem:[#allocation0 + $0x390] sm:$0x3] }
 0x17a   :  { %4229 = vst [vmem:[%s5674_s1 + $0xda] sm:$0x3] %v2214_v0  ;;  %4230 = vst [vmem:[%s5674_s1 + $0xdc] sm:$0x3] %v2221_v1  ;;  %v2256_v6 = vld [vmem:[#allocation0 + $0x398] sm:$0x3] }
 0x17b   :  { %4231 = vst [vmem:[%s5674_s1 + $0xde] sm:$0x3] %v2228_v2  ;;  %4232 = vst [vmem:[%s5674_s1 + $0xe0] sm:$0x3] %v2235_v3  ;;  %v2263_v7 = vld [vmem:[#allocation0 + $0x3a0] sm:$0x3] }
 0x17c   :  { %4233 = vst [vmem:[%s5674_s1 + $0xe2] sm:$0x3] %v2242_v4  ;;  %4234 = vst [vmem:[%s5674_s1 + $0xe4] sm:$0x3] %v2249_v5  ;;  %v2270_v8 = vld [vmem:[#allocation0 + $0x3a8] sm:$0x3] }
 0x17d   :  { %4235 = vst [vmem:[%s5674_s1 + $0xe6] sm:$0x3] %v2256_v6  ;;  %4236 = vst [vmem:[%s5674_s1 + $0xe8] sm:$0x3] %v2263_v7  ;;  %v2277_v9 = vld [vmem:[#allocation0 + $0x3b0] sm:$0x3] }
 0x17e   :  { %4237 = vst [vmem:[%s5674_s1 + $0xea] sm:$0x3] %v2270_v8  ;;  %v2284_v10 = vld [vmem:[#allocation0 + $0x3b8] sm:$0x3]  ;;  %v2291_v11 = vld [vmem:[#allocation0 + $0x3c0] sm:$0x3] }
 0x17f   :  { %4238 = vst [vmem:[%s5674_s1 + $0xec] sm:$0x3] %v2277_v9  ;;  %4239 = vst [vmem:[%s5674_s1 + $0xee] sm:$0x3] %v2284_v10  ;;  %v2298_v12 = vld [vmem:[#allocation0 + $0x3c8] sm:$0x3] }
 0x180   :  { %4240 = vst [vmem:[%s5674_s1 + $0xf0] sm:$0x3] %v2291_v11  ;;  %v2305_v13 = vld [vmem:[#allocation0 + $0x3d0] sm:$0x3]  ;;  %v2312_v14 = vld [vmem:[#allocation0 + $0x3d8] sm:$0x3] }
 0x181   :  { %4241 = vst [vmem:[%s5674_s1 + $0xf2] sm:$0x3] %v2298_v12  ;;  %4242 = vst [vmem:[%s5674_s1 + $0xf4] sm:$0x3] %v2305_v13  ;;  %v2319_v15 = vld [vmem:[#allocation0 + $0x3e0] sm:$0x3] }
 0x182   :  { %4243 = vst [vmem:[%s5674_s1 + $0xf6] sm:$0x3] %v2312_v14  ;;  %v2326_v16 = vld [vmem:[#allocation0 + $0x3e8] sm:$0x3]  ;;  %v2333_v17 = vld [vmem:[#allocation0 + $0x3f0] sm:$0x3] }
 0x183   :  { %4244 = vst [vmem:[%s5674_s1 + $0xf8] sm:$0x3] %v2319_v15  ;;  %4245 = vst [vmem:[%s5674_s1 + $0xfa] sm:$0x3] %v2326_v16  ;;  %v2340_v18 = vld [vmem:[#allocation0 + $0x3f8] sm:$0x3] }
 0x184   :  { %4246 = vst [vmem:[%s5674_s1 + $0xfc] sm:$0x3] %v2333_v17  ;;  %v2347_v19 = vld [vmem:[#allocation0 + $0x400] sm:$0x3]  ;;  %v2354_v20 = vld [vmem:[#allocation0 + $0x408] sm:$0x3] }
 0x185   :  { %4247 = vst [vmem:[%s5674_s1 + $0xfe] sm:$0x3] %v2340_v18  ;;  %4248 = vst [vmem:[%s5674_s1 + $0x100] sm:$0x3] %v2347_v19  ;;  %v2361_v21 = vld [vmem:[#allocation0 + $0x410] sm:$0x3] }
 0x186   :  { %4249 = vst [vmem:[%s5674_s1 + $0x102] sm:$0x3] %v2354_v20  ;;  %v2368_v22 = vld [vmem:[#allocation0 + $0x418] sm:$0x3]  ;;  %v2375_v23 = vld [vmem:[#allocation0 + $0x420] sm:$0x3] }
 0x187   :  { %4250 = vst [vmem:[%s5674_s1 + $0x104] sm:$0x3] %v2361_v21  ;;  %4251 = vst [vmem:[%s5674_s1 + $0x106] sm:$0x3] %v2368_v22  ;;  %v2382_v24 = vld [vmem:[#allocation0 + $0x428] sm:$0x3] }
 0x188   :  { %4252 = vst [vmem:[%s5674_s1 + $0x108] sm:$0x3] %v2375_v23  ;;  %v2389_v25 = vld [vmem:[#allocation0 + $0x430] sm:$0x3]  ;;  %v2396_v26 = vld [vmem:[#allocation0 + $0x438] sm:$0x3] }
 0x189   :  { %4253 = vst [vmem:[%s5674_s1 + $0x10a] sm:$0x3] %v2382_v24  ;;  %4254 = vst [vmem:[%s5674_s1 + $0x10c] sm:$0x3] %v2389_v25  ;;  %v2403_v27 = vld [vmem:[#allocation0 + $0x440] sm:$0x3] }
 0x18a   :  { %4255 = vst [vmem:[%s5674_s1 + $0x10e] sm:$0x3] %v2396_v26  ;;  %v2410_v28 = vld [vmem:[#allocation0 + $0x448] sm:$0x3]  ;;  %v2417_v29 = vld [vmem:[#allocation0 + $0x450] sm:$0x3] }
 0x18b   :  { %4256 = vst [vmem:[%s5674_s1 + $0x110] sm:$0x3] %v2403_v27  ;;  %4257 = vst [vmem:[%s5674_s1 + $0x112] sm:$0x3] %v2410_v28  ;;  %v2424_v30 = vld [vmem:[#allocation0 + $0x458] sm:$0x3] }
 0x18c   :  { %4258 = vst [vmem:[%s5674_s1 + $0x114] sm:$0x3] %v2417_v29  ;;  %v2431_v31 = vld [vmem:[#allocation0 + $0x460] sm:$0x3]  ;;  %v2438_v32 = vld [vmem:[#allocation0 + $0x468] sm:$0x3] }
 0x18d   :  { %4259 = vst [vmem:[%s5674_s1 + $0x116] sm:$0x3] %v2424_v30  ;;  %4260 = vst [vmem:[%s5674_s1 + $0x118] sm:$0x3] %v2431_v31  ;;  %v2445_v33 = vld [vmem:[#allocation0 + $0x470] sm:$0x3] }
 0x18e   :  { %4261 = vst [vmem:[%s5674_s1 + $0x11a] sm:$0x3] %v2438_v32  ;;  %v2452_v34 = vld [vmem:[#allocation0 + $0x478] sm:$0x3]  ;;  %v2459_v35 = vld [vmem:[#allocation0 + $0x480] sm:$0x3] }
 0x18f   :  { %4262 = vst [vmem:[%s5674_s1 + $0x11c] sm:$0x3] %v2445_v33  ;;  %4263 = vst [vmem:[%s5674_s1 + $0x11e] sm:$0x3] %v2452_v34  ;;  %v2466_v36 = vld [vmem:[#allocation0 + $0x488] sm:$0x3] }
 0x190   :  { %4264 = vst [vmem:[%s5674_s1 + $0x120] sm:$0x3] %v2459_v35  ;;  %v2473_v37 = vld [vmem:[#allocation0 + $0x490] sm:$0x3]  ;;  %v2480_v38 = vld [vmem:[#allocation0 + $0x498] sm:$0x3] }
 0x191   :  { %4265 = vst [vmem:[%s5674_s1 + $0x122] sm:$0x3] %v2466_v36  ;;  %4266 = vst [vmem:[%s5674_s1 + $0x124] sm:$0x3] %v2473_v37  ;;  %v2487_v39 = vld [vmem:[#allocation0 + $0x4a0] sm:$0x3] }
 0x192   :  { %4267 = vst [vmem:[%s5674_s1 + $0x126] sm:$0x3] %v2480_v38  ;;  %v2494_v40 = vld [vmem:[#allocation0 + $0x4a8] sm:$0x3]  ;;  %v2501_v41 = vld [vmem:[#allocation0 + $0x4b0] sm:$0x3] }
 0x193   :  { %4268 = vst [vmem:[%s5674_s1 + $0x128] sm:$0x3] %v2487_v39  ;;  %4269 = vst [vmem:[%s5674_s1 + $0x12a] sm:$0x3] %v2494_v40  ;;  %v2508_v42 = vld [vmem:[#allocation0 + $0x4b8] sm:$0x3] }
 0x194   :  { %4270 = vst [vmem:[%s5674_s1 + $0x12c] sm:$0x3] %v2501_v41  ;;  %v2515_v43 = vld [vmem:[#allocation0 + $0x4c0] sm:$0x3]  ;;  %v2522_v44 = vld [vmem:[#allocation0 + $0x4c8] sm:$0x3] }
 0x195   :  { %4271 = vst [vmem:[%s5674_s1 + $0x12e] sm:$0x3] %v2508_v42  ;;  %4272 = vst [vmem:[%s5674_s1 + $0x130] sm:$0x3] %v2515_v43  ;;  %v2529_v45 = vld [vmem:[#allocation0 + $0x4d0] sm:$0x3] }
 0x196   :  { %4273 = vst [vmem:[%s5674_s1 + $0x132] sm:$0x3] %v2522_v44  ;;  %v2536_v46 = vld [vmem:[#allocation0 + $0x4d8] sm:$0x3]  ;;  %v2543_v47 = vld [vmem:[#allocation0 + $0x4e0] sm:$0x3] }
 0x197   :  { %4274 = vst [vmem:[%s5674_s1 + $0x134] sm:$0x3] %v2529_v45  ;;  %4275 = vst [vmem:[%s5674_s1 + $0x136] sm:$0x3] %v2536_v46  ;;  %v2550_v48 = vld [vmem:[#allocation0 + $0x4e8] sm:$0x3] }
 0x198   :  { %4276 = vst [vmem:[%s5674_s1 + $0x138] sm:$0x3] %v2543_v47  ;;  %v2557_v49 = vld [vmem:[#allocation0 + $0x4f0] sm:$0x3]  ;;  %v2564_v50 = vld [vmem:[#allocation0 + $0x4f8] sm:$0x3] }
 0x199   :  { %4277 = vst [vmem:[%s5674_s1 + $0x13a] sm:$0x3] %v2550_v48  ;;  %4278 = vst [vmem:[%s5674_s1 + $0x13c] sm:$0x3] %v2557_v49  ;;  %v2571_v51 = vld [vmem:[#allocation0 + $0x500] sm:$0x3] }
 0x19a   :  { %4279 = vst [vmem:[%s5674_s1 + $0x13e] sm:$0x3] %v2564_v50  ;;  %v2578_v52 = vld [vmem:[#allocation0 + $0x508] sm:$0x3]  ;;  %v2585_v53 = vld [vmem:[#allocation0 + $0x510] sm:$0x3] }
 0x19b   :  { %4280 = vst [vmem:[%s5674_s1 + $0x140] sm:$0x3] %v2571_v51  ;;  %4281 = vst [vmem:[%s5674_s1 + $0x142] sm:$0x3] %v2578_v52  ;;  %v2592_v54 = vld [vmem:[#allocation0 + $0x518] sm:$0x3] }
 0x19c   :  { %4282 = vst [vmem:[%s5674_s1 + $0x144] sm:$0x3] %v2585_v53  ;;  %v2599_v55 = vld [vmem:[#allocation0 + $0x520] sm:$0x3]  ;;  %v2606_v56 = vld [vmem:[#allocation0 + $0x528] sm:$0x3] }
 0x19d   :  { %4283 = vst [vmem:[%s5674_s1 + $0x146] sm:$0x3] %v2592_v54  ;;  %4284 = vst [vmem:[%s5674_s1 + $0x148] sm:$0x3] %v2599_v55  ;;  %v2613_v57 = vld [vmem:[#allocation0 + $0x530] sm:$0x3] }
 0x19e   :  { %4285 = vst [vmem:[%s5674_s1 + $0x14a] sm:$0x3] %v2606_v56  ;;  %v2620_v58 = vld [vmem:[#allocation0 + $0x538] sm:$0x3]  ;;  %v2627_v59 = vld [vmem:[#allocation0 + $0x540] sm:$0x3] }
 0x19f   :  { %4286 = vst [vmem:[%s5674_s1 + $0x14c] sm:$0x3] %v2613_v57  ;;  %4287 = vst [vmem:[%s5674_s1 + $0x14e] sm:$0x3] %v2620_v58  ;;  %v2634_v60 = vld [vmem:[#allocation0 + $0x548] sm:$0x3] }
 0x1a0   :  { %4288 = vst [vmem:[%s5674_s1 + $0x150] sm:$0x3] %v2627_v59  ;;  %v2641_v61 = vld [vmem:[#allocation0 + $0x550] sm:$0x3]  ;;  %v2648_v62 = vld [vmem:[#allocation0 + $0x558] sm:$0x3] }
 0x1a1   :  { %4289 = vst [vmem:[%s5674_s1 + $0x152] sm:$0x3] %v2634_v60  ;;  %4290 = vst [vmem:[%s5674_s1 + $0x154] sm:$0x3] %v2641_v61  ;;  %v2655_v63 = vld [vmem:[#allocation0 + $0x560] sm:$0x3] }
 0x1a2   :  { %4291 = vst [vmem:[%s5674_s1 + $0x156] sm:$0x3] %v2648_v62  ;;  %v2662_v0 = vld [vmem:[#allocation0 + $0x568] sm:$0x3]  ;;  %v2669_v1 = vld [vmem:[#allocation0 + $0x570] sm:$0x3] }
 0x1a3   :  { %4292 = vst [vmem:[%s5674_s1 + $0x158] sm:$0x3] %v2655_v63  ;;  %4293 = vst [vmem:[%s5674_s1 + $0x15a] sm:$0x3] %v2662_v0  ;;  %v2676_v2 = vld [vmem:[#allocation0 + $0x578] sm:$0x3] }
 0x1a4   :  { %4294 = vst [vmem:[%s5674_s1 + $0x15c] sm:$0x3] %v2669_v1  ;;  %v2683_v3 = vld [vmem:[#allocation0 + $0x580] sm:$0x3]  ;;  %v2690_v4 = vld [vmem:[#allocation0 + $0x588] sm:$0x3] }
 0x1a5   :  { %4295 = vst [vmem:[%s5674_s1 + $0x15e] sm:$0x3] %v2676_v2  ;;  %4296 = vst [vmem:[%s5674_s1 + $0x160] sm:$0x3] %v2683_v3  ;;  %v2697_v5 = vld [vmem:[#allocation0 + $0x590] sm:$0x3] }
 0x1a6   :  { %4297 = vst [vmem:[%s5674_s1 + $0x162] sm:$0x3] %v2690_v4  ;;  %v2704_v6 = vld [vmem:[#allocation0 + $0x598] sm:$0x3]  ;;  %v2711_v7 = vld [vmem:[#allocation0 + $0x5a0] sm:$0x3] }
 0x1a7   :  { %4298 = vst [vmem:[%s5674_s1 + $0x164] sm:$0x3] %v2697_v5  ;;  %4299 = vst [vmem:[%s5674_s1 + $0x166] sm:$0x3] %v2704_v6  ;;  %v2718_v8 = vld [vmem:[#allocation0 + $0x5a8] sm:$0x3] }
 0x1a8   :  { %4300 = vst [vmem:[%s5674_s1 + $0x168] sm:$0x3] %v2711_v7  ;;  %v2725_v9 = vld [vmem:[#allocation0 + $0x5b0] sm:$0x3]  ;;  %v2732_v10 = vld [vmem:[#allocation0 + $0x5b8] sm:$0x3] }
 0x1a9   :  { %4301 = vst [vmem:[%s5674_s1 + $0x16a] sm:$0x3] %v2718_v8  ;;  %4302 = vst [vmem:[%s5674_s1 + $0x16c] sm:$0x3] %v2725_v9  ;;  %v2739_v11 = vld [vmem:[#allocation0 + $0x5c0] sm:$0x3] }
 0x1aa   :  { %4303 = vst [vmem:[%s5674_s1 + $0x16e] sm:$0x3] %v2732_v10  ;;  %v2746_v12 = vld [vmem:[#allocation0 + $0x5c8] sm:$0x3]  ;;  %v2753_v13 = vld [vmem:[#allocation0 + $0x5d0] sm:$0x3] }
 0x1ab   :  { %4304 = vst [vmem:[%s5674_s1 + $0x170] sm:$0x3] %v2739_v11  ;;  %4305 = vst [vmem:[%s5674_s1 + $0x172] sm:$0x3] %v2746_v12  ;;  %v2760_v14 = vld [vmem:[#allocation0 + $0x5d8] sm:$0x3] }
 0x1ac   :  { %4306 = vst [vmem:[%s5674_s1 + $0x174] sm:$0x3] %v2753_v13  ;;  %v2767_v15 = vld [vmem:[#allocation0 + $0x5e0] sm:$0x3]  ;;  %v2774_v16 = vld [vmem:[#allocation0 + $0x5e8] sm:$0x3] }
 0x1ad   :  { %4307 = vst [vmem:[%s5674_s1 + $0x176] sm:$0x3] %v2760_v14  ;;  %4308 = vst [vmem:[%s5674_s1 + $0x178] sm:$0x3] %v2767_v15  ;;  %v2781_v17 = vld [vmem:[#allocation0 + $0x5f0] sm:$0x3] }
 0x1ae   :  { %4309 = vst [vmem:[%s5674_s1 + $0x17a] sm:$0x3] %v2774_v16  ;;  %v2788_v18 = vld [vmem:[#allocation0 + $0x5f8] sm:$0x3]  ;;  %v2795_v19 = vld [vmem:[#allocation0 + $0x600] sm:$0x3] }
 0x1af   :  { %4310 = vst [vmem:[%s5674_s1 + $0x17c] sm:$0x3] %v2781_v17  ;;  %4311 = vst [vmem:[%s5674_s1 + $0x17e] sm:$0x3] %v2788_v18  ;;  %v2802_v20 = vld [vmem:[#allocation0 + $0x608] sm:$0x3] }
 0x1b0   :  { %4312 = vst [vmem:[%s5674_s1 + $0x180] sm:$0x3] %v2795_v19  ;;  %v2809_v21 = vld [vmem:[#allocation0 + $0x610] sm:$0x3]  ;;  %v2816_v22 = vld [vmem:[#allocation0 + $0x618] sm:$0x3] }
 0x1b1   :  { %4313 = vst [vmem:[%s5674_s1 + $0x182] sm:$0x3] %v2802_v20  ;;  %4314 = vst [vmem:[%s5674_s1 + $0x184] sm:$0x3] %v2809_v21  ;;  %v2823_v23 = vld [vmem:[#allocation0 + $0x620] sm:$0x3] }
 0x1b2   :  { %4315 = vst [vmem:[%s5674_s1 + $0x186] sm:$0x3] %v2816_v22  ;;  %v2830_v24 = vld [vmem:[#allocation0 + $0x628] sm:$0x3]  ;;  %v2837_v25 = vld [vmem:[#allocation0 + $0x630] sm:$0x3] }
 0x1b3   :  { %4316 = vst [vmem:[%s5674_s1 + $0x188] sm:$0x3] %v2823_v23  ;;  %4317 = vst [vmem:[%s5674_s1 + $0x18a] sm:$0x3] %v2830_v24  ;;  %v2844_v26 = vld [vmem:[#allocation0 + $0x638] sm:$0x3] }
 0x1b4   :  { %4318 = vst [vmem:[%s5674_s1 + $0x18c] sm:$0x3] %v2837_v25  ;;  %v2851_v27 = vld [vmem:[#allocation0 + $0x640] sm:$0x3]  ;;  %v2858_v28 = vld [vmem:[#allocation0 + $0x648] sm:$0x3] }
 0x1b5   :  { %4319 = vst [vmem:[%s5674_s1 + $0x18e] sm:$0x3] %v2844_v26  ;;  %4320 = vst [vmem:[%s5674_s1 + $0x190] sm:$0x3] %v2851_v27  ;;  %v2865_v29 = vld [vmem:[#allocation0 + $0x650] sm:$0x3] }
 0x1b6   :  { %4321 = vst [vmem:[%s5674_s1 + $0x192] sm:$0x3] %v2858_v28  ;;  %v2872_v30 = vld [vmem:[#allocation0 + $0x658] sm:$0x3]  ;;  %v2879_v31 = vld [vmem:[#allocation0 + $0x660] sm:$0x3] }
 0x1b7   :  { %4322 = vst [vmem:[%s5674_s1 + $0x194] sm:$0x3] %v2865_v29  ;;  %4323 = vst [vmem:[%s5674_s1 + $0x196] sm:$0x3] %v2872_v30  ;;  %v2886_v32 = vld [vmem:[#allocation0 + $0x668] sm:$0x3] }
 0x1b8   :  { %4324 = vst [vmem:[%s5674_s1 + $0x198] sm:$0x3] %v2879_v31  ;;  %v2893_v33 = vld [vmem:[#allocation0 + $0x670] sm:$0x3]  ;;  %v2900_v34 = vld [vmem:[#allocation0 + $0x678] sm:$0x3] }
 0x1b9   :  { %4325 = vst [vmem:[%s5674_s1 + $0x19a] sm:$0x3] %v2886_v32  ;;  %4326 = vst [vmem:[%s5674_s1 + $0x19c] sm:$0x3] %v2893_v33  ;;  %v2907_v35 = vld [vmem:[#allocation0 + $0x680] sm:$0x3] }
 0x1ba   :  { %4327 = vst [vmem:[%s5674_s1 + $0x19e] sm:$0x3] %v2900_v34  ;;  %v2914_v36 = vld [vmem:[#allocation0 + $0x688] sm:$0x3]  ;;  %v2921_v37 = vld [vmem:[#allocation0 + $0x690] sm:$0x3] }
 0x1bb   :  { %4328 = vst [vmem:[%s5674_s1 + $0x1a0] sm:$0x3] %v2907_v35  ;;  %4329 = vst [vmem:[%s5674_s1 + $0x1a2] sm:$0x3] %v2914_v36  ;;  %v2928_v38 = vld [vmem:[#allocation0 + $0x698] sm:$0x3] }
 0x1bc   :  { %4330 = vst [vmem:[%s5674_s1 + $0x1a4] sm:$0x3] %v2921_v37  ;;  %v2935_v39 = vld [vmem:[#allocation0 + $0x6a0] sm:$0x3]  ;;  %v2942_v40 = vld [vmem:[#allocation0 + $0x6a8] sm:$0x3] }
 0x1bd   :  { %4331 = vst [vmem:[%s5674_s1 + $0x1a6] sm:$0x3] %v2928_v38  ;;  %4332 = vst [vmem:[%s5674_s1 + $0x1a8] sm:$0x3] %v2935_v39  ;;  %v2949_v41 = vld [vmem:[#allocation0 + $0x6b0] sm:$0x3] }
 0x1be   :  { %4333 = vst [vmem:[%s5674_s1 + $0x1aa] sm:$0x3] %v2942_v40  ;;  %v2956_v42 = vld [vmem:[#allocation0 + $0x6b8] sm:$0x3]  ;;  %v2963_v43 = vld [vmem:[#allocation0 + $0x6c0] sm:$0x3] }
 0x1bf   :  { %4334 = vst [vmem:[%s5674_s1 + $0x1ac] sm:$0x3] %v2949_v41  ;;  %4335 = vst [vmem:[%s5674_s1 + $0x1ae] sm:$0x3] %v2956_v42  ;;  %v2970_v44 = vld [vmem:[#allocation0 + $0x6c8] sm:$0x3] }
 0x1c0   :  { %4336 = vst [vmem:[%s5674_s1 + $0x1b0] sm:$0x3] %v2963_v43  ;;  %v2977_v45 = vld [vmem:[#allocation0 + $0x6d0] sm:$0x3]  ;;  %v2984_v46 = vld [vmem:[#allocation0 + $0x6d8] sm:$0x3] }
 0x1c1   :  { %4337 = vst [vmem:[%s5674_s1 + $0x1b2] sm:$0x3] %v2970_v44  ;;  %4338 = vst [vmem:[%s5674_s1 + $0x1b4] sm:$0x3] %v2977_v45  ;;  %v2991_v47 = vld [vmem:[#allocation0 + $0x6e0] sm:$0x3] }
 0x1c2   :  { %4339 = vst [vmem:[%s5674_s1 + $0x1b6] sm:$0x3] %v2984_v46  ;;  %v2998_v48 = vld [vmem:[#allocation0 + $0x6e8] sm:$0x3]  ;;  %v3005_v49 = vld [vmem:[#allocation0 + $0x6f0] sm:$0x3] }
 0x1c3   :  { %4340 = vst [vmem:[%s5674_s1 + $0x1b8] sm:$0x3] %v2991_v47  ;;  %4341 = vst [vmem:[%s5674_s1 + $0x1ba] sm:$0x3] %v2998_v48  ;;  %v3012_v50 = vld [vmem:[#allocation0 + $0x6f8] sm:$0x3] }
 0x1c4   :  { %4342 = vst [vmem:[%s5674_s1 + $0x1bc] sm:$0x3] %v3005_v49  ;;  %v3019_v51 = vld [vmem:[#allocation0 + $0x700] sm:$0x3]  ;;  %v3026_v52 = vld [vmem:[#allocation0 + $0x708] sm:$0x3] }
 0x1c5   :  { %4343 = vst [vmem:[%s5674_s1 + $0x1be] sm:$0x3] %v3012_v50  ;;  %4344 = vst [vmem:[%s5674_s1 + $0x1c0] sm:$0x3] %v3019_v51  ;;  %v3033_v53 = vld [vmem:[#allocation0 + $0x710] sm:$0x3] }
 0x1c6   :  { %4345 = vst [vmem:[%s5674_s1 + $0x1c2] sm:$0x3] %v3026_v52  ;;  %v3040_v54 = vld [vmem:[#allocation0 + $0x718] sm:$0x3]  ;;  %v3047_v55 = vld [vmem:[#allocation0 + $0x720] sm:$0x3] }
 0x1c7   :  { %4346 = vst [vmem:[%s5674_s1 + $0x1c4] sm:$0x3] %v3033_v53  ;;  %4347 = vst [vmem:[%s5674_s1 + $0x1c6] sm:$0x3] %v3040_v54  ;;  %v3054_v56 = vld [vmem:[#allocation0 + $0x728] sm:$0x3] }
 0x1c8   :  { %4348 = vst [vmem:[%s5674_s1 + $0x1c8] sm:$0x3] %v3047_v55  ;;  %v3061_v57 = vld [vmem:[#allocation0 + $0x730] sm:$0x3]  ;;  %v3068_v58 = vld [vmem:[#allocation0 + $0x738] sm:$0x3] }
 0x1c9   :  { %4349 = vst [vmem:[%s5674_s1 + $0x1ca] sm:$0x3] %v3054_v56  ;;  %4350 = vst [vmem:[%s5674_s1 + $0x1cc] sm:$0x3] %v3061_v57  ;;  %v3075_v59 = vld [vmem:[#allocation0 + $0x740] sm:$0x3] }
 0x1ca   :  { %4351 = vst [vmem:[%s5674_s1 + $0x1ce] sm:$0x3] %v3068_v58  ;;  %v3082_v60 = vld [vmem:[#allocation0 + $0x748] sm:$0x3]  ;;  %v3089_v61 = vld [vmem:[#allocation0 + $0x750] sm:$0x3] }
 0x1cb   :  { %4352 = vst [vmem:[%s5674_s1 + $0x1d0] sm:$0x3] %v3075_v59  ;;  %4353 = vst [vmem:[%s5674_s1 + $0x1d2] sm:$0x3] %v3082_v60  ;;  %v3096_v62 = vld [vmem:[#allocation0 + $0x758] sm:$0x3] }
 0x1cc   :  { %4354 = vst [vmem:[%s5674_s1 + $0x1d4] sm:$0x3] %v3089_v61  ;;  %v3103_v63 = vld [vmem:[#allocation0 + $0x760] sm:$0x3]  ;;  %v3110_v0 = vld [vmem:[#allocation0 + $0x768] sm:$0x3] }
 0x1cd   :  { %4355 = vst [vmem:[%s5674_s1 + $0x1d6] sm:$0x3] %v3096_v62  ;;  %4356 = vst [vmem:[%s5674_s1 + $0x1d8] sm:$0x3] %v3103_v63  ;;  %v3117_v1 = vld [vmem:[#allocation0 + $0x770] sm:$0x3] }
 0x1ce   :  { %4357 = vst [vmem:[%s5674_s1 + $0x1da] sm:$0x3] %v3110_v0  ;;  %v3124_v2 = vld [vmem:[#allocation0 + $0x778] sm:$0x3]  ;;  %v3131_v3 = vld [vmem:[#allocation0 + $0x780] sm:$0x3] }
 0x1cf   :  { %4358 = vst [vmem:[%s5674_s1 + $0x1dc] sm:$0x3] %v3117_v1  ;;  %4359 = vst [vmem:[%s5674_s1 + $0x1de] sm:$0x3] %v3124_v2  ;;  %v3138_v4 = vld [vmem:[#allocation0 + $0x788] sm:$0x3] }
 0x1d0   :  { %4360 = vst [vmem:[%s5674_s1 + $0x1e0] sm:$0x3] %v3131_v3  ;;  %v3145_v5 = vld [vmem:[#allocation0 + $0x790] sm:$0x3]  ;;  %v3152_v6 = vld [vmem:[#allocation0 + $0x798] sm:$0x3] }
 0x1d1   :  { %4361 = vst [vmem:[%s5674_s1 + $0x1e2] sm:$0x3] %v3138_v4  ;;  %4362 = vst [vmem:[%s5674_s1 + $0x1e4] sm:$0x3] %v3145_v5  ;;  %v3159_v7 = vld [vmem:[#allocation0 + $0x7a0] sm:$0x3] }
 0x1d2   :  { %4363 = vst [vmem:[%s5674_s1 + $0x1e6] sm:$0x3] %v3152_v6  ;;  %v3166_v8 = vld [vmem:[#allocation0 + $0x7a8] sm:$0x3]  ;;  %v3173_v9 = vld [vmem:[#allocation0 + $0x7b0] sm:$0x3] }
 0x1d3   :  { %4364 = vst [vmem:[%s5674_s1 + $0x1e8] sm:$0x3] %v3159_v7  ;;  %4365 = vst [vmem:[%s5674_s1 + $0x1ea] sm:$0x3] %v3166_v8  ;;  %v3180_v10 = vld [vmem:[#allocation0 + $0x7b8] sm:$0x3] }
 0x1d4   :  { %4366 = vst [vmem:[%s5674_s1 + $0x1ec] sm:$0x3] %v3173_v9  ;;  %v3187_v11 = vld [vmem:[#allocation0 + $0x7c0] sm:$0x3]  ;;  %v3194_v12 = vld [vmem:[#allocation0 + $0x7c8] sm:$0x3] }
 0x1d5   :  { %4367 = vst [vmem:[%s5674_s1 + $0x1ee] sm:$0x3] %v3180_v10  ;;  %4368 = vst [vmem:[%s5674_s1 + $0x1f0] sm:$0x3] %v3187_v11  ;;  %v3201_v13 = vld [vmem:[#allocation0 + $0x7d0] sm:$0x3] }
 0x1d6   :  { %4369 = vst [vmem:[%s5674_s1 + $0x1f2] sm:$0x3] %v3194_v12  ;;  %v3208_v14 = vld [vmem:[#allocation0 + $0x7d8] sm:$0x3]  ;;  %v3215_v15 = vld [vmem:[#allocation0 + $0x7e0] sm:$0x3] }
 0x1d7   :  { %4370 = vst [vmem:[%s5674_s1 + $0x1f4] sm:$0x3] %v3201_v13  ;;  %4371 = vst [vmem:[%s5674_s1 + $0x1f6] sm:$0x3] %v3208_v14  ;;  %v3222_v16 = vld [vmem:[#allocation0 + $0x7e8] sm:$0x3] }
 0x1d8   :  { %4372 = vst [vmem:[%s5674_s1 + $0x1f8] sm:$0x3] %v3215_v15  ;;  %v3229_v17 = vld [vmem:[#allocation0 + $0x7f0] sm:$0x3]  ;;  %v3236_v18 = vld [vmem:[#allocation0 + $0x7f8] sm:$0x3] }
 0x1d9   :  { %4373 = vst [vmem:[%s5674_s1 + $0x1fa] sm:$0x3] %v3222_v16  ;;  %4374 = vst [vmem:[%s5674_s1 + $0x1fc] sm:$0x3] %v3229_v17  ;;  %v3243_v19 = vld [vmem:[#allocation0 + $0x800] sm:$0x3] }
 0x1da   :  { %4375 = vst [vmem:[%s5674_s1 + $0x1fe] sm:$0x3] %v3236_v18  ;;  %v3250_v20 = vld [vmem:[#allocation0 + $0x808] sm:$0x3]  ;;  %v3257_v21 = vld [vmem:[#allocation0 + $0x810] sm:$0x3] }
 0x1db   :  { %4376 = vst [vmem:[%s5674_s1 + $0x200] sm:$0x3] %v3243_v19  ;;  %4377 = vst [vmem:[%s5674_s1 + $0x202] sm:$0x3] %v3250_v20  ;;  %v3264_v22 = vld [vmem:[#allocation0 + $0x818] sm:$0x3] }
 0x1dc   :  { %4378 = vst [vmem:[%s5674_s1 + $0x204] sm:$0x3] %v3257_v21  ;;  %v3271_v23 = vld [vmem:[#allocation0 + $0x820] sm:$0x3]  ;;  %v3278_v24 = vld [vmem:[#allocation0 + $0x828] sm:$0x3] }
 0x1dd   :  { %4379 = vst [vmem:[%s5674_s1 + $0x206] sm:$0x3] %v3264_v22  ;;  %4380 = vst [vmem:[%s5674_s1 + $0x208] sm:$0x3] %v3271_v23  ;;  %v3285_v25 = vld [vmem:[#allocation0 + $0x830] sm:$0x3] }
 0x1de   :  { %4381 = vst [vmem:[%s5674_s1 + $0x20a] sm:$0x3] %v3278_v24  ;;  %v3292_v26 = vld [vmem:[#allocation0 + $0x838] sm:$0x3]  ;;  %v3299_v27 = vld [vmem:[#allocation0 + $0x840] sm:$0x3] }
 0x1df   :  { %4382 = vst [vmem:[%s5674_s1 + $0x20c] sm:$0x3] %v3285_v25  ;;  %4383 = vst [vmem:[%s5674_s1 + $0x20e] sm:$0x3] %v3292_v26  ;;  %v3306_v28 = vld [vmem:[#allocation0 + $0x848] sm:$0x3] }
 0x1e0   :  { %4384 = vst [vmem:[%s5674_s1 + $0x210] sm:$0x3] %v3299_v27  ;;  %v3313_v29 = vld [vmem:[#allocation0 + $0x850] sm:$0x3]  ;;  %v3320_v30 = vld [vmem:[#allocation0 + $0x858] sm:$0x3] }
 0x1e1   :  { %4385 = vst [vmem:[%s5674_s1 + $0x212] sm:$0x3] %v3306_v28  ;;  %4386 = vst [vmem:[%s5674_s1 + $0x214] sm:$0x3] %v3313_v29  ;;  %v3327_v31 = vld [vmem:[#allocation0 + $0x860] sm:$0x3] }
 0x1e2   :  { %4387 = vst [vmem:[%s5674_s1 + $0x216] sm:$0x3] %v3320_v30  ;;  %v3334_v32 = vld [vmem:[#allocation0 + $0x868] sm:$0x3]  ;;  %v3341_v33 = vld [vmem:[#allocation0 + $0x870] sm:$0x3] }
 0x1e3   :  { %4388 = vst [vmem:[%s5674_s1 + $0x218] sm:$0x3] %v3327_v31  ;;  %4389 = vst [vmem:[%s5674_s1 + $0x21a] sm:$0x3] %v3334_v32  ;;  %v3348_v34 = vld [vmem:[#allocation0 + $0x878] sm:$0x3] }
 0x1e4   :  { %4390 = vst [vmem:[%s5674_s1 + $0x21c] sm:$0x3] %v3341_v33  ;;  %v3355_v35 = vld [vmem:[#allocation0 + $0x880] sm:$0x3]  ;;  %v3362_v36 = vld [vmem:[#allocation0 + $0x888] sm:$0x3] }
 0x1e5   :  { %4391 = vst [vmem:[%s5674_s1 + $0x21e] sm:$0x3] %v3348_v34  ;;  %4392 = vst [vmem:[%s5674_s1 + $0x220] sm:$0x3] %v3355_v35  ;;  %v3369_v37 = vld [vmem:[#allocation0 + $0x890] sm:$0x3] }
 0x1e6   :  { %4393 = vst [vmem:[%s5674_s1 + $0x222] sm:$0x3] %v3362_v36  ;;  %v3376_v38 = vld [vmem:[#allocation0 + $0x898] sm:$0x3]  ;;  %v3383_v39 = vld [vmem:[#allocation0 + $0x8a0] sm:$0x3] }
 0x1e7   :  { %4394 = vst [vmem:[%s5674_s1 + $0x224] sm:$0x3] %v3369_v37  ;;  %4395 = vst [vmem:[%s5674_s1 + $0x226] sm:$0x3] %v3376_v38  ;;  %v3390_v40 = vld [vmem:[#allocation0 + $0x8a8] sm:$0x3] }
 0x1e8   :  { %4396 = vst [vmem:[%s5674_s1 + $0x228] sm:$0x3] %v3383_v39  ;;  %v3397_v41 = vld [vmem:[#allocation0 + $0x8b0] sm:$0x3]  ;;  %v3404_v42 = vld [vmem:[#allocation0 + $0x8b8] sm:$0x3] }
 0x1e9   :  { %4397 = vst [vmem:[%s5674_s1 + $0x22a] sm:$0x3] %v3390_v40  ;;  %4398 = vst [vmem:[%s5674_s1 + $0x22c] sm:$0x3] %v3397_v41  ;;  %v3411_v43 = vld [vmem:[#allocation0 + $0x8c0] sm:$0x3] }
 0x1ea   :  { %4399 = vst [vmem:[%s5674_s1 + $0x22e] sm:$0x3] %v3404_v42  ;;  %v3418_v44 = vld [vmem:[#allocation0 + $0x8c8] sm:$0x3]  ;;  %v3425_v45 = vld [vmem:[#allocation0 + $0x8d0] sm:$0x3] }
 0x1eb   :  { %4400 = vst [vmem:[%s5674_s1 + $0x230] sm:$0x3] %v3411_v43  ;;  %4401 = vst [vmem:[%s5674_s1 + $0x232] sm:$0x3] %v3418_v44  ;;  %v3432_v46 = vld [vmem:[#allocation0 + $0x8d8] sm:$0x3] }
 0x1ec   :  { %4402 = vst [vmem:[%s5674_s1 + $0x234] sm:$0x3] %v3425_v45  ;;  %v3439_v47 = vld [vmem:[#allocation0 + $0x8e0] sm:$0x3]  ;;  %v3446_v48 = vld [vmem:[#allocation0 + $0x8e8] sm:$0x3] }
 0x1ed   :  { %4403 = vst [vmem:[%s5674_s1 + $0x236] sm:$0x3] %v3432_v46  ;;  %4404 = vst [vmem:[%s5674_s1 + $0x238] sm:$0x3] %v3439_v47  ;;  %v3453_v49 = vld [vmem:[#allocation0 + $0x8f0] sm:$0x3] }
 0x1ee   :  { %4405 = vst [vmem:[%s5674_s1 + $0x23a] sm:$0x3] %v3446_v48  ;;  %v3460_v50 = vld [vmem:[#allocation0 + $0x8f8] sm:$0x3]  ;;  %v3467_v51 = vld [vmem:[#allocation0 + $0x900] sm:$0x3] }
 0x1ef   :  { %4406 = vst [vmem:[%s5674_s1 + $0x23c] sm:$0x3] %v3453_v49  ;;  %4407 = vst [vmem:[%s5674_s1 + $0x23e] sm:$0x3] %v3460_v50  ;;  %v3474_v52 = vld [vmem:[#allocation0 + $0x908] sm:$0x3] }
 0x1f0   :  { %4408 = vst [vmem:[%s5674_s1 + $0x240] sm:$0x3] %v3467_v51  ;;  %v3481_v53 = vld [vmem:[#allocation0 + $0x910] sm:$0x3]  ;;  %v3488_v54 = vld [vmem:[#allocation0 + $0x918] sm:$0x3] }
 0x1f1   :  { %4409 = vst [vmem:[%s5674_s1 + $0x242] sm:$0x3] %v3474_v52  ;;  %4410 = vst [vmem:[%s5674_s1 + $0x244] sm:$0x3] %v3481_v53  ;;  %v3495_v55 = vld [vmem:[#allocation0 + $0x920] sm:$0x3] }
 0x1f2   :  { %4411 = vst [vmem:[%s5674_s1 + $0x246] sm:$0x3] %v3488_v54  ;;  %v3502_v56 = vld [vmem:[#allocation0 + $0x928] sm:$0x3]  ;;  %v3509_v57 = vld [vmem:[#allocation0 + $0x930] sm:$0x3] }
 0x1f3   :  { %4412 = vst [vmem:[%s5674_s1 + $0x248] sm:$0x3] %v3495_v55  ;;  %4413 = vst [vmem:[%s5674_s1 + $0x24a] sm:$0x3] %v3502_v56  ;;  %v3516_v58 = vld [vmem:[#allocation0 + $0x938] sm:$0x3] }
 0x1f4   :  { %4414 = vst [vmem:[%s5674_s1 + $0x24c] sm:$0x3] %v3509_v57  ;;  %v3523_v59 = vld [vmem:[#allocation0 + $0x940] sm:$0x3]  ;;  %v3530_v60 = vld [vmem:[#allocation0 + $0x948] sm:$0x3] }
 0x1f5   :  { %4415 = vst [vmem:[%s5674_s1 + $0x24e] sm:$0x3] %v3516_v58  ;;  %4416 = vst [vmem:[%s5674_s1 + $0x250] sm:$0x3] %v3523_v59  ;;  %v3537_v61 = vld [vmem:[#allocation0 + $0x950] sm:$0x3] }
 0x1f6   :  { %4417 = vst [vmem:[%s5674_s1 + $0x252] sm:$0x3] %v3530_v60  ;;  %v3544_v62 = vld [vmem:[#allocation0 + $0x958] sm:$0x3]  ;;  %v3551_v63 = vld [vmem:[#allocation0 + $0x960] sm:$0x3] }
 0x1f7   :  { %4418 = vst [vmem:[%s5674_s1 + $0x254] sm:$0x3] %v3537_v61  ;;  %4419 = vst [vmem:[%s5674_s1 + $0x256] sm:$0x3] %v3544_v62  ;;  %v3558_v0 = vld [vmem:[#allocation0 + $0x968] sm:$0x3] }
 0x1f8   :  { %4420 = vst [vmem:[%s5674_s1 + $0x258] sm:$0x3] %v3551_v63  ;;  %v3565_v1 = vld [vmem:[#allocation0 + $0x970] sm:$0x3]  ;;  %v3572_v2 = vld [vmem:[#allocation0 + $0x978] sm:$0x3] }
 0x1f9   :  { %4421 = vst [vmem:[%s5674_s1 + $0x25a] sm:$0x3] %v3558_v0  ;;  %4422 = vst [vmem:[%s5674_s1 + $0x25c] sm:$0x3] %v3565_v1  ;;  %v3579_v3 = vld [vmem:[#allocation0 + $0x980] sm:$0x3] }
 0x1fa   :  { %4423 = vst [vmem:[%s5674_s1 + $0x25e] sm:$0x3] %v3572_v2  ;;  %v3586_v4 = vld [vmem:[#allocation0 + $0x988] sm:$0x3]  ;;  %v3593_v5 = vld [vmem:[#allocation0 + $0x990] sm:$0x3] }
 0x1fb   :  { %4424 = vst [vmem:[%s5674_s1 + $0x260] sm:$0x3] %v3579_v3  ;;  %4425 = vst [vmem:[%s5674_s1 + $0x262] sm:$0x3] %v3586_v4  ;;  %v3600_v6 = vld [vmem:[#allocation0 + $0x998] sm:$0x3] }
 0x1fc   :  { %4426 = vst [vmem:[%s5674_s1 + $0x264] sm:$0x3] %v3593_v5  ;;  %v3607_v7 = vld [vmem:[#allocation0 + $0x9a0] sm:$0x3]  ;;  %v3614_v8 = vld [vmem:[#allocation0 + $0x9a8] sm:$0x3] }
 0x1fd   :  { %4427 = vst [vmem:[%s5674_s1 + $0x266] sm:$0x3] %v3600_v6  ;;  %4428 = vst [vmem:[%s5674_s1 + $0x268] sm:$0x3] %v3607_v7  ;;  %v3621_v9 = vld [vmem:[#allocation0 + $0x9b0] sm:$0x3] }
 0x1fe   :  { %4429 = vst [vmem:[%s5674_s1 + $0x26a] sm:$0x3] %v3614_v8  ;;  %v3628_v10 = vld [vmem:[#allocation0 + $0x9b8] sm:$0x3]  ;;  %v3635_v11 = vld [vmem:[#allocation0 + $0x9c0] sm:$0x3] }
 0x1ff   :  { %4430 = vst [vmem:[%s5674_s1 + $0x26c] sm:$0x3] %v3621_v9  ;;  %4431 = vst [vmem:[%s5674_s1 + $0x26e] sm:$0x3] %v3628_v10  ;;  %v3642_v12 = vld [vmem:[#allocation0 + $0x9c8] sm:$0x3] }
 0x200   :  { %4432 = vst [vmem:[%s5674_s1 + $0x270] sm:$0x3] %v3635_v11  ;;  %v3649_v13 = vld [vmem:[#allocation0 + $0x9d0] sm:$0x3]  ;;  %v3656_v14 = vld [vmem:[#allocation0 + $0x9d8] sm:$0x3] }
 0x201   :  { %4433 = vst [vmem:[%s5674_s1 + $0x272] sm:$0x3] %v3642_v12  ;;  %4434 = vst [vmem:[%s5674_s1 + $0x274] sm:$0x3] %v3649_v13  ;;  %v3663_v15 = vld [vmem:[#allocation0 + $0x9e0] sm:$0x3] }
 0x202   :  { %4435 = vst [vmem:[%s5674_s1 + $0x276] sm:$0x3] %v3656_v14  ;;  %v3670_v16 = vld [vmem:[#allocation0 + $0x9e8] sm:$0x3]  ;;  %v3677_v17 = vld [vmem:[#allocation0 + $0x9f0] sm:$0x3] }
 0x203   :  { %4436 = vst [vmem:[%s5674_s1 + $0x278] sm:$0x3] %v3663_v15  ;;  %4437 = vst [vmem:[%s5674_s1 + $0x27a] sm:$0x3] %v3670_v16  ;;  %v3684_v18 = vld [vmem:[#allocation0 + $0x9f8] sm:$0x3] }
 0x204   :  { %4438 = vst [vmem:[%s5674_s1 + $0x27c] sm:$0x3] %v3677_v17  ;;  %v3691_v19 = vld [vmem:[#allocation0 + $0xa00] sm:$0x3]  ;;  %v3698_v20 = vld [vmem:[#allocation0 + $0xa08] sm:$0x3] }
 0x205   :  { %4439 = vst [vmem:[%s5674_s1 + $0x27e] sm:$0x3] %v3684_v18  ;;  %4440 = vst [vmem:[%s5674_s1 + $0x280] sm:$0x3] %v3691_v19  ;;  %v3705_v21 = vld [vmem:[#allocation0 + $0xa10] sm:$0x3] }
 0x206   :  { %4441 = vst [vmem:[%s5674_s1 + $0x282] sm:$0x3] %v3698_v20  ;;  %v3712_v22 = vld [vmem:[#allocation0 + $0xa18] sm:$0x3]  ;;  %4442 = vst [vmem:[%s5674_s1 + $0x284] sm:$0x3] %v3705_v21 }
 0x207   :  { %4443 = vst [vmem:[%s5674_s1 + $0x286] sm:$0x3] %v3712_v22 }

// kernel: dconv_base_forward.2
= control target key start
LH: loop header
LB: loop body
LE: loop exit
PB: predicated region body
PF: predicated region fallthrough
CT: control target
= control target key end

     0   :  { %s1250_s12 = smov 0   ;;  %s1252_s13 = smov 0   ;;  %s1629_s0 = inlined_call_operand.vmem [shape: bf16[1,88,112], index: 0, kind: input, shape index: {}]   ;;  %s1630_s1 = inlined_call_operand.vmem [shape: bf16[1,112,1024], index: 1, kind: input, shape index: {}]   ;;  %s1631_s2 = inlined_call_operand.vmem [shape: f32[1,88,1], index: 2, kind: input, shape index: {}]   ;;  %s1632_s3 = inlined_call_operand.vmem [shape: f32[1,88,1024], index: 3, kind: output, shape index: {}]  }
   0x1   :  { %s1254_s14 = smov 0   ;;  %s1256_s15 = smov 0  }
   0x2   :  { %s1258_s16 = smov 0  }
   0x3 LB: > { %s22_s17 = sadd.s32 1, %s1223_s15  ;;  %s1034_s18 = sadd.s32 4294967295, %s1227_s16   ;;  %s1227_s16 = sphi %s1258_s16, %s13_s16   ;;  %s1223_s15 = sphi %s1256_s15, %s1637_s15   ;;  %s1219_s14 = sphi %s1254_s14, %s1636_s14   ;;  %s1215_s13 = sphi %s1252_s13, %s1635_s13   ;;  %s1211_s12 = sphi %s1250_s12, %s1634_s12  }
   0x4   : > { %p23_p0 = scmp.ge.s32.totalorder %s22_s17, 2  ;;  %p67_p1 = scmp.ne.s32.totalorder %s1215_s13, %s1211_s12 }
   0x5   : > { %p68_p2 = scmp.eq.s32.totalorder %s1227_s16, 0  ;;  %p125_p4 = scmp.eq.s32.totalorder %s1034_s18, 1 }
   0x6   : > { %s1639_s17 = smov (%p23_p0, %s22_s17), 0  ;;  %s60_s20 = sadd.s32 1, %s1215_s13 }
   0x7   : > { %p69_p3 = por %p68_p2, %p67_p1  ;;  %s56_s19 = ssub.s32 %s1223_s15, %s1639_s17 }
   0x8   : > { %p58_p5 = scmp.eq.s32.totalorder %s56_s19, 0  ;;  %p1285_p6 = por %p125_p4, %p67_p1 }
   0x9   : > { %p1039_p7 = scmp.ge.s32.totalorder %s1227_s16, 2 }
   0xa   : > { %s1290_s22 = scalar_select %p58_p5, %s1215_s13, %s60_s20  }
   0xb   : > { %163 = sbr.rel (%p1039_p7) target bundleno = 34 (0x22), region = 24 }
  0x10   : > { %166 = sbr.rel (!%p69_p3) target bundleno = 34 (0x22), region = 28  ;;  %s168_s23 = sand.u32 (%p69_p3), 1, %s1215_s13  }
  0x11   : > { %s1093_s24 = sshll.u32 (%p69_p3), %s1223_s15, 4  ;;  %s1095_s25 = smul.u32 (%p69_p3), 224, %s168_s23 }
  0x12   : > { %s1298_s28 = scalar_lea.vmem (%p69_p3), %s1630_s1, %s1093_s24 }
  0x13   : > { %v188_v0 = vld [vmem:[%s1298_s28] sm:$0xff] (%p69_p3)  ;;  %v190_v1 = vld [vmem:[%s1298_s28 + $0x8] sm:$0xff] (%p69_p3)  ;;  %s1306_s29 = scalar_lea.vmem (%p69_p3), [#allocation2], %s1095_s25 }
  0x14   : > { %v192_v2 = vld [vmem:[%s1298_s28 + $0x20] sm:$0xff] (%p69_p3)  ;;  %v194_v3 = vld [vmem:[%s1298_s28 + $0x28] sm:$0xff] (%p69_p3)  ;;  %189 = vst [vmem:[%s1306_s29] sm:$0xff] (%p69_p3), %v188_v0  ;;  %191 = vst [vmem:[%s1306_s29 + $0x8] sm:$0xff] (%p69_p3), %v190_v1 }
  0x15   : > { %v196_v4 = vld [vmem:[%s1298_s28 + $0x40] sm:$0xff]  ;;  %v198_v5 = vld [vmem:[%s1298_s28 + $0x48] sm:$0xff]  ;;  %193 = vst [vmem:[%s1306_s29 + $0x10] sm:$0xff] %v192_v2  ;;  %195 = vst [vmem:[%s1306_s29 + $0x18] sm:$0xff] %v194_v3 }
  0x16   : > { %197 = vst [vmem:[%s1306_s29 + $0x20] sm:$0xff] %v196_v4  ;;  %199 = vst [vmem:[%s1306_s29 + $0x28] sm:$0xff] %v198_v5  ;;  %v200_v6 = vld [vmem:[%s1298_s28 + $0x60] sm:$0xff]  ;;  %v202_v7 = vld [vmem:[%s1298_s28 + $0x68] sm:$0xff] }
  0x17   : > { %v204_v8 = vld [vmem:[%s1298_s28 + $0x80] sm:$0xff]  ;;  %201 = vst [vmem:[%s1306_s29 + $0x30] sm:$0xff] %v200_v6  ;;  %203 = vst [vmem:[%s1306_s29 + $0x38] sm:$0xff] %v202_v7  ;;  %v206_v9 = vld [vmem:[%s1298_s28 + $0x88] sm:$0xff] }
  0x18   : > { %205 = vst [vmem:[%s1306_s29 + $0x40] sm:$0xff] %v204_v8  ;;  %v208_v10 = vld [vmem:[%s1298_s28 + $0xa0] sm:$0xff]  ;;  %v210_v11 = vld [vmem:[%s1298_s28 + $0xa8] sm:$0xff]  ;;  %207 = vst [vmem:[%s1306_s29 + $0x48] sm:$0xff] %v206_v9 }
  0x19   : > { %209 = vst [vmem:[%s1306_s29 + $0x50] sm:$0xff] %v208_v10  ;;  %211 = vst [vmem:[%s1306_s29 + $0x58] sm:$0xff] %v210_v11  ;;  %v212_v12 = vld [vmem:[%s1298_s28 + $0xc0] sm:$0xff]  ;;  %v214_v13 = vld [vmem:[%s1298_s28 + $0xc8] sm:$0xff] }
  0x1a   : > { %v216_v14 = vld [vmem:[%s1298_s28 + $0xe0] sm:$0xff]  ;;  %213 = vst [vmem:[%s1306_s29 + $0x60] sm:$0xff] %v212_v12  ;;  %215 = vst [vmem:[%s1306_s29 + $0x68] sm:$0xff] %v214_v13  ;;  %v218_v15 = vld [vmem:[%s1298_s28 + $0xe8] sm:$0xff] }
  0x1b   : > { %217 = vst [vmem:[%s1306_s29 + $0x70] sm:$0xff] %v216_v14  ;;  %v220_v16 = vld [vmem:[%s1298_s28 + $0x100] sm:$0xff]  ;;  %v222_v17 = vld [vmem:[%s1298_s28 + $0x108] sm:$0xff]  ;;  %219 = vst [vmem:[%s1306_s29 + $0x78] sm:$0xff] %v218_v15 }
  0x1c   : > { %221 = vst [vmem:[%s1306_s29 + $0x80] sm:$0xff] %v220_v16  ;;  %223 = vst [vmem:[%s1306_s29 + $0x88] sm:$0xff] %v222_v17  ;;  %v224_v18 = vld [vmem:[%s1298_s28 + $0x120] sm:$0xff]  ;;  %v226_v19 = vld [vmem:[%s1298_s28 + $0x128] sm:$0xff] }
  0x1d   : > { %v228_v20 = vld [vmem:[%s1298_s28 + $0x140] sm:$0xff]  ;;  %225 = vst [vmem:[%s1306_s29 + $0x90] sm:$0xff] %v224_v18  ;;  %227 = vst [vmem:[%s1306_s29 + $0x98] sm:$0xff] %v226_v19  ;;  %v230_v21 = vld [vmem:[%s1298_s28 + $0x148] sm:$0xff] }
  0x1e   : > { %229 = vst [vmem:[%s1306_s29 + $0xa0] sm:$0xff] %v228_v20  ;;  %v232_v22 = vld [vmem:[%s1298_s28 + $0x160] sm:$0xff]  ;;  %v234_v23 = vld [vmem:[%s1298_s28 + $0x168] sm:$0xff]  ;;  %231 = vst [vmem:[%s1306_s29 + $0xa8] sm:$0xff] %v230_v21 }
  0x1f   : > { %233 = vst [vmem:[%s1306_s29 + $0xb0] sm:$0xff] %v232_v22  ;;  %235 = vst [vmem:[%s1306_s29 + $0xb8] sm:$0xff] %v234_v23  ;;  %v236_v24 = vld [vmem:[%s1298_s28 + $0x180] sm:$0xff]  ;;  %v238_v25 = vld [vmem:[%s1298_s28 + $0x188] sm:$0xff] }
  0x20   : > { %v240_v26 = vld [vmem:[%s1298_s28 + $0x1a0] sm:$0xff]  ;;  %237 = vst [vmem:[%s1306_s29 + $0xc0] sm:$0xff] %v236_v24  ;;  %239 = vst [vmem:[%s1306_s29 + $0xc8] sm:$0xff] %v238_v25  ;;  %v242_v27 = vld [vmem:[%s1298_s28 + $0x1a8] sm:$0xff] }
  0x21   : > { %241 = vst [vmem:[%s1306_s29 + $0xd0] sm:$0xff] %v240_v26  ;;  %243 = vst [vmem:[%s1306_s29 + $0xd8] sm:$0xff] %v242_v27 }
  0x22 PF: > { %p1042_p8 = scmp.ge.s32.totalorder %s1227_s16, 1  ;;  %p248_p9 = scmp.lt.s32.totalorder %s1227_s16, 3 }
  0x24   : > { %p249_p10 = pnand %p1042_p8, %p248_p9 }
  0x25   : > { %s255_s30 = sand.u32 (!%p249_p10), 1, %s1211_s12  }
  0x26   : > { %252 = sbr.rel (%p249_p10) target bundleno = 321 (0x141), region = 51 }
  0x27   : > { %s1096_s4 = smul.u32 (!%p249_p10), 224, %s255_s30 }
  0x29   : > { %s1367_s5 = scalar_lea.vmem (!%p249_p10), [#allocation2], %s1096_s4  ;;  %s1097_s4 = smul.u32 (!%p249_p10), 352, %s255_s30 }
  0x2b   : > { %v1229_v28 = vmov 0   ;;  %v1141_v29 = vld [vmem:[%s1367_s5 + $0xc4] ss:$16 sps:$4 sm:$0xff]   ;;  %v1143_v30 = vld [vmem:[%s1367_s5 + $0xcc] ss:$16 sps:$4 sm:$0xff]   ;;  %vm573_vm0 = vcmask 916480  }
  0x2c   : > { %624 = vmatprep.mubr.bf16.mxu0 %v1229_v28  ;;  %715 = vmatprep.mubr.bf16.mxu1 %v1229_v28  ;;  %v1145_v31 = vld [vmem:[%s1367_s5 + $0xc0] ss:$16 sps:$4 sm:$0xff]   ;;  %v1146_v32 = vld [vmem:[%s1367_s5 + $0xc8] ss:$16 sps:$4 sm:$0xff]   ;;  %v1147_v33 = vld [vmem:[%s1367_s5 + $0xa4] ss:$16 sps:$4 sm:$0xff]  }
  0x2d   : > { %1139 = vset.pattern.permute.xlu0 %v1229_v28  ;;  %1140 = vset.pattern.permute.xlu1 %v1229_v28  ;;  %v1149_v34 = vld [vmem:[%s1367_s5 + $0xac] ss:$16 sps:$4 sm:$0xff]   ;;  %v1151_v35 = vld [vmem:[%s1367_s5 + $0xa0] ss:$16 sps:$4 sm:$0xff]   ;;  %v1152_v36 = vld [vmem:[%s1367_s5 + $0xa8] ss:$16 sps:$4 sm:$0xff]  }
  0x2e   : > { %594 = vmatprep.subr.bf16.mxu0 %v1141_v29  ;;  %685 = vmatprep.subr.bf16.mxu1 %v1143_v30  ;;  %v1153_v37 = vld [vmem:[%s1367_s5 + $0x84] ss:$16 sps:$4 sm:$0xff]   ;;  %v1155_v38 = vld [vmem:[%s1367_s5 + $0x8c] ss:$16 sps:$4 sm:$0xff]   ;;  %v1157_v39 = vld [vmem:[%s1367_s5 + $0x80] ss:$16 sps:$4 sm:$0xff]  }
  0x2f   : > { %595 = vmatpush1.bf16.msra.mxu0 %v1145_v31  ;;  %686 = vmatpush1.bf16.msra.mxu1 %v1146_v32  ;;  %v1158_v40 = vld [vmem:[%s1367_s5 + $0x88] ss:$16 sps:$4 sm:$0xff]   ;;  %v1159_v41 = vld [vmem:[%s1367_s5 + $0x64] ss:$16 sps:$4 sm:$0xff]   ;;  %v1161_v42 = vld [vmem:[%s1367_s5 + $0x6c] ss:$16 sps:$4 sm:$0xff]  }
  0x30   : > { %596 = vmatprep.subr.bf16.mxu0 %v1147_v33  ;;  %687 = vmatprep.subr.bf16.mxu1 %v1149_v34  ;;  %v1163_v43 = vld [vmem:[%s1367_s5 + $0x60] ss:$16 sps:$4 sm:$0xff]   ;;  %v1164_v44 = vld [vmem:[%s1367_s5 + $0x68] ss:$16 sps:$4 sm:$0xff]   ;;  %v1165_v45 = vld [vmem:[%s1367_s5 + $0x44] ss:$16 sps:$4 sm:$0xff]  }
  0x31   : > { %v1167_v46 = vld [vmem:[%s1367_s5 + $0x4c] ss:$16 sps:$4 sm:$0xff]   ;;  %v1169_v47 = vld [vmem:[%s1367_s5 + $0x40] ss:$16 sps:$4 sm:$0xff]   ;;  %v1170_v48 = vld [vmem:[%s1367_s5 + $0x48] ss:$16 sps:$4 sm:$0xff]  }
  0x32   : > { %v1171_v49 = vld [vmem:[%s1367_s5 + $0x24] ss:$16 sps:$4 sm:$0xff]   ;;  %v1173_v50 = vld [vmem:[%s1367_s5 + $0x2c] ss:$16 sps:$4 sm:$0xff]   ;;  %v1175_v51 = vld [vmem:[%s1367_s5 + $0x20] ss:$16 sps:$4 sm:$0xff]  }
  0x33   : > { %597 = vmatpush1.bf16.msra.mxu0 %v1151_v35  ;;  %688 = vmatpush1.bf16.msra.mxu1 %v1152_v36  ;;  %v1176_v52 = vld [vmem:[%s1367_s5 + $0x28] ss:$16 sps:$4 sm:$0xff]   ;;  %v339_v53 = vld [vmem:[%s1631_s2] sm:$0xff]  ;;  %v1179_v55 = vld [vmem:[%s1367_s5 + $0xc] ss:$16 sps:$4 sm:$0xff]   ;;  %s1094_s12 = sshll.u32 (%p1285_p6), %s1219_s14, 5 }
  0x34   : > { %598 = vmatprep.subr.bf16.mxu0 %v1153_v37  ;;  %689 = vmatprep.subr.bf16.mxu1 %v1155_v38  ;;  %v1177_v54 = vld [vmem:[%s1367_s5 + $0x4] ss:$16 sps:$4 sm:$0xff]   ;;  %v340_v57 = vld [vmem:[%s1631_s2 + $0x8] sm:$0xff]  ;;  %v342_v58 = vld [vmem:[%s1631_s2 + $0x18] sm:$0xff]  ;;  %s1527_s7 = scalar_lea.vmem (%p1285_p6), %s1632_s3, %s1094_s12 }
  0x35   : > { %v341_v56 = vld [vmem:[%s1631_s2 + $0x10] sm:$0xff]  ;;  %352 = vperm.xlu0 %1139, %v339_v53   ;;  %v1182_v60 = vld [vmem:[%s1367_s5 + $0x8] ss:$16 sps:$4 sm:$0xff]   ;;  %v1183_v61 = vld [vmem:[%s1629_s0] sm:$0xff]  }
  0x36   : > { %362 = vperm.xlu1 %1140, %v341_v56   ;;  %v1181_v59 = vld [vmem:[%s1367_s5] ss:$16 sps:$4 sm:$0xff]   ;;  %v344_v63 = vld [vmem:[%s1631_s2 + $0x28] sm:$0xff]  ;;  %v346_v1 = vld [vmem:[%s1631_s2 + $0x38] sm:$0xff]  ;;  %s1472_s5 = scalar_lea.vmem [#allocation3], %s1097_s4 }
  0x37   : > { %599 = vmatpush1.bf16.msra.mxu0 %v1157_v39  ;;  %690 = vmatpush1.bf16.msra.mxu1 %v1158_v40  ;;  %v343_v62 = vld [vmem:[%s1631_s2 + $0x20] sm:$0xff]  ;;  %v345_v0 = vld [vmem:[%s1631_s2 + $0x30] sm:$0xff]  ;;  %v1184_v2 = vld [vmem:[%s1629_s0 + $0x8] sm:$0xff]  }
  0x38   : > { %600 = vmatprep.subr.bf16.mxu0 %v1159_v41  ;;  %691 = vmatprep.subr.bf16.mxu1 %v1161_v42  ;;  %v347_v3 = vld [vmem:[%s1631_s2 + $0x40] sm:$0xff]  ;;  %v348_v4 = vld [vmem:[%s1631_s2 + $0x48] sm:$0xff]  ;;  %v349_v5 = vld [vmem:[%s1631_s2 + $0x50] sm:$0xff] }
  0x39   : > { %357 = vperm.xlu0 %1139, %v340_v57   ;;  %v1185_v6 = vld [vmem:[%s1629_s0 + $0x10] sm:$0xff]   ;;  %v1186_v7 = vld [vmem:[%s1629_s0 + $0x18] sm:$0xff]   ;;  %v1187_v8 = vld [vmem:[%s1629_s0 + $0x20] sm:$0xff]  }
  0x3a   : > { %367 = vperm.xlu1 %1140, %v342_v58   ;;  %v1188_v9 = vld [vmem:[%s1629_s0 + $0x28] ss:$0 sps:$4 sm:$0xff]  }
  0x3b   : > { %601 = vmatpush1.bf16.msra.mxu0 %v1163_v43  ;;  %692 = vmatpush1.bf16.msra.mxu1 %v1164_v44 }
  0x3c   : > { %602 = vmatprep.subr.bf16.mxu0 %v1165_v45  ;;  %693 = vmatprep.subr.bf16.mxu1 %v1167_v46 }
  0x3d   : > { %372 = vperm.xlu0 %1139, %v343_v62  }
  0x3e   : > { %377 = vperm.xlu1 %1140, %v344_v63  }
  0x3f   : > { %603 = vmatpush1.bf16.msra.mxu0 %v1169_v47  ;;  %694 = vmatpush1.bf16.msra.mxu1 %v1170_v48 }
  0x40   : > { %604 = vmatprep.subr.bf16.mxu0 %v1171_v49  ;;  %695 = vmatprep.subr.bf16.mxu1 %v1173_v50 }
  0x41   : > { %382 = vperm.xlu0 %1139, %v345_v0  }
  0x42   : > { %387 = vperm.xlu1 %1140, %v346_v1  }
  0x43   : > { %605 = vmatpush1.bf16.msra.mxu0 %v1175_v51  ;;  %696 = vmatpush1.bf16.msra.mxu1 %v1176_v52 }
  0x44   : > { %606 = vmatprep.subr.bf16.mxu0 %v1177_v54  ;;  %697 = vmatprep.subr.bf16.mxu1 %v1179_v55 }
  0x45   : > { %392 = vperm.xlu0 %1139, %v347_v3  }
  0x46   : > { %397 = vperm.xlu1 %1140, %v348_v4  }
  0x47   : > { %607 = vmatpush1.bf16.msra.mxu0 %v1181_v59  ;;  %698 = vmatpush1.bf16.msra.mxu1 %v1182_v60 }
  0x49   : > { %402 = vperm.xlu0 %1139, %v349_v5  }
  0x4a   : > { %1077 = vmatmul.mubr.msk.bf16.vlgmr.msra.gmra.mxu0 %vm573_vm0, %v1183_v61  ;;  %1083 = vmatmul.mubr.msk.bf16.vlgmr.msra.gmra.mxu1 %vm573_vm0, %v1183_v61 }
  0x4b   : > { %634 = vmatprep.mubr.bf16.mxu0 %v1229_v28  ;;  %725 = vmatprep.mubr.bf16.mxu1 %v1229_v28 }
  0x52   : > { %1078 = vmatmul.mubr.msk.bf16.gmra.mxu0 %vm573_vm0, %v1184_v2  ;;  %1084 = vmatmul.mubr.msk.bf16.gmra.mxu1 %vm573_vm0, %v1184_v2 }
  0x53   : > { %644 = vmatprep.mubr.bf16.mxu0 %v1229_v28  ;;  %735 = vmatprep.mubr.bf16.mxu1 %v1229_v28 }
  0x5a   : > { %1079 = vmatmul.mubr.msk.bf16.gmra.mxu0 %vm573_vm0, %v1185_v6  ;;  %1085 = vmatmul.mubr.msk.bf16.gmra.mxu1 %vm573_vm0, %v1185_v6 }
  0x5b   : > { %654 = vmatprep.mubr.bf16.mxu0 %v1229_v28  ;;  %745 = vmatprep.mubr.bf16.mxu1 %v1229_v28 }
  0x62   : > { %1080 = vmatmul.mubr.msk.bf16.gmra.mxu0 %vm573_vm0, %v1186_v7  ;;  %1086 = vmatmul.mubr.msk.bf16.gmra.mxu1 %vm573_vm0, %v1186_v7 }
  0x63   : > { %664 = vmatprep.mubr.bf16.mxu0 %v1229_v28  ;;  %755 = vmatprep.mubr.bf16.mxu1 %v1229_v28 }
  0x6a   : > { %1081 = vmatmul.mubr.msk.bf16.gmra.mxu0 %vm573_vm0, %v1187_v8  ;;  %1087 = vmatmul.mubr.msk.bf16.gmra.mxu1 %vm573_vm0, %v1187_v8 }
  0x6b   : > { %674 = vmatprep.mubr.bf16.mxu0 %v1229_v28  ;;  %765 = vmatprep.mubr.bf16.mxu1 %v1229_v28 }
  0x72   : > { %1082 = vmatmul.mubr.msk.bf16.gmra.mxu0 %vm573_vm0, %v1188_v9  ;;  %1088 = vmatmul.mubr.msk.bf16.gmra.mxu1 %vm573_vm0, %v1188_v9 }
  0xb0   : > { %v353_v10 = vpop.permute.xlu0 %352 }
  0xb1   : > { %v363_v20 = vpop.permute.xlu1 %362 }
  0xb4   : > { %v358_v15 = vpop.permute.xlu0 %357 }
  0xb5   : > { %v368_v33 = vpop.permute.xlu1 %367 }
  0xb8   : > { %v373_v44 = vpop.permute.xlu0 %372 }
  0xb9   : > { %v378_v51 = vpop.permute.xlu1 %377 }
  0xbc   : > { %v383_v62 = vpop.permute.xlu0 %382 }
  0xbd   : > { %v388_v7 = vpop.permute.xlu1 %387 }
 0x10a   : > { %v626_v11 = vpop.f32.mrf.mxu0  ;;  %v717_v12 = vpop.f32.mrf.mxu1 }
 0x10b   : > { %v627_v13 = vadd.f32 %v626_v11, %v353_v10  ;;  %v718_v14 = vadd.f32 %v717_v12, %v353_v10 }
 0x10c   : > { %v628_v16 = vpop.f32.mrf.mxu0  ;;  %v719_v17 = vpop.f32.mrf.mxu1 }
 0x10d   : > { %774 = vst [vmem:[%s1472_s5] sm:$0xff] %v627_v13  ;;  %776 = vst [vmem:[%s1472_s5 + $0x10] sm:$0xff] %v718_v14  ;;  %v629_v18 = vadd.f32 %v628_v16, %v353_v10  ;;  %v720_v19 = vadd.f32 %v719_v17, %v353_v10  ;;  %v393_v16 = vpop.permute.xlu0 %392 }
 0x10e   : > { %v630_v21 = vpop.f32.mrf.mxu0  ;;  %v721_v22 = vpop.f32.mrf.mxu1 }
 0x10f   : > { %775 = vst [vmem:[%s1472_s5 + $0x8] sm:$0xff] %v629_v18  ;;  %777 = vst [vmem:[%s1472_s5 + $0x18] sm:$0xff] %v720_v19  ;;  %v631_v23 = vadd.f32 %v630_v21, %v358_v15  ;;  %v722_v24 = vadd.f32 %v721_v22, %v358_v15 }
 0x110   : > { %v632_v25 = vpop.f32.mrf.mxu0  ;;  %v723_v26 = vpop.f32.mrf.mxu1 }
 0x111   : > { %778 = vst [vmem:[%s1472_s5 + $0x20] sm:$0xff] %v631_v23  ;;  %780 = vst [vmem:[%s1472_s5 + $0x30] sm:$0xff] %v722_v24  ;;  %v633_v27 = vadd.f32 %v632_v25, %v358_v15  ;;  %v724_v28 = vadd.f32 %v723_v26, %v358_v15  ;;  %v398_v25 = vpop.permute.xlu1 %397 }
 0x112   : > { %v636_v29 = vpop.f32.mrf.mxu0  ;;  %v727_v30 = vpop.f32.mrf.mxu1 }
 0x113   : > { %779 = vst [vmem:[%s1472_s5 + $0x28] sm:$0xff] %v633_v27  ;;  %781 = vst [vmem:[%s1472_s5 + $0x38] sm:$0xff] %v724_v28  ;;  %v637_v31 = vadd.f32 %v636_v29, %v363_v20  ;;  %v728_v32 = vadd.f32 %v727_v30, %v363_v20 }
 0x114   : > { %v638_v34 = vpop.f32.mrf.mxu0  ;;  %v729_v35 = vpop.f32.mrf.mxu1 }
 0x115   : > { %782 = vst [vmem:[%s1472_s5 + $0x40] sm:$0xff] %v637_v31  ;;  %784 = vst [vmem:[%s1472_s5 + $0x50] sm:$0xff] %v728_v32  ;;  %v639_v36 = vadd.f32 %v638_v34, %v363_v20  ;;  %v730_v37 = vadd.f32 %v729_v35, %v363_v20  ;;  %v403_v34 = vpop.permute.xlu0 %402 }
 0x116   : > { %v640_v38 = vpop.f32.mrf.mxu0  ;;  %v731_v39 = vpop.f32.mrf.mxu1 }
 0x117   : > { %783 = vst [vmem:[%s1472_s5 + $0x48] sm:$0xff] %v639_v36  ;;  %785 = vst [vmem:[%s1472_s5 + $0x58] sm:$0xff] %v730_v37  ;;  %v641_v40 = vadd.f32 %v640_v38, %v368_v33  ;;  %v732_v41 = vadd.f32 %v731_v39, %v368_v33 }
 0x118   : > { %v642_v42 = vpop.f32.mrf.mxu0  ;;  %v733_v43 = vpop.f32.mrf.mxu1 }
 0x119   : > { %786 = vst [vmem:[%s1472_s5 + $0x60] sm:$0xff] %v641_v40  ;;  %788 = vst [vmem:[%s1472_s5 + $0x70] sm:$0xff] %v732_v41  ;;  %v643_v45 = vadd.f32 %v642_v42, %v368_v33  ;;  %v734_v46 = vadd.f32 %v733_v43, %v368_v33 }
 0x11a   : > { %v646_v47 = vpop.f32.mrf.mxu0  ;;  %v737_v48 = vpop.f32.mrf.mxu1 }
 0x11b   : > { %787 = vst [vmem:[%s1472_s5 + $0x68] sm:$0xff] %v643_v45  ;;  %789 = vst [vmem:[%s1472_s5 + $0x78] sm:$0xff] %v734_v46  ;;  %v647_v49 = vadd.f32 %v646_v47, %v373_v44  ;;  %v738_v50 = vadd.f32 %v737_v48, %v373_v44 }
 0x11c   : > { %v648_v52 = vpop.f32.mrf.mxu0  ;;  %v739_v53 = vpop.f32.mrf.mxu1 }
 0x11d   : > { %790 = vst [vmem:[%s1472_s5 + $0x80] sm:$0xff] %v647_v49  ;;  %792 = vst [vmem:[%s1472_s5 + $0x90] sm:$0xff] %v738_v50  ;;  %v649_v54 = vadd.f32 %v648_v52, %v373_v44  ;;  %v740_v55 = vadd.f32 %v739_v53, %v373_v44  ;;  %v842_v49 = vld [vmem:[%s1472_s5] sm:$0xff] (%p1285_p6)  ;;  %v844_v50 = vld [vmem:[%s1472_s5 + $0x8] sm:$0xff] (%p1285_p6) }
 0x11e   : > { %v650_v56 = vpop.f32.mrf.mxu0  ;;  %v741_v57 = vpop.f32.mrf.mxu1  ;;  %v848_v52 = vld [vmem:[%s1472_s5 + $0x18] sm:$0xff] (%p1285_p6)  ;;  %v850_v53 = vld [vmem:[%s1472_s5 + $0x20] sm:$0xff] (%p1285_p6)  ;;  %843 = vst [vmem:[%s1527_s7] sm:$0xff] (%p1285_p6), %v842_v49  ;;  %845 = vst [vmem:[%s1527_s7 + $0x8] sm:$0xff] (%p1285_p6), %v844_v50 }
 0x11f   : > { %791 = vst [vmem:[%s1472_s5 + $0x88] sm:$0xff] %v649_v54  ;;  %793 = vst [vmem:[%s1472_s5 + $0x98] sm:$0xff] %v740_v55  ;;  %v651_v58 = vadd.f32 %v650_v56, %v378_v51  ;;  %v742_v59 = vadd.f32 %v741_v57, %v378_v51  ;;  %v852_v54 = vld [vmem:[%s1472_s5 + $0x28] sm:$0xff] (%p1285_p6)  ;;  %v854_v55 = vld [vmem:[%s1472_s5 + $0x30] sm:$0xff] (%p1285_p6) }
 0x120   : > { %v652_v60 = vpop.f32.mrf.mxu0  ;;  %v743_v61 = vpop.f32.mrf.mxu1  ;;  %849 = vst [vmem:[%s1527_s7 + $0x18] sm:$0xff] (%p1285_p6), %v848_v52  ;;  %851 = vst [vmem:[%s1527_s7 + $0x40] sm:$0xff] (%p1285_p6), %v850_v53  ;;  %v856_v56 = vld [vmem:[%s1472_s5 + $0x38] sm:$0xff] (%p1285_p6)  ;;  %v858_v57 = vld [vmem:[%s1472_s5 + $0x40] sm:$0xff] (%p1285_p6) }
 0x121   : > { %794 = vst [vmem:[%s1472_s5 + $0xa0] sm:$0xff] %v651_v58  ;;  %796 = vst [vmem:[%s1472_s5 + $0xb0] sm:$0xff] %v742_v59  ;;  %v653_v63 = vadd.f32 %v652_v60, %v378_v51  ;;  %v744_v0 = vadd.f32 %v743_v61, %v378_v51  ;;  %v846_v51 = vld [vmem:[%s1472_s5 + $0x10] sm:$0xff] (%p1285_p6)  ;;  %v860_v58 = vld [vmem:[%s1472_s5 + $0x48] sm:$0xff] (%p1285_p6) }
 0x122   : > { %v656_v1 = vpop.f32.mrf.mxu0  ;;  %v747_v2 = vpop.f32.mrf.mxu1  ;;  %847 = vst [vmem:[%s1527_s7 + $0x10] sm:$0xff] (%p1285_p6), %v846_v51  ;;  %853 = vst [vmem:[%s1527_s7 + $0x48] sm:$0xff] (%p1285_p6), %v852_v54  ;;  %v862_v59 = vld [vmem:[%s1472_s5 + $0x50] sm:$0xff] (%p1285_p6)  ;;  %v864_v60 = vld [vmem:[%s1472_s5 + $0x58] sm:$0xff] (%p1285_p6) }
 0x123   : > { %795 = vst [vmem:[%s1472_s5 + $0xa8] sm:$0xff] %v653_v63  ;;  %797 = vst [vmem:[%s1472_s5 + $0xb8] sm:$0xff] %v744_v0  ;;  %v657_v3 = vadd.f32 %v656_v1, %v383_v62  ;;  %v748_v4 = vadd.f32 %v747_v2, %v383_v62  ;;  %v866_v61 = vld [vmem:[%s1472_s5 + $0x60] sm:$0xff] (%p1285_p6)  ;;  %v870_v63 = vld [vmem:[%s1472_s5 + $0x70] sm:$0xff] (%p1285_p6) }
 0x124   : > { %v658_v5 = vpop.f32.mrf.mxu0  ;;  %v749_v6 = vpop.f32.mrf.mxu1  ;;  %855 = vst [vmem:[%s1527_s7 + $0x50] sm:$0xff] (%p1285_p6), %v854_v55  ;;  %857 = vst [vmem:[%s1527_s7 + $0x58] sm:$0xff] (%p1285_p6), %v856_v56  ;;  %v872_v0 = vld [vmem:[%s1472_s5 + $0x78] sm:$0xff] (%p1285_p6)  ;;  %v874_v1 = vld [vmem:[%s1472_s5 + $0x80] sm:$0xff] (%p1285_p6) }
 0x125   : > { %798 = vst [vmem:[%s1472_s5 + $0xc0] sm:$0xff] %v657_v3  ;;  %800 = vst [vmem:[%s1472_s5 + $0xd0] sm:$0xff] %v748_v4  ;;  %v659_v8 = vadd.f32 %v658_v5, %v383_v62  ;;  %v750_v9 = vadd.f32 %v749_v6, %v383_v62  ;;  %v868_v62 = vld [vmem:[%s1472_s5 + $0x68] sm:$0xff] (%p1285_p6)  ;;  %v878_v3 = vld [vmem:[%s1472_s5 + $0x90] sm:$0xff] (%p1285_p6) }
 0x126   : > { %v660_v10 = vpop.f32.mrf.mxu0  ;;  %v751_v11 = vpop.f32.mrf.mxu1  ;;  %859 = vst [vmem:[%s1527_s7 + $0x80] sm:$0xff] (%p1285_p6), %v858_v57  ;;  %861 = vst [vmem:[%s1527_s7 + $0x88] sm:$0xff] (%p1285_p6), %v860_v58  ;;  %v876_v2 = vld [vmem:[%s1472_s5 + $0x88] sm:$0xff] (%p1285_p6)  ;;  %v880_v4 = vld [vmem:[%s1472_s5 + $0x98] sm:$0xff] (%p1285_p6) }
 0x127   : > { %799 = vst [vmem:[%s1472_s5 + $0xc8] sm:$0xff] %v659_v8  ;;  %801 = vst [vmem:[%s1472_s5 + $0xd8] sm:$0xff] %v750_v9  ;;  %v661_v12 = vadd.f32 %v660_v10, %v388_v7  ;;  %v752_v13 = vadd.f32 %v751_v11, %v388_v7 }
 0x128   : > { %v662_v14 = vpop.f32.mrf.mxu0  ;;  %v753_v15 = vpop.f32.mrf.mxu1  ;;  %863 = vst [vmem:[%s1527_s7 + $0x90] sm:$0xff] (%p1285_p6), %v862_v59  ;;  %865 = vst [vmem:[%s1527_s7 + $0x98] sm:$0xff] (%p1285_p6), %v864_v60  ;;  %v882_v5 = vld [vmem:[%s1472_s5 + $0xa0] sm:$0xff] (%p1285_p6) }
 0x129   : > { %802 = vst [vmem:[%s1472_s5 + $0xe0] sm:$0xff] %v661_v12  ;;  %804 = vst [vmem:[%s1472_s5 + $0xf0] sm:$0xff] %v752_v13  ;;  %v663_v17 = vadd.f32 %v662_v14, %v388_v7  ;;  %v754_v18 = vadd.f32 %v753_v15, %v388_v7  ;;  %v886_v7 = vld [vmem:[%s1472_s5 + $0xb0] sm:$0xff] (%p1285_p6) }
 0x12a   : > { %v666_v19 = vpop.f32.mrf.mxu0  ;;  %v757_v20 = vpop.f32.mrf.mxu1  ;;  %867 = vst [vmem:[%s1527_s7 + $0xc0] sm:$0xff] (%p1285_p6), %v866_v61  ;;  %869 = vst [vmem:[%s1527_s7 + $0xc8] sm:$0xff] (%p1285_p6), %v868_v62  ;;  %v884_v6 = vld [vmem:[%s1472_s5 + $0xa8] sm:$0xff] (%p1285_p6)  ;;  %v888_v8 = vld [vmem:[%s1472_s5 + $0xb8] sm:$0xff] (%p1285_p6) }
 0x12b   : > { %803 = vst [vmem:[%s1472_s5 + $0xe8] sm:$0xff] %v663_v17  ;;  %805 = vst [vmem:[%s1472_s5 + $0xf8] sm:$0xff] %v754_v18  ;;  %v667_v21 = vadd.f32 %v666_v19, %v393_v16  ;;  %v758_v22 = vadd.f32 %v757_v20, %v393_v16 }
 0x12c   : > { %v668_v23 = vpop.f32.mrf.mxu0  ;;  %v759_v24 = vpop.f32.mrf.mxu1  ;;  %871 = vst [vmem:[%s1527_s7 + $0xd0] sm:$0xff] (%p1285_p6), %v870_v63  ;;  %873 = vst [vmem:[%s1527_s7 + $0xd8] sm:$0xff] (%p1285_p6), %v872_v0  ;;  %v890_v9 = vld [vmem:[%s1472_s5 + $0xc0] sm:$0xff] (%p1285_p6)  ;;  %v894_v11 = vld [vmem:[%s1472_s5 + $0xd0] sm:$0xff] (%p1285_p6) }
 0x12d   : > { %806 = vst [vmem:[%s1472_s5 + $0x100] sm:$0xff] %v667_v21  ;;  %808 = vst [vmem:[%s1472_s5 + $0x110] sm:$0xff] %v758_v22  ;;  %v669_v26 = vadd.f32 %v668_v23, %v393_v16  ;;  %v760_v27 = vadd.f32 %v759_v24, %v393_v16 }
 0x12e   : > { %v670_v28 = vpop.f32.mrf.mxu0  ;;  %v761_v29 = vpop.f32.mrf.mxu1  ;;  %875 = vst [vmem:[%s1527_s7 + $0x100] sm:$0xff] (%p1285_p6), %v874_v1  ;;  %877 = vst [vmem:[%s1527_s7 + $0x108] sm:$0xff] (%p1285_p6), %v876_v2  ;;  %v892_v10 = vld [vmem:[%s1472_s5 + $0xc8] sm:$0xff] (%p1285_p6)  ;;  %v896_v12 = vld [vmem:[%s1472_s5 + $0xd8] sm:$0xff] (%p1285_p6) }
 0x12f   : > { %807 = vst [vmem:[%s1472_s5 + $0x108] sm:$0xff] %v669_v26  ;;  %809 = vst [vmem:[%s1472_s5 + $0x118] sm:$0xff] %v760_v27  ;;  %v671_v30 = vadd.f32 %v670_v28, %v398_v25  ;;  %v762_v31 = vadd.f32 %v761_v29, %v398_v25 }
 0x130   : > { %v672_v32 = vpop.f32.mrf.mxu0  ;;  %v763_v33 = vpop.f32.mrf.mxu1  ;;  %879 = vst [vmem:[%s1527_s7 + $0x110] sm:$0xff] (%p1285_p6), %v878_v3  ;;  %881 = vst [vmem:[%s1527_s7 + $0x118] sm:$0xff] (%p1285_p6), %v880_v4  ;;  %v898_v13 = vld [vmem:[%s1472_s5 + $0xe0] sm:$0xff] (%p1285_p6)  ;;  %v902_v15 = vld [vmem:[%s1472_s5 + $0xf0] sm:$0xff] (%p1285_p6) }
 0x131   : > { %810 = vst [vmem:[%s1472_s5 + $0x120] sm:$0xff] %v671_v30  ;;  %812 = vst [vmem:[%s1472_s5 + $0x130] sm:$0xff] %v762_v31  ;;  %v673_v35 = vadd.f32 %v672_v32, %v398_v25  ;;  %v764_v36 = vadd.f32 %v763_v33, %v398_v25 }
 0x132   : > { %v676_v37 = vpop.f32.mrf.mxu0  ;;  %v767_v38 = vpop.f32.mrf.mxu1  ;;  %883 = vst [vmem:[%s1527_s7 + $0x140] sm:$0xff] (%p1285_p6), %v882_v5  ;;  %885 = vst [vmem:[%s1527_s7 + $0x148] sm:$0xff] (%p1285_p6), %v884_v6  ;;  %v900_v14 = vld [vmem:[%s1472_s5 + $0xe8] sm:$0xff] (%p1285_p6)  ;;  %v904_v16 = vld [vmem:[%s1472_s5 + $0xf8] sm:$0xff] (%p1285_p6) }
 0x133   : > { %811 = vst [vmem:[%s1472_s5 + $0x128] sm:$0xff] %v673_v35  ;;  %813 = vst [vmem:[%s1472_s5 + $0x138] sm:$0xff] %v764_v36  ;;  %v677_v39 = vadd.f32 %v676_v37, %v403_v34  ;;  %v768_v40 = vadd.f32 %v767_v38, %v403_v34 }
 0x134   : > { %v678_v41 = vpop.f32.mrf.mxu0  ;;  %v769_v42 = vpop.f32.mrf.mxu1  ;;  %824 = sbr.rel (!%p1285_p6) target bundleno = 321 (0x141), region = 59  ;;  %887 = vst [vmem:[%s1527_s7 + $0x150] sm:$0xff] (%p1285_p6), %v886_v7  ;;  %889 = vst [vmem:[%s1527_s7 + $0x158] sm:$0xff] (%p1285_p6), %v888_v8  ;;  %v906_v17 = vld [vmem:[%s1472_s5 + $0x100] sm:$0xff] (%p1285_p6)  ;;  %v910_v19 = vld [vmem:[%s1472_s5 + $0x110] sm:$0xff] (%p1285_p6) }
 0x135   : > { %814 = vst [vmem:[%s1472_s5 + $0x140] sm:$0xff] %v677_v39  ;;  %816 = vst [vmem:[%s1472_s5 + $0x150] sm:$0xff] %v768_v40  ;;  %v679_v43 = vadd.f32 %v678_v41, %v403_v34  ;;  %v770_v44 = vadd.f32 %v769_v42, %v403_v34 }
 0x136   : > { %v680_v45 = vpop.f32.mrf.mxu0  ;;  %v771_v46 = vpop.f32.mrf.mxu1  ;;  %891 = vst [vmem:[%s1527_s7 + $0x180] sm:$0xff] (%p1285_p6), %v890_v9  ;;  %893 = vst [vmem:[%s1527_s7 + $0x188] sm:$0xff] (%p1285_p6), %v892_v10  ;;  %v908_v18 = vld [vmem:[%s1472_s5 + $0x108] sm:$0xff] (%p1285_p6)  ;;  %v912_v20 = vld [vmem:[%s1472_s5 + $0x118] sm:$0xff] (%p1285_p6) }
 0x137   : > { %815 = vst [vmem:[%s1472_s5 + $0x148] sm:$0xff] %v679_v43  ;;  %817 = vst [vmem:[%s1472_s5 + $0x158] sm:$0xff] %v770_v44 }
 0x138   : > { %v681_v47 = vpop.f32.mrf.mxu0  ;;  %v772_v48 = vpop.f32.mrf.mxu1  ;;  %895 = vst [vmem:[%s1527_s7 + $0x190] sm:$0xff] (%p1285_p6), %v894_v11  ;;  %897 = vst [vmem:[%s1527_s7 + $0x198] sm:$0xff] (%p1285_p6), %v896_v12  ;;  %v914_v21 = vld [vmem:[%s1472_s5 + $0x120] sm:$0xff] (%p1285_p6)  ;;  %v918_v23 = vld [vmem:[%s1472_s5 + $0x130] sm:$0xff] (%p1285_p6) }
 0x139   : > { %899 = vst [vmem:[%s1527_s7 + $0x1c0] sm:$0xff] %v898_v13  ;;  %901 = vst [vmem:[%s1527_s7 + $0x1c8] sm:$0xff] %v900_v14 }
 0x13a   : > { %903 = vst [vmem:[%s1527_s7 + $0x1d0] sm:$0xff] %v902_v15  ;;  %905 = vst [vmem:[%s1527_s7 + $0x1d8] sm:$0xff] %v904_v16  ;;  %v916_v22 = vld [vmem:[%s1472_s5 + $0x128] sm:$0xff]  ;;  %v920_v24 = vld [vmem:[%s1472_s5 + $0x138] sm:$0xff] }
 0x13b   : > { %907 = vst [vmem:[%s1527_s7 + $0x200] sm:$0xff] %v906_v17  ;;  %909 = vst [vmem:[%s1527_s7 + $0x208] sm:$0xff] %v908_v18 }
 0x13c   : > { %911 = vst [vmem:[%s1527_s7 + $0x210] sm:$0xff] %v910_v19  ;;  %913 = vst [vmem:[%s1527_s7 + $0x218] sm:$0xff] %v912_v20  ;;  %v922_v25 = vld [vmem:[%s1472_s5 + $0x140] sm:$0xff]  ;;  %v926_v27 = vld [vmem:[%s1472_s5 + $0x150] sm:$0xff] }
 0x13d   : > { %915 = vst [vmem:[%s1527_s7 + $0x240] sm:$0xff] %v914_v21  ;;  %917 = vst [vmem:[%s1527_s7 + $0x248] sm:$0xff] %v916_v22 }
 0x13e   : > { %919 = vst [vmem:[%s1527_s7 + $0x250] sm:$0xff] %v918_v23  ;;  %v924_v26 = vld [vmem:[%s1472_s5 + $0x148] sm:$0xff]  ;;  %921 = vst [vmem:[%s1527_s7 + $0x258] sm:$0xff] %v920_v24  ;;  %v928_v28 = vld [vmem:[%s1472_s5 + $0x158] sm:$0xff] }
 0x13f   : > { %923 = vst [vmem:[%s1527_s7 + $0x280] sm:$0xff] %v922_v25  ;;  %925 = vst [vmem:[%s1527_s7 + $0x288] sm:$0xff] %v924_v26 }
 0x140   : > { %927 = vst [vmem:[%s1527_s7 + $0x290] sm:$0xff] %v926_v27  ;;  %929 = vst [vmem:[%s1527_s7 + $0x298] sm:$0xff] %v928_v28 }
 0x141 PF: > { %s13_s16 = sadd.s32 1, %s1227_s16   ;;  %s1634_s12 = smov %s1215_s13 }
 0x142   : > { %p10_p11 = scmp.ge.s32.totalorder %s13_s16, 4   ;;  %s1635_s13 = smov %s1290_s22 }
 0x143   : > { %s1636_s14 = smov %s1223_s15  ;;  %s1637_s15 = smov %s1639_s17 }
 0x144   :  { %12 = sbr.rel (!%p10_p11) target bundleno = 3 (0x3), region = 119 }

// kernel: dconv_base_forward.3
= control target key start
LH: loop header
LB: loop body
LE: loop exit
PB: predicated region body
PF: predicated region fallthrough
CT: control target
= control target key end

     0   :  { %s884_s12 = smov 0   ;;  %s886_s13 = smov 0   ;;  %s1045_s0 = inlined_call_operand.vmem [shape: bf16[1,8,112], index: 0, kind: input, shape index: {}]   ;;  %s1046_s1 = inlined_call_operand.vmem [shape: bf16[1,112,1024], index: 1, kind: input, shape index: {}]   ;;  %s1047_s2 = inlined_call_operand.vmem [shape: f32[1,8,1], index: 2, kind: input, shape index: {}]   ;;  %s1048_s3 = inlined_call_operand.vmem [shape: f32[1,8,1024], index: 3, kind: output, shape index: {}]  }
   0x1   :  { %s888_s14 = smov 0   ;;  %s890_s15 = smov 0  }
   0x2   :  { %s892_s16 = smov 0  }
   0x3 LB: > { %s22_s17 = sadd.s32 1, %s857_s15  ;;  %p67_p1 = scmp.ne.s32.totalorder %s849_s13, %s845_s12  ;;  %s861_s16 = sphi %s892_s16, %s13_s16   ;;  %s857_s15 = sphi %s890_s15, %s1052_s15   ;;  %s853_s14 = sphi %s888_s14, %s1051_s14   ;;  %s849_s13 = sphi %s886_s13, %s1050_s13   ;;  %s845_s12 = sphi %s884_s12, %s1049_s12  }
   0x4   : > { %p23_p0 = scmp.ge.s32.totalorder %s22_s17, 2  ;;  %p68_p2 = scmp.eq.s32.totalorder %s861_s16, 0 }
   0x5   : > { %s60_s19 = sadd.s32 1, %s849_s13  ;;  %p698_p5 = scmp.ge.s32.totalorder %s861_s16, 2 }
   0x6   : > { %s1054_s17 = smov (%p23_p0, %s22_s17), 0  ;;  %p69_p3 = por %p68_p2, %p67_p1 }
   0x7   : > { %s56_s18 = ssub.s32 %s857_s15, %s1054_s17  ;;  %161 = sbr.rel (%p698_p5) target bundleno = 30 (0x1e), region = 24 }
   0x8   : > { %p58_p4 = scmp.eq.s32.totalorder %s56_s18, 0 }
   0xa   : > { %s919_s20 = scalar_select %p58_p4, %s849_s13, %s60_s19  }
   0xc   : > { %164 = sbr.rel (!%p69_p3) target bundleno = 30 (0x1e), region = 28  ;;  %s166_s21 = sand.u32 (%p69_p3), 1, %s849_s13  }
   0xd   : > { %s736_s22 = sshll.u32 (%p69_p3), %s857_s15, 4  ;;  %s737_s23 = smul.u32 (%p69_p3), 224, %s166_s21 }
   0xe   : > { %s927_s26 = scalar_lea.vmem (%p69_p3), %s1046_s1, %s736_s22 }
   0xf   : > { %v186_v0 = vld [vmem:[%s927_s26] sm:$0xff] (%p69_p3)  ;;  %v188_v1 = vld [vmem:[%s927_s26 + $0x8] sm:$0xff] (%p69_p3)  ;;  %s935_s27 = scalar_lea.vmem (%p69_p3), [#allocation2], %s737_s23 }
  0x10   : > { %v190_v2 = vld [vmem:[%s927_s26 + $0x20] sm:$0xff] (%p69_p3)  ;;  %v192_v3 = vld [vmem:[%s927_s26 + $0x28] sm:$0xff] (%p69_p3)  ;;  %187 = vst [vmem:[%s935_s27] sm:$0xff] (%p69_p3), %v186_v0  ;;  %189 = vst [vmem:[%s935_s27 + $0x8] sm:$0xff] (%p69_p3), %v188_v1 }
  0x11   : > { %v194_v4 = vld [vmem:[%s927_s26 + $0x40] sm:$0xff]  ;;  %v196_v5 = vld [vmem:[%s927_s26 + $0x48] sm:$0xff]  ;;  %191 = vst [vmem:[%s935_s27 + $0x10] sm:$0xff] %v190_v2  ;;  %193 = vst [vmem:[%s935_s27 + $0x18] sm:$0xff] %v192_v3 }
  0x12   : > { %195 = vst [vmem:[%s935_s27 + $0x20] sm:$0xff] %v194_v4  ;;  %197 = vst [vmem:[%s935_s27 + $0x28] sm:$0xff] %v196_v5  ;;  %v198_v6 = vld [vmem:[%s927_s26 + $0x60] sm:$0xff]  ;;  %v200_v7 = vld [vmem:[%s927_s26 + $0x68] sm:$0xff] }
  0x13   : > { %v202_v8 = vld [vmem:[%s927_s26 + $0x80] sm:$0xff]  ;;  %199 = vst [vmem:[%s935_s27 + $0x30] sm:$0xff] %v198_v6  ;;  %201 = vst [vmem:[%s935_s27 + $0x38] sm:$0xff] %v200_v7  ;;  %v204_v9 = vld [vmem:[%s927_s26 + $0x88] sm:$0xff] }
  0x14   : > { %203 = vst [vmem:[%s935_s27 + $0x40] sm:$0xff] %v202_v8  ;;  %v206_v10 = vld [vmem:[%s927_s26 + $0xa0] sm:$0xff]  ;;  %v208_v11 = vld [vmem:[%s927_s26 + $0xa8] sm:$0xff]  ;;  %205 = vst [vmem:[%s935_s27 + $0x48] sm:$0xff] %v204_v9 }
  0x15   : > { %207 = vst [vmem:[%s935_s27 + $0x50] sm:$0xff] %v206_v10  ;;  %209 = vst [vmem:[%s935_s27 + $0x58] sm:$0xff] %v208_v11  ;;  %v210_v12 = vld [vmem:[%s927_s26 + $0xc0] sm:$0xff]  ;;  %v212_v13 = vld [vmem:[%s927_s26 + $0xc8] sm:$0xff] }
  0x16   : > { %v214_v14 = vld [vmem:[%s927_s26 + $0xe0] sm:$0xff]  ;;  %211 = vst [vmem:[%s935_s27 + $0x60] sm:$0xff] %v210_v12  ;;  %213 = vst [vmem:[%s935_s27 + $0x68] sm:$0xff] %v212_v13  ;;  %v216_v15 = vld [vmem:[%s927_s26 + $0xe8] sm:$0xff] }
  0x17   : > { %215 = vst [vmem:[%s935_s27 + $0x70] sm:$0xff] %v214_v14  ;;  %v218_v16 = vld [vmem:[%s927_s26 + $0x100] sm:$0xff]  ;;  %v220_v17 = vld [vmem:[%s927_s26 + $0x108] sm:$0xff]  ;;  %217 = vst [vmem:[%s935_s27 + $0x78] sm:$0xff] %v216_v15 }
  0x18   : > { %219 = vst [vmem:[%s935_s27 + $0x80] sm:$0xff] %v218_v16  ;;  %221 = vst [vmem:[%s935_s27 + $0x88] sm:$0xff] %v220_v17  ;;  %v222_v18 = vld [vmem:[%s927_s26 + $0x120] sm:$0xff]  ;;  %v224_v19 = vld [vmem:[%s927_s26 + $0x128] sm:$0xff] }
  0x19   : > { %v226_v20 = vld [vmem:[%s927_s26 + $0x140] sm:$0xff]  ;;  %223 = vst [vmem:[%s935_s27 + $0x90] sm:$0xff] %v222_v18  ;;  %225 = vst [vmem:[%s935_s27 + $0x98] sm:$0xff] %v224_v19  ;;  %v228_v21 = vld [vmem:[%s927_s26 + $0x148] sm:$0xff] }
  0x1a   : > { %227 = vst [vmem:[%s935_s27 + $0xa0] sm:$0xff] %v226_v20  ;;  %v230_v22 = vld [vmem:[%s927_s26 + $0x160] sm:$0xff]  ;;  %v232_v23 = vld [vmem:[%s927_s26 + $0x168] sm:$0xff]  ;;  %229 = vst [vmem:[%s935_s27 + $0xa8] sm:$0xff] %v228_v21 }
  0x1b   : > { %231 = vst [vmem:[%s935_s27 + $0xb0] sm:$0xff] %v230_v22  ;;  %233 = vst [vmem:[%s935_s27 + $0xb8] sm:$0xff] %v232_v23  ;;  %v234_v24 = vld [vmem:[%s927_s26 + $0x180] sm:$0xff]  ;;  %v236_v25 = vld [vmem:[%s927_s26 + $0x188] sm:$0xff] }
  0x1c   : > { %v238_v26 = vld [vmem:[%s927_s26 + $0x1a0] sm:$0xff]  ;;  %235 = vst [vmem:[%s935_s27 + $0xc0] sm:$0xff] %v234_v24  ;;  %237 = vst [vmem:[%s935_s27 + $0xc8] sm:$0xff] %v236_v25  ;;  %v240_v27 = vld [vmem:[%s927_s26 + $0x1a8] sm:$0xff] }
  0x1d   : > { %239 = vst [vmem:[%s935_s27 + $0xd0] sm:$0xff] %v238_v26  ;;  %241 = vst [vmem:[%s935_s27 + $0xd8] sm:$0xff] %v240_v27 }
  0x1e PF: > { %p701_p6 = scmp.ge.s32.totalorder %s861_s16, 1  ;;  %p246_p7 = scmp.lt.s32.totalorder %s861_s16, 3 }
  0x20   : > { %p247_p8 = pnand %p701_p6, %p246_p7 }
  0x21   : > { %s253_s28 = sand.u32 (!%p247_p8), 1, %s845_s12   ;;  %s702_s8 = sshll.u32 (!%p247_p8), %s853_s14, 2 }
  0x22   : > { %250 = sbr.rel (%p247_p8) target bundleno = 269 (0x10d), region = 51  ;;  %p300_p9 = scmp.lt.s32.totalorder (!%p247_p8), %s702_s8, 7 }
  0x23   : > { %s738_s4 = smul.u32 (!%p247_p8), 224, %s253_s28 }
  0x25   : > { %s993_s5 = scalar_lea.vmem (!%p247_p8), [#allocation2], %s738_s4 }
  0x27   : > { %v337_v28 = vld [vmem:[%s1047_s2] sm:$0xff]  ;;  %v863_v29 = vmov 0   ;;  %v783_v31 = vld [vmem:[%s993_s5 + $0xcc] ss:$16 sps:$4 sm:$0xff]   ;;  %v786_v33 = vld [vmem:[%s993_s5 + $0xc8] ss:$16 sps:$4 sm:$0xff]  }
  0x28   : > { %519 = vmatprep.mubr.bf16.mxu0 %v863_v29  ;;  %560 = vmatprep.mubr.bf16.mxu1 %v863_v29  ;;  %v781_v30 = vld [vmem:[%s993_s5 + $0xc4] ss:$16 sps:$4 sm:$0xff]   ;;  %v785_v32 = vld [vmem:[%s993_s5 + $0xc0] ss:$16 sps:$4 sm:$0xff]   ;;  %v789_v35 = vld [vmem:[%s993_s5 + $0xac] ss:$16 sps:$4 sm:$0xff]  }
  0x29   : > { %780 = vset.pattern.permute.xlu0 %v863_v29  ;;  %489 = vmatprep.subr.bf16.mxu0 %v781_v30  ;;  %v787_v34 = vld [vmem:[%s993_s5 + $0xa4] ss:$16 sps:$4 sm:$0xff]   ;;  %v791_v36 = vld [vmem:[%s993_s5 + $0xa0] ss:$16 sps:$4 sm:$0xff]   ;;  %v792_v37 = vld [vmem:[%s993_s5 + $0xa8] ss:$16 sps:$4 sm:$0xff]  }
  0x2a   : > { %340 = vperm.xlu0 %780, %v337_v28   ;;  %530 = vmatprep.subr.bf16.mxu1 %v783_v31  ;;  %v793_v38 = vld [vmem:[%s993_s5 + $0x84] ss:$16 sps:$4 sm:$0xff]   ;;  %v795_v39 = vld [vmem:[%s993_s5 + $0x8c] ss:$16 sps:$4 sm:$0xff]   ;;  %v797_v40 = vld [vmem:[%s993_s5 + $0x80] ss:$16 sps:$4 sm:$0xff]  }
  0x2b   : > { %490 = vmatpush1.bf16.msra.mxu0 %v785_v32  ;;  %531 = vmatpush1.bf16.msra.mxu1 %v786_v33  ;;  %v798_v41 = vld [vmem:[%s993_s5 + $0x88] ss:$16 sps:$4 sm:$0xff]   ;;  %v799_v42 = vld [vmem:[%s993_s5 + $0x64] ss:$16 sps:$4 sm:$0xff]   ;;  %v801_v43 = vld [vmem:[%s993_s5 + $0x6c] ss:$16 sps:$4 sm:$0xff]  }
  0x2c   : > { %491 = vmatprep.subr.bf16.mxu0 %v787_v34  ;;  %532 = vmatprep.subr.bf16.mxu1 %v789_v35  ;;  %v803_v44 = vld [vmem:[%s993_s5 + $0x60] ss:$16 sps:$4 sm:$0xff]   ;;  %v804_v45 = vld [vmem:[%s993_s5 + $0x68] ss:$16 sps:$4 sm:$0xff]   ;;  %v805_v46 = vld [vmem:[%s993_s5 + $0x44] ss:$16 sps:$4 sm:$0xff]  }
  0x2d   : > { %v807_v47 = vld [vmem:[%s993_s5 + $0x4c] ss:$16 sps:$4 sm:$0xff]   ;;  %v809_v48 = vld [vmem:[%s993_s5 + $0x40] ss:$16 sps:$4 sm:$0xff]   ;;  %v810_v49 = vld [vmem:[%s993_s5 + $0x48] ss:$16 sps:$4 sm:$0xff]  }
  0x2e   : > { %v811_v50 = vld [vmem:[%s993_s5 + $0x24] ss:$16 sps:$4 sm:$0xff]   ;;  %v813_v51 = vld [vmem:[%s993_s5 + $0x2c] ss:$16 sps:$4 sm:$0xff]   ;;  %v815_v52 = vld [vmem:[%s993_s5 + $0x20] ss:$16 sps:$4 sm:$0xff]  }
  0x2f   : > { %492 = vmatpush1.bf16.msra.mxu0 %v791_v36  ;;  %533 = vmatpush1.bf16.msra.mxu1 %v792_v37  ;;  %v816_v53 = vld [vmem:[%s993_s5 + $0x28] ss:$16 sps:$4 sm:$0xff]   ;;  %v817_v54 = vld [vmem:[%s993_s5 + $0x4] ss:$16 sps:$4 sm:$0xff]   ;;  %v819_v55 = vld [vmem:[%s993_s5 + $0xc] ss:$16 sps:$4 sm:$0xff]  }
  0x30   : > { %493 = vmatprep.subr.bf16.mxu0 %v793_v38  ;;  %534 = vmatprep.subr.bf16.mxu1 %v795_v39  ;;  %v821_v56 = vld [vmem:[%s993_s5] ss:$16 sps:$4 sm:$0xff]   ;;  %v822_v57 = vld [vmem:[%s993_s5 + $0x8] ss:$16 sps:$4 sm:$0xff]   ;;  %vm483_vm0 = vcmask 916480   ;;  %s1056_s8 = smov (!%p300_p9, %s702_s8), 7 }
  0x31   : > { %v308_v58 = vld [vmem:[%s1045_s0] sm:$0xf]  ;;  %s703_s9 = sshll.u32 %s1056_s8, 3 }
  0x32   : > { %s305_s12 = scalar_lea.vmem %s1048_s3, %s703_s9 }
  0x33   : > { %494 = vmatpush1.bf16.msra.mxu0 %v797_v40  ;;  %535 = vmatpush1.bf16.msra.mxu1 %v798_v41 }
  0x34   : > { %495 = vmatprep.subr.bf16.mxu0 %v799_v42  ;;  %536 = vmatprep.subr.bf16.mxu1 %v801_v43 }
  0x37   : > { %496 = vmatpush1.bf16.msra.mxu0 %v803_v44  ;;  %537 = vmatpush1.bf16.msra.mxu1 %v804_v45 }
  0x38   : > { %497 = vmatprep.subr.bf16.mxu0 %v805_v46  ;;  %538 = vmatprep.subr.bf16.mxu1 %v807_v47 }
  0x3b   : > { %498 = vmatpush1.bf16.msra.mxu0 %v809_v48  ;;  %539 = vmatpush1.bf16.msra.mxu1 %v810_v49 }
  0x3c   : > { %499 = vmatprep.subr.bf16.mxu0 %v811_v50  ;;  %540 = vmatprep.subr.bf16.mxu1 %v813_v51 }
  0x3f   : > { %500 = vmatpush1.bf16.msra.mxu0 %v815_v52  ;;  %541 = vmatpush1.bf16.msra.mxu1 %v816_v53 }
  0x40   : > { %501 = vmatprep.subr.bf16.mxu0 %v817_v54  ;;  %542 = vmatprep.subr.bf16.mxu1 %v819_v55 }
  0x43   : > { %502 = vmatpush1.bf16.msra.mxu0 %v821_v56  ;;  %543 = vmatpush1.bf16.msra.mxu1 %v822_v57 }
  0x46   : > { %732 = vmatmul.mubr.msk.bf16.vlgmr.msra.gmra.mxu0 %vm483_vm0, %v308_v58  ;;  %733 = vmatmul.mubr.msk.bf16.vlgmr.msra.gmra.mxu1 %vm483_vm0, %v308_v58 }
  0xa5   : > { %v341_v59 = vpop.permute.xlu0 %340 }
 0x106   : > { %v521_v60 = vpop.f32.mrf.mxu0  ;;  %v562_v61 = vpop.f32.mrf.mxu1 }
 0x107   : > { %v522_v62 = vadd.f32 %v521_v60, %v341_v59  ;;  %v563_v2 = vadd.f32 %v562_v61, %v341_v59 }
 0x108   : > { %v523_v63 = vpop.f32.mrf.mxu0  ;;  %v564_v0 = vpop.f32.mrf.mxu1 }
 0x109   : > { %569 = vst [vmem:[%s305_s12] sm:$0xff] %v522_v62  ;;  %v524_v1 = vadd.f32 %v523_v63, %v341_v59  ;;  %v565_v5 = vadd.f32 %v564_v0, %v341_v59  ;;  %571 = vst [vmem:[%s305_s12 + $0x10] sm:$0xff] %v563_v2 }
 0x10a   : > { %v525_v3 = vpop.f32.mrf.mxu0  ;;  %v566_v4 = vpop.f32.mrf.mxu1 }
 0x10b   : > { %570 = vst [vmem:[%s305_s12 + $0x8] sm:$0xff] %v524_v1  ;;  %572 = vst [vmem:[%s305_s12 + $0x18] sm:$0xff] %v565_v5 }
 0x10c   : > { %v526_v6 = vpop.f32.mrf.mxu0  ;;  %v567_v7 = vpop.f32.mrf.mxu1 }
 0x10d PF: > { %s13_s16 = sadd.s32 1, %s861_s16   ;;  %s1049_s12 = smov %s849_s13 }
 0x10e   : > { %p10_p10 = scmp.ge.s32.totalorder %s13_s16, 4   ;;  %s1050_s13 = smov %s919_s20 }
 0x10f   : > { %s1051_s14 = smov %s857_s15  ;;  %s1052_s15 = smov %s1054_s17 }
 0x110   :  { %12 = sbr.rel (!%p10_p10) target bundleno = 3 (0x3), region = 96 }

</bundles_post_ra>
